<compile_context>
chip_gen: v5e
topology: v5e:2x2
jax: 0.10.0
libtpu: 0.0.40
codegen_flags: <defaults>
</compile_context>

<pallas_src>
import math
import functools

import jax
import jax.numpy as jnp
from jax import lax
from jax.experimental import pallas as pl
from jax.experimental.pallas import tpu as pltpu


LN_EPS = 1e-5
NEG_BIG = -1e30


# ----------------------------------------------------------------------------
# Pallas kernels
# ----------------------------------------------------------------------------

def _mha_sublayer_kernel(xq_ref, xkv_ref, wq_ref, bq_ref, wkv_ref, bkv_ref,
                         wo_ref, bo_ref, g_ref, beta_ref, o_ref,
                         *, num_heads, causal):
    """Fused attention sub-layer for one batch element:
       q = xq@Wq, kv = xkv@Wkv, per-head softmax(QK^T/sqrt(dh))V, output proj,
       residual add, LayerNorm -- all resident in VMEM."""
    xq = xq_ref[0]                                   # (Tq, D)
    xkv = xkv_ref[0]                                 # (Tk, D)
    Tq, D = xq.shape
    Tk = xkv.shape[0]
    Dh = D // num_heads
    scale = 1.0 / math.sqrt(Dh)

    q = jnp.dot(xq, wq_ref[...], preferred_element_type=jnp.float32) + bq_ref[...]
    kv = jnp.dot(xkv, wkv_ref[...], preferred_element_type=jnp.float32) + bkv_ref[...]
    k = kv[:, :D]
    v = kv[:, D:]
    wo = wo_ref[...]

    if causal:
        row = lax.broadcasted_iota(jnp.int32, (Tq, Tk), 0)
        col = lax.broadcasted_iota(jnp.int32, (Tq, Tk), 1)
        masked = col > row

    # Heads unrolled (static small H); output projection accumulated per head
    # (avoids lane-axis concat:  attn @ Wo == sum_h o_h @ Wo[h*Dh:(h+1)*Dh, :]).
    proj = jnp.zeros((Tq, D), jnp.float32)
    for h in range(num_heads):
        lo, hi = h * Dh, (h + 1) * Dh
        qh = q[:, lo:hi]
        kh = k[:, lo:hi]
        vh = v[:, lo:hi]
        # Contract last dims directly -> no explicit k transpose.
        s = lax.dot_general(qh, kh, (((1,), (1,)), ((), ())),
                            preferred_element_type=jnp.float32) * scale
        if causal:
            s = jnp.where(masked, NEG_BIG, s)
        s = s - jnp.max(s, axis=-1, keepdims=True)
        p = jnp.exp(s)
        p = p * pl.reciprocal(jnp.sum(p, axis=-1, keepdims=True), approx=True)
        oh = jnp.dot(p, vh, preferred_element_type=jnp.float32)
        proj = proj + jnp.dot(oh, wo[lo:hi, :], preferred_element_type=jnp.float32)

    # Residual + post-LayerNorm (fused).
    y = xq + proj + bo_ref[...]
    mean = jnp.mean(y, axis=-1, keepdims=True)
    var = jnp.mean((y - mean) ** 2, axis=-1, keepdims=True)
    o_ref[0] = (y - mean) * lax.rsqrt(var + LN_EPS) * g_ref[...] + beta_ref[...]


def _ffn_sublayer_kernel(x_ref, w1_ref, b1_ref, w2_ref, b2_ref,
                         g_ref, beta_ref, o_ref):
    """Fused FFN sub-layer: Linear -> ReLU -> Linear + residual + LayerNorm."""
    x = x_ref[0]                                     # (T, D)
    h = jnp.dot(x, w1_ref[...], preferred_element_type=jnp.float32) + b1_ref[...]
    h = jnp.maximum(h, 0.0)
    y = x + jnp.dot(h, w2_ref[...], preferred_element_type=jnp.float32) + b2_ref[...]
    mean = jnp.mean(y, axis=-1, keepdims=True)
    var = jnp.mean((y - mean) ** 2, axis=-1, keepdims=True)
    o_ref[0] = (y - mean) * lax.rsqrt(var + LN_EPS) * g_ref[...] + beta_ref[...]


def _out_proj_kernel(x_ref, w_ref, b_ref, o_ref):
    """Lane-dense output projection: N is pre-padded to a multiple of 128."""
    o_ref[...] = (jnp.dot(x_ref[...], w_ref[...], preferred_element_type=jnp.float32)
                  + b_ref[...])


# ----------------------------------------------------------------------------
# Pallas wrappers
# ----------------------------------------------------------------------------

def mha_sublayer(x_q, x_kv, attn_p, ln_p, *, num_heads, causal):
    """x_q: (B, Tq, D), x_kv: (B, Tk, D) -> LN(x_q + MHA(x_q, x_kv)) : (B, Tq, D)."""
    B, Tq, D = x_q.shape
    Tk = x_kv.shape[1]
    kernel = functools.partial(_mha_sublayer_kernel,
                               num_heads=num_heads, causal=causal)

    def rep(shape):  # replicated (weight/bias) spec
        return pl.BlockSpec(shape, lambda b: (0, 0))

    return pl.pallas_call(
        kernel,
        out_shape=jax.ShapeDtypeStruct((B, Tq, D), jnp.float32),
        grid=(B,),
        in_specs=[
            pl.BlockSpec((1, Tq, D), lambda b: (b, 0, 0)),
            pl.BlockSpec((1, Tk, D), lambda b: (b, 0, 0)),
            rep((D, D)),            # wq
            rep((1, D)),            # bq
            rep((D, 2 * D)),        # wkv (fused k|v projection)
            rep((1, 2 * D)),        # bkv
            rep((D, D)),            # wo
            rep((1, D)),            # bo
            rep((1, D)),            # ln gamma
            rep((1, D)),            # ln beta
        ],
        out_specs=pl.BlockSpec((1, Tq, D), lambda b: (b, 0, 0)),
        compiler_params=pltpu.CompilerParams(dimension_semantics=("parallel",)),
    )(x_q, x_kv,
      attn_p["wq"], attn_p["bq"].reshape(1, D),
      attn_p["wkv"], attn_p["bkv"].reshape(1, 2 * D),
      attn_p["wo"], attn_p["bo"].reshape(1, D),
      ln_p["g"].reshape(1, D), ln_p["b"].reshape(1, D))


def ffn_sublayer(x, ffn_p, ln_p):
    """x: (B, T, D) -> LN(x + FFN(x)) : (B, T, D)."""
    B, T, D = x.shape
    FF = ffn_p["w1"].shape[1]
    return pl.pallas_call(
        _ffn_sublayer_kernel,
        out_shape=jax.ShapeDtypeStruct((B, T, D), jnp.float32),
        grid=(B,),
        in_specs=[
            pl.BlockSpec((1, T, D), lambda b: (b, 0, 0)),
            pl.BlockSpec((D, FF), lambda b: (0, 0)),
            pl.BlockSpec((1, FF), lambda b: (0, 0)),
            pl.BlockSpec((FF, D), lambda b: (0, 0)),
            pl.BlockSpec((1, D), lambda b: (0, 0)),
            pl.BlockSpec((1, D), lambda b: (0, 0)),
            pl.BlockSpec((1, D), lambda b: (0, 0)),
        ],
        out_specs=pl.BlockSpec((1, T, D), lambda b: (b, 0, 0)),
        compiler_params=pltpu.CompilerParams(dimension_semantics=("parallel",)),
    )(x, ffn_p["w1"], ffn_p["b1"].reshape(1, FF),
      ffn_p["w2"], ffn_p["b2"].reshape(1, D),
      ln_p["g"].reshape(1, D), ln_p["b"].reshape(1, D))


def output_projection(x2d, w_pad, b_pad, vocab):
    """x2d: (M, D), w_pad: (D, Vpad) lane-dense -> (M, vocab)."""
    M, D = x2d.shape
    Np = w_pad.shape[1]
    out = pl.pallas_call(
        _out_proj_kernel,
        out_shape=jax.ShapeDtypeStruct((M, Np), jnp.float32),
        grid=(1,),
        in_specs=[
            pl.BlockSpec((M, D), lambda i: (0, 0)),
            pl.BlockSpec((D, Np), lambda i: (0, 0)),
            pl.BlockSpec((1, Np), lambda i: (0, 0)),
        ],
        out_specs=pl.BlockSpec((M, Np), lambda i: (0, 0)),
    )(x2d, w_pad, b_pad.reshape(1, Np))
    return out[:, :vocab]


# ----------------------------------------------------------------------------
# Model (parameter init + forward)
# ----------------------------------------------------------------------------

def _positional_encoding(max_len, d):
    pos = jnp.arange(max_len, dtype=jnp.float32)[:, None]
    div = jnp.exp(jnp.arange(0, d, 2, dtype=jnp.float32) * (-math.log(10000.0) / d))
    pe = jnp.zeros((max_len, d), dtype=jnp.float32)
    pe = pe.at[:, 0::2].set(jnp.sin(pos * div))
    pe = pe.at[:, 1::2].set(jnp.cos(pos * div))
    return pe[None]  # (1, max_len, d)


def _init_attn(key, d):
    ks = jax.random.split(key, 4)
    s = 0.02
    wk = jax.random.normal(ks[1], (d, d), jnp.float32) * s
    wv = jax.random.normal(ks[2], (d, d), jnp.float32) * s
    return {
        "wq": jax.random.normal(ks[0], (d, d), jnp.float32) * s,
        "bq": jnp.zeros((d,), jnp.float32),
        "wkv": jnp.concatenate([wk, wv], axis=1),      # fused (D, 2D)
        "bkv": jnp.zeros((2 * d,), jnp.float32),
        "wo": jax.random.normal(ks[3], (d, d), jnp.float32) * s,
        "bo": jnp.zeros((d,), jnp.float32),
    }


def _init_ffn(key, d, ff):
    k1, k2 = jax.random.split(key)
    s = 0.02
    return {
        "w1": jax.random.normal(k1, (d, ff), jnp.float32) * s,
        "b1": jnp.zeros((ff,), jnp.float32),
        "w2": jax.random.normal(k2, (ff, d), jnp.float32) * s,
        "b2": jnp.zeros((d,), jnp.float32),
    }


def _init_ln(d):
    return {"g": jnp.ones((d,), jnp.float32), "b": jnp.zeros((d,), jnp.float32)}


def init_params(key, src_vocab, tgt_vocab, d, ff, n_enc, n_dec, max_seq_len):
    keys = jax.random.split(key, 4 + n_enc * 2 + n_dec * 3)
    it = iter(keys)

    # Lane-dense (multiple-of-128) padded output projection weights.
    v_pad = ((tgt_vocab + 127) // 128) * 128
    out_w = jax.random.normal(next(it), (d, tgt_vocab), jnp.float32) * 0.02
    out_w_pad = jnp.zeros((d, v_pad), jnp.float32).at[:, :tgt_vocab].set(out_w)
    out_b_pad = jnp.zeros((v_pad,), jnp.float32)

    params = {
        "src_emb": jax.random.normal(next(it), (src_vocab, d), jnp.float32) * 0.02,
        "tgt_emb": jax.random.normal(next(it), (tgt_vocab, d), jnp.float32) * 0.02,
        "out_w_pad": out_w_pad,
        "out_b_pad": out_b_pad,
        "pos_enc": _positional_encoding(max_seq_len + 1, d),
        "enc_layers": [],
        "dec_layers": [],
    }
    _ = next(it)
    for _i in range(n_enc):
        params["enc_layers"].append({
            "attn": _init_attn(next(it), d),
            "ln1": _init_ln(d),
            "ffn": _init_ffn(next(it), d, ff),
            "ln2": _init_ln(d),
        })
    for _i in range(n_dec):
        params["dec_layers"].append({
            "self_attn": _init_attn(next(it), d),
            "ln1": _init_ln(d),
            "cross_attn": _init_attn(next(it), d),
            "ln2": _init_ln(d),
            "ffn": _init_ffn(next(it), d, ff),
            "ln3": _init_ln(d),
        })
    return params


def encoder_layer(x, p, num_heads):
    x = mha_sublayer(x, x, p["attn"], p["ln1"], num_heads=num_heads, causal=False)
    x = ffn_sublayer(x, p["ffn"], p["ln2"])
    return x


def decoder_layer(x, enc, p, num_heads):
    x = mha_sublayer(x, x, p["self_attn"], p["ln1"], num_heads=num_heads, causal=True)
    x = mha_sublayer(x, enc, p["cross_attn"], p["ln2"], num_heads=num_heads, causal=False)
    x = ffn_sublayer(x, p["ffn"], p["ln3"])
    return x


@functools.partial(jax.jit, static_argnames=("num_heads", "max_seq_len", "tgt_vocab"))
def forward(params, src_ids, tgt_ids, *, num_heads, max_seq_len, tgt_vocab):
    B, Ts = src_ids.shape
    _, Tt = tgt_ids.shape
    assert Ts == max_seq_len + 1, "Source sequence must equal max_seq_length + 1."
    D = params["src_emb"].shape[1]

    # Embedding + scale + positional encoding (glue).
    src = jnp.take(params["src_emb"], src_ids, axis=0)
    tgt = jnp.take(params["tgt_emb"], tgt_ids, axis=0)
    src = src * math.sqrt(D) + params["pos_enc"][:, :Ts]
    tgt = tgt * math.sqrt(D) + params["pos_enc"][:, :Tt]

    enc_output = src
    for lp in params["enc_layers"]:
        enc_output = encoder_layer(enc_output, lp, num_heads)

    dec_output = tgt
    for lp in params["dec_layers"]:
        dec_output = decoder_layer(dec_output, enc_output, lp, num_heads)

    logits = output_projection(dec_output.reshape(B * Tt, D),
                               params["out_w_pad"], params["out_b_pad"],
                               tgt_vocab)
    return logits.reshape(B, Tt, tgt_vocab)


# ----------------------------------------------------------------------------
# Main
# ----------------------------------------------------------------------------

if __name__ == "__main__":
    # Small config consistent with the module's __init__ signature.
    SRC_VOCAB = 50
    TGT_VOCAB = 40
    EMBED_DIM = 32
    NUM_HEADS = 4
    FF_DIM = 64
    NUM_ENC = 2
    NUM_DEC = 2
    MAX_SEQ_LEN = 8           # source sequence length must be MAX_SEQ_LEN + 1 = 9
    BATCH = 2
    TGT_LEN = 8

    key = jax.random.PRNGKey(0)
    kp, ks, kt = jax.random.split(key, 3)

    params = init_params(kp, SRC_VOCAB, TGT_VOCAB, EMBED_DIM, FF_DIM,
                         NUM_ENC, NUM_DEC, MAX_SEQ_LEN)

    src_ids = jax.random.randint(ks, (BATCH, MAX_SEQ_LEN + 1), 0, SRC_VOCAB,
                                 dtype=jnp.int32)
    tgt_ids = jax.random.randint(kt, (BATCH, TGT_LEN), 0, TGT_VOCAB,
                                 dtype=jnp.int32)

    logits = forward(params, src_ids, tgt_ids,
                     num_heads=NUM_HEADS, max_seq_len=MAX_SEQ_LEN,
                     tgt_vocab=TGT_VOCAB)
    logits = jax.block_until_ready(logits)

    assert logits.shape == (BATCH, TGT_LEN, TGT_VOCAB)
    assert bool(jnp.all(jnp.isfinite(logits)))
    print("KERNEL_OK")
</pallas_src>

<mosaic_0001>
module attributes {stable_mosaic.version = 11 : i64} {
  func.func @_mha_sublayer_kernel(%arg0: i32, %arg1: memref<1x9x32xf32, #tpu.memory_space<vmem>>, %arg2: memref<1x9x32xf32, #tpu.memory_space<vmem>>, %arg3: memref<32x32xf32, #tpu.memory_space<vmem>>, %arg4: memref<1x32xf32, #tpu.memory_space<vmem>>, %arg5: memref<32x64xf32, #tpu.memory_space<vmem>>, %arg6: memref<1x64xf32, #tpu.memory_space<vmem>>, %arg7: memref<32x32xf32, #tpu.memory_space<vmem>>, %arg8: memref<1x32xf32, #tpu.memory_space<vmem>>, %arg9: memref<1x32xf32, #tpu.memory_space<vmem>>, %arg10: memref<1x32xf32, #tpu.memory_space<vmem>>, %arg11: memref<1x9x32xf32, #tpu.memory_space<vmem>>) attributes {dimension_semantics = [#tpu.dimension_semantics<parallel>], iteration_bounds = array<i64: 2>, scalar_prefetch = 0 : i64, scratch_operands = 0 : i64, tpu.core_type = #tpu.core_type<tc>, window_params = [{transform_indices = @transform_0, window_bounds = array<i64: 1, 9, 32>}, {transform_indices = @transform_1, window_bounds = array<i64: 1, 9, 32>}, {pipeline_mode = #tpu.pipeline_mode<synchronous>, transform_indices = @transform_2, window_bounds = array<i64: 32, 32>}, {pipeline_mode = #tpu.pipeline_mode<synchronous>, transform_indices = @transform_3, window_bounds = array<i64: 1, 32>}, {pipeline_mode = #tpu.pipeline_mode<synchronous>, transform_indices = @transform_4, window_bounds = array<i64: 32, 64>}, {pipeline_mode = #tpu.pipeline_mode<synchronous>, transform_indices = @transform_5, window_bounds = array<i64: 1, 64>}, {pipeline_mode = #tpu.pipeline_mode<synchronous>, transform_indices = @transform_6, window_bounds = array<i64: 32, 32>}, {pipeline_mode = #tpu.pipeline_mode<synchronous>, transform_indices = @transform_7, window_bounds = array<i64: 1, 32>}, {pipeline_mode = #tpu.pipeline_mode<synchronous>, transform_indices = @transform_8, window_bounds = array<i64: 1, 32>}, {pipeline_mode = #tpu.pipeline_mode<synchronous>, transform_indices = @transform_9, window_bounds = array<i64: 1, 32>}, {transform_indices = @transform_10, window_bounds = array<i64: 1, 9, 32>}]} {
    %c0 = arith.constant 0 : index
    %c0_0 = arith.constant 0 : index
    %c0_1 = arith.constant 0 : index
    %0 = vector.load %arg1[%c0, %c0_0, %c0_1] : memref<1x9x32xf32, #tpu.memory_space<vmem>>, vector<1x9x32xf32>
    %1 = vector.shape_cast %0 : vector<1x9x32xf32> to vector<9x32xf32>
    %c0_2 = arith.constant 0 : index
    %c0_3 = arith.constant 0 : index
    %c0_4 = arith.constant 0 : index
    %2 = vector.load %arg2[%c0_2, %c0_3, %c0_4] : memref<1x9x32xf32, #tpu.memory_space<vmem>>, vector<1x9x32xf32>
    %3 = vector.shape_cast %2 : vector<1x9x32xf32> to vector<9x32xf32>
    %c0_5 = arith.constant 0 : index
    %c0_6 = arith.constant 0 : index
    %4 = vector.load %arg3[%c0_5, %c0_6] : memref<32x32xf32, #tpu.memory_space<vmem>>, vector<32x32xf32>
    %cst = arith.constant dense<0.000000e+00> : vector<9x32xf32>
    %5 = tpu.matmul %1, %4, %cst {dimension_numbers = #tpu.dot_dimension_numbers<[1], [0], [0], [1], [0, 0, 1, 1], [], []>} : vector<9x32xf32>, vector<32x32xf32>, vector<9x32xf32> -> vector<9x32xf32>
    %c0_7 = arith.constant 0 : index
    %c0_8 = arith.constant 0 : index
    %6 = vector.load %arg4[%c0_7, %c0_8] : memref<1x32xf32, #tpu.memory_space<vmem>>, vector<1x32xf32>
    %7 = vector.broadcast %6 : vector<1x32xf32> to vector<9x32xf32>
    %8 = arith.addf %5, %7 : vector<9x32xf32>
    %c0_9 = arith.constant 0 : index
    %c0_10 = arith.constant 0 : index
    %9 = vector.load %arg5[%c0_9, %c0_10] : memref<32x64xf32, #tpu.memory_space<vmem>>, vector<32x64xf32>
    %cst_11 = arith.constant dense<0.000000e+00> : vector<9x64xf32>
    %10 = tpu.matmul %3, %9, %cst_11 {dimension_numbers = #tpu.dot_dimension_numbers<[1], [0], [0], [1], [0, 0, 1, 1], [], []>} : vector<9x32xf32>, vector<32x64xf32>, vector<9x64xf32> -> vector<9x64xf32>
    %c0_12 = arith.constant 0 : index
    %c0_13 = arith.constant 0 : index
    %11 = vector.load %arg6[%c0_12, %c0_13] : memref<1x64xf32, #tpu.memory_space<vmem>>, vector<1x64xf32>
    %12 = vector.broadcast %11 : vector<1x64xf32> to vector<9x64xf32>
    %13 = arith.addf %10, %12 : vector<9x64xf32>
    %14 = vector.extract_strided_slice %13 {offsets = [0, 0], sizes = [9, 32], strides = [1, 1]} : vector<9x64xf32> to vector<9x32xf32>
    %15 = vector.extract_strided_slice %13 {offsets = [0, 32], sizes = [9, 32], strides = [1, 1]} : vector<9x64xf32> to vector<9x32xf32>
    %c0_14 = arith.constant 0 : index
    %c0_15 = arith.constant 0 : index
    %16 = vector.load %arg7[%c0_14, %c0_15] : memref<32x32xf32, #tpu.memory_space<vmem>>, vector<32x32xf32>
    %cst_16 = arith.constant 0.000000e+00 : f32
    %17 = vector.broadcast %cst_16 : f32 to vector<9x32xf32>
    %18 = vector.extract_strided_slice %8 {offsets = [0, 0], sizes = [9, 8], strides = [1, 1]} : vector<9x32xf32> to vector<9x8xf32>
    %19 = vector.extract_strided_slice %14 {offsets = [0, 0], sizes = [9, 8], strides = [1, 1]} : vector<9x32xf32> to vector<9x8xf32>
    %20 = vector.extract_strided_slice %15 {offsets = [0, 0], sizes = [9, 8], strides = [1, 1]} : vector<9x32xf32> to vector<9x8xf32>
    %cst_17 = arith.constant dense<0.000000e+00> : vector<9x9xf32>
    %21 = tpu.matmul %18, %19, %cst_17 {dimension_numbers = #tpu.dot_dimension_numbers<[1], [1], [0], [0], [0, 0, 1, 0], [], []>} : vector<9x8xf32>, vector<9x8xf32>, vector<9x9xf32> -> vector<9x9xf32>
    %cst_18 = arith.constant 0.353553385 : f32
    %22 = vector.broadcast %cst_18 : f32 to vector<9x9xf32>
    %23 = arith.mulf %21, %22 : vector<9x9xf32>
    %cst_19 = arith.constant dense<0xFF800000> : vector<9xf32>
    %24 = vector.multi_reduction <maximumf>, %23, %cst_19 [1] : vector<9x9xf32> to vector<9xf32>
    %25 = vector.shape_cast %24 : vector<9xf32> to vector<9x1xf32>
    %26 = vector.broadcast %25 : vector<9x1xf32> to vector<9x9xf32>
    %27 = arith.subf %23, %26 : vector<9x9xf32>
    %28 = math.exp %27 : vector<9x9xf32>
    %cst_20 = arith.constant dense<0.000000e+00> : vector<9xf32>
    %29 = vector.multi_reduction <add>, %28, %cst_20 [1] : vector<9x9xf32> to vector<9xf32>
    %30 = vector.shape_cast %29 : vector<9xf32> to vector<9x1xf32>
    %31 = tpu.reciprocal %30 {approx = true} : vector<9x1xf32> -> vector<9x1xf32>
    %32 = vector.broadcast %31 : vector<9x1xf32> to vector<9x9xf32>
    %33 = arith.mulf %28, %32 : vector<9x9xf32>
    %cst_21 = arith.constant dense<0.000000e+00> : vector<9x8xf32>
    %34 = tpu.matmul %33, %20, %cst_21 {dimension_numbers = #tpu.dot_dimension_numbers<[1], [0], [0], [1], [0, 0, 1, 1], [], []>} : vector<9x9xf32>, vector<9x8xf32>, vector<9x8xf32> -> vector<9x8xf32>
    %35 = vector.extract_strided_slice %16 {offsets = [0, 0], sizes = [8, 32], strides = [1, 1]} : vector<32x32xf32> to vector<8x32xf32>
    %cst_22 = arith.constant dense<0.000000e+00> : vector<9x32xf32>
    %36 = tpu.matmul %34, %35, %cst_22 {dimension_numbers = #tpu.dot_dimension_numbers<[1], [0], [0], [1], [0, 0, 1, 1], [], []>} : vector<9x8xf32>, vector<8x32xf32>, vector<9x32xf32> -> vector<9x32xf32>
    %37 = arith.addf %17, %36 : vector<9x32xf32>
    %38 = vector.extract_strided_slice %8 {offsets = [0, 8], sizes = [9, 8], strides = [1, 1]} : vector<9x32xf32> to vector<9x8xf32>
    %39 = vector.extract_strided_slice %14 {offsets = [0, 8], sizes = [9, 8], strides = [1, 1]} : vector<9x32xf32> to vector<9x8xf32>
    %40 = vector.extract_strided_slice %15 {offsets = [0, 8], sizes = [9, 8], strides = [1, 1]} : vector<9x32xf32> to vector<9x8xf32>
    %cst_23 = arith.constant dense<0.000000e+00> : vector<9x9xf32>
    %41 = tpu.matmul %38, %39, %cst_23 {dimension_numbers = #tpu.dot_dimension_numbers<[1], [1], [0], [0], [0, 0, 1, 0], [], []>} : vector<9x8xf32>, vector<9x8xf32>, vector<9x9xf32> -> vector<9x9xf32>
    %cst_24 = arith.constant 0.353553385 : f32
    %42 = vector.broadcast %cst_24 : f32 to vector<9x9xf32>
    %43 = arith.mulf %41, %42 : vector<9x9xf32>
    %cst_25 = arith.constant dense<0xFF800000> : vector<9xf32>
    %44 = vector.multi_reduction <maximumf>, %43, %cst_25 [1] : vector<9x9xf32> to vector<9xf32>
    %45 = vector.shape_cast %44 : vector<9xf32> to vector<9x1xf32>
    %46 = vector.broadcast %45 : vector<9x1xf32> to vector<9x9xf32>
    %47 = arith.subf %43, %46 : vector<9x9xf32>
    %48 = math.exp %47 : vector<9x9xf32>
    %cst_26 = arith.constant dense<0.000000e+00> : vector<9xf32>
    %49 = vector.multi_reduction <add>, %48, %cst_26 [1] : vector<9x9xf32> to vector<9xf32>
    %50 = vector.shape_cast %49 : vector<9xf32> to vector<9x1xf32>
    %51 = tpu.reciprocal %50 {approx = true} : vector<9x1xf32> -> vector<9x1xf32>
    %52 = vector.broadcast %51 : vector<9x1xf32> to vector<9x9xf32>
    %53 = arith.mulf %48, %52 : vector<9x9xf32>
    %cst_27 = arith.constant dense<0.000000e+00> : vector<9x8xf32>
    %54 = tpu.matmul %53, %40, %cst_27 {dimension_numbers = #tpu.dot_dimension_numbers<[1], [0], [0], [1], [0, 0, 1, 1], [], []>} : vector<9x9xf32>, vector<9x8xf32>, vector<9x8xf32> -> vector<9x8xf32>
    %55 = vector.extract_strided_slice %16 {offsets = [8, 0], sizes = [8, 32], strides = [1, 1]} : vector<32x32xf32> to vector<8x32xf32>
    %cst_28 = arith.constant dense<0.000000e+00> : vector<9x32xf32>
    %56 = tpu.matmul %54, %55, %cst_28 {dimension_numbers = #tpu.dot_dimension_numbers<[1], [0], [0], [1], [0, 0, 1, 1], [], []>} : vector<9x8xf32>, vector<8x32xf32>, vector<9x32xf32> -> vector<9x32xf32>
    %57 = arith.addf %37, %56 : vector<9x32xf32>
    %58 = vector.extract_strided_slice %8 {offsets = [0, 16], sizes = [9, 8], strides = [1, 1]} : vector<9x32xf32> to vector<9x8xf32>
    %59 = vector.extract_strided_slice %14 {offsets = [0, 16], sizes = [9, 8], strides = [1, 1]} : vector<9x32xf32> to vector<9x8xf32>
    %60 = vector.extract_strided_slice %15 {offsets = [0, 16], sizes = [9, 8], strides = [1, 1]} : vector<9x32xf32> to vector<9x8xf32>
    %cst_29 = arith.constant dense<0.000000e+00> : vector<9x9xf32>
    %61 = tpu.matmul %58, %59, %cst_29 {dimension_numbers = #tpu.dot_dimension_numbers<[1], [1], [0], [0], [0, 0, 1, 0], [], []>} : vector<9x8xf32>, vector<9x8xf32>, vector<9x9xf32> -> vector<9x9xf32>
    %cst_30 = arith.constant 0.353553385 : f32
    %62 = vector.broadcast %cst_30 : f32 to vector<9x9xf32>
    %63 = arith.mulf %61, %62 : vector<9x9xf32>
    %cst_31 = arith.constant dense<0xFF800000> : vector<9xf32>
    %64 = vector.multi_reduction <maximumf>, %63, %cst_31 [1] : vector<9x9xf32> to vector<9xf32>
    %65 = vector.shape_cast %64 : vector<9xf32> to vector<9x1xf32>
    %66 = vector.broadcast %65 : vector<9x1xf32> to vector<9x9xf32>
    %67 = arith.subf %63, %66 : vector<9x9xf32>
    %68 = math.exp %67 : vector<9x9xf32>
    %cst_32 = arith.constant dense<0.000000e+00> : vector<9xf32>
    %69 = vector.multi_reduction <add>, %68, %cst_32 [1] : vector<9x9xf32> to vector<9xf32>
    %70 = vector.shape_cast %69 : vector<9xf32> to vector<9x1xf32>
    %71 = tpu.reciprocal %70 {approx = true} : vector<9x1xf32> -> vector<9x1xf32>
    %72 = vector.broadcast %71 : vector<9x1xf32> to vector<9x9xf32>
    %73 = arith.mulf %68, %72 : vector<9x9xf32>
    %cst_33 = arith.constant dense<0.000000e+00> : vector<9x8xf32>
    %74 = tpu.matmul %73, %60, %cst_33 {dimension_numbers = #tpu.dot_dimension_numbers<[1], [0], [0], [1], [0, 0, 1, 1], [], []>} : vector<9x9xf32>, vector<9x8xf32>, vector<9x8xf32> -> vector<9x8xf32>
    %75 = vector.extract_strided_slice %16 {offsets = [16, 0], sizes = [8, 32], strides = [1, 1]} : vector<32x32xf32> to vector<8x32xf32>
    %cst_34 = arith.constant dense<0.000000e+00> : vector<9x32xf32>
    %76 = tpu.matmul %74, %75, %cst_34 {dimension_numbers = #tpu.dot_dimension_numbers<[1], [0], [0], [1], [0, 0, 1, 1], [], []>} : vector<9x8xf32>, vector<8x32xf32>, vector<9x32xf32> -> vector<9x32xf32>
    %77 = arith.addf %57, %76 : vector<9x32xf32>
    %78 = vector.extract_strided_slice %8 {offsets = [0, 24], sizes = [9, 8], strides = [1, 1]} : vector<9x32xf32> to vector<9x8xf32>
    %79 = vector.extract_strided_slice %14 {offsets = [0, 24], sizes = [9, 8], strides = [1, 1]} : vector<9x32xf32> to vector<9x8xf32>
    %80 = vector.extract_strided_slice %15 {offsets = [0, 24], sizes = [9, 8], strides = [1, 1]} : vector<9x32xf32> to vector<9x8xf32>
    %cst_35 = arith.constant dense<0.000000e+00> : vector<9x9xf32>
    %81 = tpu.matmul %78, %79, %cst_35 {dimension_numbers = #tpu.dot_dimension_numbers<[1], [1], [0], [0], [0, 0, 1, 0], [], []>} : vector<9x8xf32>, vector<9x8xf32>, vector<9x9xf32> -> vector<9x9xf32>
    %cst_36 = arith.constant 0.353553385 : f32
    %82 = vector.broadcast %cst_36 : f32 to vector<9x9xf32>
    %83 = arith.mulf %81, %82 : vector<9x9xf32>
    %cst_37 = arith.constant dense<0xFF800000> : vector<9xf32>
    %84 = vector.multi_reduction <maximumf>, %83, %cst_37 [1] : vector<9x9xf32> to vector<9xf32>
    %85 = vector.shape_cast %84 : vector<9xf32> to vector<9x1xf32>
    %86 = vector.broadcast %85 : vector<9x1xf32> to vector<9x9xf32>
    %87 = arith.subf %83, %86 : vector<9x9xf32>
    %88 = math.exp %87 : vector<9x9xf32>
    %cst_38 = arith.constant dense<0.000000e+00> : vector<9xf32>
    %89 = vector.multi_reduction <add>, %88, %cst_38 [1] : vector<9x9xf32> to vector<9xf32>
    %90 = vector.shape_cast %89 : vector<9xf32> to vector<9x1xf32>
    %91 = tpu.reciprocal %90 {approx = true} : vector<9x1xf32> -> vector<9x1xf32>
    %92 = vector.broadcast %91 : vector<9x1xf32> to vector<9x9xf32>
    %93 = arith.mulf %88, %92 : vector<9x9xf32>
    %cst_39 = arith.constant dense<0.000000e+00> : vector<9x8xf32>
    %94 = tpu.matmul %93, %80, %cst_39 {dimension_numbers = #tpu.dot_dimension_numbers<[1], [0], [0], [1], [0, 0, 1, 1], [], []>} : vector<9x9xf32>, vector<9x8xf32>, vector<9x8xf32> -> vector<9x8xf32>
    %95 = vector.extract_strided_slice %16 {offsets = [24, 0], sizes = [8, 32], strides = [1, 1]} : vector<32x32xf32> to vector<8x32xf32>
    %cst_40 = arith.constant dense<0.000000e+00> : vector<9x32xf32>
    %96 = tpu.matmul %94, %95, %cst_40 {dimension_numbers = #tpu.dot_dimension_numbers<[1], [0], [0], [1], [0, 0, 1, 1], [], []>} : vector<9x8xf32>, vector<8x32xf32>, vector<9x32xf32> -> vector<9x32xf32>
    %97 = arith.addf %77, %96 : vector<9x32xf32>
    %98 = arith.addf %1, %97 : vector<9x32xf32>
    %c0_41 = arith.constant 0 : index
    %c0_42 = arith.constant 0 : index
    %99 = vector.load %arg8[%c0_41, %c0_42] : memref<1x32xf32, #tpu.memory_space<vmem>>, vector<1x32xf32>
    %100 = vector.broadcast %99 : vector<1x32xf32> to vector<9x32xf32>
    %101 = arith.addf %98, %100 : vector<9x32xf32>
    %cst_43 = arith.constant dense<0.000000e+00> : vector<9xf32>
    %102 = vector.multi_reduction <add>, %101, %cst_43 [1] : vector<9x32xf32> to vector<9xf32>
    %103 = vector.shape_cast %102 : vector<9xf32> to vector<9x1xf32>
    %cst_44 = arith.constant 3.200000e+01 : f32
    %104 = vector.broadcast %cst_44 : f32 to vector<9x1xf32>
    %105 = arith.divf %103, %104 : vector<9x1xf32>
    %106 = vector.broadcast %105 : vector<9x1xf32> to vector<9x32xf32>
    %107 = arith.subf %101, %106 : vector<9x32xf32>
    %108 = arith.mulf %107, %107 : vector<9x32xf32>
    %cst_45 = arith.constant dense<0.000000e+00> : vector<9xf32>
    %109 = vector.multi_reduction <add>, %108, %cst_45 [1] : vector<9x32xf32> to vector<9xf32>
    %110 = vector.shape_cast %109 : vector<9xf32> to vector<9x1xf32>
    %cst_46 = arith.constant 3.200000e+01 : f32
    %111 = vector.broadcast %cst_46 : f32 to vector<9x1xf32>
    %112 = arith.divf %110, %111 : vector<9x1xf32>
    %113 = vector.broadcast %105 : vector<9x1xf32> to vector<9x32xf32>
    %114 = arith.subf %101, %113 : vector<9x32xf32>
    %cst_47 = arith.constant 9.99999974E-6 : f32
    %115 = vector.broadcast %cst_47 : f32 to vector<9x1xf32>
    %116 = arith.addf %112, %115 : vector<9x1xf32>
    %117 = math.rsqrt %116 : vector<9x1xf32>
    %118 = vector.broadcast %117 : vector<9x1xf32> to vector<9x32xf32>
    %119 = arith.mulf %114, %118 : vector<9x32xf32>
    %c0_48 = arith.constant 0 : index
    %c0_49 = arith.constant 0 : index
    %120 = vector.load %arg9[%c0_48, %c0_49] : memref<1x32xf32, #tpu.memory_space<vmem>>, vector<1x32xf32>
    %121 = vector.broadcast %120 : vector<1x32xf32> to vector<9x32xf32>
    %122 = arith.mulf %119, %121 : vector<9x32xf32>
    %c0_50 = arith.constant 0 : index
    %c0_51 = arith.constant 0 : index
    %123 = vector.load %arg10[%c0_50, %c0_51] : memref<1x32xf32, #tpu.memory_space<vmem>>, vector<1x32xf32>
    %124 = vector.broadcast %123 : vector<1x32xf32> to vector<9x32xf32>
    %125 = arith.addf %122, %124 : vector<9x32xf32>
    %c0_52 = arith.constant 0 : index
    %c0_53 = arith.constant 0 : index
    %c0_54 = arith.constant 0 : index
    %126 = vector.load %arg11[%c0_52, %c0_53, %c0_54] : memref<1x9x32xf32, #tpu.memory_space<vmem>>, vector<1x9x32xf32>
    %127 = vector.shape_cast %126 : vector<1x9x32xf32> to vector<9x32xf32>
    %128 = vector.shape_cast %125 : vector<9x32xf32> to vector<1x9x32xf32>
    tpu.vector_store %arg11[%c0_52, %c0_53, %c0_54], %128 {strides = array<i32>} : memref<1x9x32xf32, #tpu.memory_space<vmem>>, vector<1x9x32xf32>,
    return
  }
  func.func @transform_0(%arg0: i32) -> (i32, i32, i32) {
    %c0_i32 = arith.constant 0 : i32
    %c0_i32_0 = arith.constant 0 : i32
    %c0_i32_1 = arith.constant 0 : i32
    return %arg0, %c0_i32, %c0_i32_0 : i32, i32, i32
  }
  func.func @transform_1(%arg0: i32) -> (i32, i32, i32) {
    %c0_i32 = arith.constant 0 : i32
    %c0_i32_0 = arith.constant 0 : i32
    %c0_i32_1 = arith.constant 0 : i32
    return %arg0, %c0_i32, %c0_i32_0 : i32, i32, i32
  }
  func.func @transform_2(%arg0: i32) -> (i32, i32) {
    %c0_i32 = arith.constant 0 : i32
    %c0_i32_0 = arith.constant 0 : i32
    %c0_i32_1 = arith.constant 0 : i32
    return %c0_i32, %c0_i32_0 : i32, i32
  }
  func.func @transform_3(%arg0: i32) -> (i32, i32) {
    %c0_i32 = arith.constant 0 : i32
    %c0_i32_0 = arith.constant 0 : i32
    %c0_i32_1 = arith.constant 0 : i32
    return %c0_i32, %c0_i32_0 : i32, i32
  }
  func.func @transform_4(%arg0: i32) -> (i32, i32) {
    %c0_i32 = arith.constant 0 : i32
    %c0_i32_0 = arith.constant 0 : i32
    %c0_i32_1 = arith.constant 0 : i32
    return %c0_i32, %c0_i32_0 : i32, i32
  }
  func.func @transform_5(%arg0: i32) -> (i32, i32) {
    %c0_i32 = arith.constant 0 : i32
    %c0_i32_0 = arith.constant 0 : i32
    %c0_i32_1 = arith.constant 0 : i32
    return %c0_i32, %c0_i32_0 : i32, i32
  }
  func.func @transform_6(%arg0: i32) -> (i32, i32) {
    %c0_i32 = arith.constant 0 : i32
    %c0_i32_0 = arith.constant 0 : i32
    %c0_i32_1 = arith.constant 0 : i32
    return %c0_i32, %c0_i32_0 : i32, i32
  }
  func.func @transform_7(%arg0: i32) -> (i32, i32) {
    %c0_i32 = arith.constant 0 : i32
    %c0_i32_0 = arith.constant 0 : i32
    %c0_i32_1 = arith.constant 0 : i32
    return %c0_i32, %c0_i32_0 : i32, i32
  }
  func.func @transform_8(%arg0: i32) -> (i32, i32) {
    %c0_i32 = arith.constant 0 : i32
    %c0_i32_0 = arith.constant 0 : i32
    %c0_i32_1 = arith.constant 0 : i32
    return %c0_i32, %c0_i32_0 : i32, i32
  }
  func.func @transform_9(%arg0: i32) -> (i32, i32) {
    %c0_i32 = arith.constant 0 : i32
    %c0_i32_0 = arith.constant 0 : i32
    %c0_i32_1 = arith.constant 0 : i32
    return %c0_i32, %c0_i32_0 : i32, i32
  }
  func.func @transform_10(%arg0: i32) -> (i32, i32, i32) {
    %c0_i32 = arith.constant 0 : i32
    %c0_i32_0 = arith.constant 0 : i32
    %c0_i32_1 = arith.constant 0 : i32
    return %arg0, %c0_i32, %c0_i32_0 : i32, i32, i32
  }
}

module attributes {stable_mosaic.version = 11 : i64} {
  func.func @_ffn_sublayer_kernel(%arg0: i32, %arg1: memref<1x9x32xf32, #tpu.memory_space<vmem>>, %arg2: memref<32x64xf32, #tpu.memory_space<vmem>>, %arg3: memref<1x64xf32, #tpu.memory_space<vmem>>, %arg4: memref<64x32xf32, #tpu.memory_space<vmem>>, %arg5: memref<1x32xf32, #tpu.memory_space<vmem>>, %arg6: memref<1x32xf32, #tpu.memory_space<vmem>>, %arg7: memref<1x32xf32, #tpu.memory_space<vmem>>, %arg8: memref<1x9x32xf32, #tpu.memory_space<vmem>>) attributes {dimension_semantics = [#tpu.dimension_semantics<parallel>], iteration_bounds = array<i64: 2>, scalar_prefetch = 0 : i64, scratch_operands = 0 : i64, tpu.core_type = #tpu.core_type<tc>, window_params = [{transform_indices = @transform_0, window_bounds = array<i64: 1, 9, 32>}, {pipeline_mode = #tpu.pipeline_mode<synchronous>, transform_indices = @transform_1, window_bounds = array<i64: 32, 64>}, {pipeline_mode = #tpu.pipeline_mode<synchronous>, transform_indices = @transform_2, window_bounds = array<i64: 1, 64>}, {pipeline_mode = #tpu.pipeline_mode<synchronous>, transform_indices = @transform_3, window_bounds = array<i64: 64, 32>}, {pipeline_mode = #tpu.pipeline_mode<synchronous>, transform_indices = @transform_4, window_bounds = array<i64: 1, 32>}, {pipeline_mode = #tpu.pipeline_mode<synchronous>, transform_indices = @transform_5, window_bounds = array<i64: 1, 32>}, {pipeline_mode = #tpu.pipeline_mode<synchronous>, transform_indices = @transform_6, window_bounds = array<i64: 1, 32>}, {transform_indices = @transform_7, window_bounds = array<i64: 1, 9, 32>}]} {
    %c0 = arith.constant 0 : index
    %c0_0 = arith.constant 0 : index
    %c0_1 = arith.constant 0 : index
    %0 = vector.load %arg1[%c0, %c0_0, %c0_1] : memref<1x9x32xf32, #tpu.memory_space<vmem>>, vector<1x9x32xf32>
    %1 = vector.shape_cast %0 : vector<1x9x32xf32> to vector<9x32xf32>
    %c0_2 = arith.constant 0 : index
    %c0_3 = arith.constant 0 : index
    %2 = vector.load %arg2[%c0_2, %c0_3] : memref<32x64xf32, #tpu.memory_space<vmem>>, vector<32x64xf32>
    %cst = arith.constant dense<0.000000e+00> : vector<9x64xf32>
    %3 = tpu.matmul %1, %2, %cst {dimension_numbers = #tpu.dot_dimension_numbers<[1], [0], [0], [1], [0, 0, 1, 1], [], []>} : vector<9x32xf32>, vector<32x64xf32>, vector<9x64xf32> -> vector<9x64xf32>
    %c0_4 = arith.constant 0 : index
    %c0_5 = arith.constant 0 : index
    %4 = vector.load %arg3[%c0_4, %c0_5] : memref<1x64xf32, #tpu.memory_space<vmem>>, vector<1x64xf32>
    %5 = vector.broadcast %4 : vector<1x64xf32> to vector<9x64xf32>
    %6 = arith.addf %3, %5 : vector<9x64xf32>
    %cst_6 = arith.constant 0.000000e+00 : f32
    %7 = vector.broadcast %cst_6 : f32 to vector<9x64xf32>
    %8 = arith.maximumf %6, %7 : vector<9x64xf32>
    %c0_7 = arith.constant 0 : index
    %c0_8 = arith.constant 0 : index
    %9 = vector.load %arg4[%c0_7, %c0_8] : memref<64x32xf32, #tpu.memory_space<vmem>>, vector<64x32xf32>
    %cst_9 = arith.constant dense<0.000000e+00> : vector<9x32xf32>
    %10 = tpu.matmul %8, %9, %cst_9 {dimension_numbers = #tpu.dot_dimension_numbers<[1], [0], [0], [1], [0, 0, 1, 1], [], []>} : vector<9x64xf32>, vector<64x32xf32>, vector<9x32xf32> -> vector<9x32xf32>
    %11 = arith.addf %1, %10 : vector<9x32xf32>
    %c0_10 = arith.constant 0 : index
    %c0_11 = arith.constant 0 : index
    %12 = vector.load %arg5[%c0_10, %c0_11] : memref<1x32xf32, #tpu.memory_space<vmem>>, vector<1x32xf32>
    %13 = vector.broadcast %12 : vector<1x32xf32> to vector<9x32xf32>
    %14 = arith.addf %11, %13 : vector<9x32xf32>
    %cst_12 = arith.constant dense<0.000000e+00> : vector<9xf32>
    %15 = vector.multi_reduction <add>, %14, %cst_12 [1] : vector<9x32xf32> to vector<9xf32>
    %16 = vector.shape_cast %15 : vector<9xf32> to vector<9x1xf32>
    %cst_13 = arith.constant 3.200000e+01 : f32
    %17 = vector.broadcast %cst_13 : f32 to vector<9x1xf32>
    %18 = arith.divf %16, %17 : vector<9x1xf32>
    %19 = vector.broadcast %18 : vector<9x1xf32> to vector<9x32xf32>
    %20 = arith.subf %14, %19 : vector<9x32xf32>
    %21 = arith.mulf %20, %20 : vector<9x32xf32>
    %cst_14 = arith.constant dense<0.000000e+00> : vector<9xf32>
    %22 = vector.multi_reduction <add>, %21, %cst_14 [1] : vector<9x32xf32> to vector<9xf32>
    %23 = vector.shape_cast %22 : vector<9xf32> to vector<9x1xf32>
    %cst_15 = arith.constant 3.200000e+01 : f32
    %24 = vector.broadcast %cst_15 : f32 to vector<9x1xf32>
    %25 = arith.divf %23, %24 : vector<9x1xf32>
    %26 = vector.broadcast %18 : vector<9x1xf32> to vector<9x32xf32>
    %27 = arith.subf %14, %26 : vector<9x32xf32>
    %cst_16 = arith.constant 9.99999974E-6 : f32
    %28 = vector.broadcast %cst_16 : f32 to vector<9x1xf32>
    %29 = arith.addf %25, %28 : vector<9x1xf32>
    %30 = math.rsqrt %29 : vector<9x1xf32>
    %31 = vector.broadcast %30 : vector<9x1xf32> to vector<9x32xf32>
    %32 = arith.mulf %27, %31 : vector<9x32xf32>
    %c0_17 = arith.constant 0 : index
    %c0_18 = arith.constant 0 : index
    %33 = vector.load %arg6[%c0_17, %c0_18] : memref<1x32xf32, #tpu.memory_space<vmem>>, vector<1x32xf32>
    %34 = vector.broadcast %33 : vector<1x32xf32> to vector<9x32xf32>
    %35 = arith.mulf %32, %34 : vector<9x32xf32>
    %c0_19 = arith.constant 0 : index
    %c0_20 = arith.constant 0 : index
    %36 = vector.load %arg7[%c0_19, %c0_20] : memref<1x32xf32, #tpu.memory_space<vmem>>, vector<1x32xf32>
    %37 = vector.broadcast %36 : vector<1x32xf32> to vector<9x32xf32>
    %38 = arith.addf %35, %37 : vector<9x32xf32>
    %c0_21 = arith.constant 0 : index
    %c0_22 = arith.constant 0 : index
    %c0_23 = arith.constant 0 : index
    %39 = vector.load %arg8[%c0_21, %c0_22, %c0_23] : memref<1x9x32xf32, #tpu.memory_space<vmem>>, vector<1x9x32xf32>
    %40 = vector.shape_cast %39 : vector<1x9x32xf32> to vector<9x32xf32>
    %41 = vector.shape_cast %38 : vector<9x32xf32> to vector<1x9x32xf32>
    tpu.vector_store %arg8[%c0_21, %c0_22, %c0_23], %41 {strides = array<i32>} : memref<1x9x32xf32, #tpu.memory_space<vmem>>, vector<1x9x32xf32>,
    return
  }
  func.func @transform_0(%arg0: i32) -> (i32, i32, i32) {
    %c0_i32 = arith.constant 0 : i32
    %c0_i32_0 = arith.constant 0 : i32
    %c0_i32_1 = arith.constant 0 : i32
    return %arg0, %c0_i32, %c0_i32_0 : i32, i32, i32
  }
  func.func @transform_1(%arg0: i32) -> (i32, i32) {
    %c0_i32 = arith.constant 0 : i32
    %c0_i32_0 = arith.constant 0 : i32
    %c0_i32_1 = arith.constant 0 : i32
    return %c0_i32, %c0_i32_0 : i32, i32
  }
  func.func @transform_2(%arg0: i32) -> (i32, i32) {
    %c0_i32 = arith.constant 0 : i32
    %c0_i32_0 = arith.constant 0 : i32
    %c0_i32_1 = arith.constant 0 : i32
    return %c0_i32, %c0_i32_0 : i32, i32
  }
  func.func @transform_3(%arg0: i32) -> (i32, i32) {
    %c0_i32 = arith.constant 0 : i32
    %c0_i32_0 = arith.constant 0 : i32
    %c0_i32_1 = arith.constant 0 : i32
    return %c0_i32, %c0_i32_0 : i32, i32
  }
  func.func @transform_4(%arg0: i32) -> (i32, i32) {
    %c0_i32 = arith.constant 0 : i32
    %c0_i32_0 = arith.constant 0 : i32
    %c0_i32_1 = arith.constant 0 : i32
    return %c0_i32, %c0_i32_0 : i32, i32
  }
  func.func @transform_5(%arg0: i32) -> (i32, i32) {
    %c0_i32 = arith.constant 0 : i32
    %c0_i32_0 = arith.constant 0 : i32
    %c0_i32_1 = arith.constant 0 : i32
    return %c0_i32, %c0_i32_0 : i32, i32
  }
  func.func @transform_6(%arg0: i32) -> (i32, i32) {
    %c0_i32 = arith.constant 0 : i32
    %c0_i32_0 = arith.constant 0 : i32
    %c0_i32_1 = arith.constant 0 : i32
    return %c0_i32, %c0_i32_0 : i32, i32
  }
  func.func @transform_7(%arg0: i32) -> (i32, i32, i32) {
    %c0_i32 = arith.constant 0 : i32
    %c0_i32_0 = arith.constant 0 : i32
    %c0_i32_1 = arith.constant 0 : i32
    return %arg0, %c0_i32, %c0_i32_0 : i32, i32, i32
  }
}

module attributes {stable_mosaic.version = 11 : i64} {
  func.func @_mha_sublayer_kernel(%arg0: i32, %arg1: memref<1x8x32xf32, #tpu.memory_space<vmem>>, %arg2: memref<1x8x32xf32, #tpu.memory_space<vmem>>, %arg3: memref<32x32xf32, #tpu.memory_space<vmem>>, %arg4: memref<1x32xf32, #tpu.memory_space<vmem>>, %arg5: memref<32x64xf32, #tpu.memory_space<vmem>>, %arg6: memref<1x64xf32, #tpu.memory_space<vmem>>, %arg7: memref<32x32xf32, #tpu.memory_space<vmem>>, %arg8: memref<1x32xf32, #tpu.memory_space<vmem>>, %arg9: memref<1x32xf32, #tpu.memory_space<vmem>>, %arg10: memref<1x32xf32, #tpu.memory_space<vmem>>, %arg11: memref<1x8x32xf32, #tpu.memory_space<vmem>>) attributes {dimension_semantics = [#tpu.dimension_semantics<parallel>], iteration_bounds = array<i64: 2>, scalar_prefetch = 0 : i64, scratch_operands = 0 : i64, tpu.core_type = #tpu.core_type<tc>, window_params = [{transform_indices = @transform_0, window_bounds = array<i64: 1, 8, 32>}, {transform_indices = @transform_1, window_bounds = array<i64: 1, 8, 32>}, {pipeline_mode = #tpu.pipeline_mode<synchronous>, transform_indices = @transform_2, window_bounds = array<i64: 32, 32>}, {pipeline_mode = #tpu.pipeline_mode<synchronous>, transform_indices = @transform_3, window_bounds = array<i64: 1, 32>}, {pipeline_mode = #tpu.pipeline_mode<synchronous>, transform_indices = @transform_4, window_bounds = array<i64: 32, 64>}, {pipeline_mode = #tpu.pipeline_mode<synchronous>, transform_indices = @transform_5, window_bounds = array<i64: 1, 64>}, {pipeline_mode = #tpu.pipeline_mode<synchronous>, transform_indices = @transform_6, window_bounds = array<i64: 32, 32>}, {pipeline_mode = #tpu.pipeline_mode<synchronous>, transform_indices = @transform_7, window_bounds = array<i64: 1, 32>}, {pipeline_mode = #tpu.pipeline_mode<synchronous>, transform_indices = @transform_8, window_bounds = array<i64: 1, 32>}, {pipeline_mode = #tpu.pipeline_mode<synchronous>, transform_indices = @transform_9, window_bounds = array<i64: 1, 32>}, {transform_indices = @transform_10, window_bounds = array<i64: 1, 8, 32>}]} {
    %c0 = arith.constant 0 : index
    %c0_0 = arith.constant 0 : index
    %c0_1 = arith.constant 0 : index
    %0 = vector.load %arg1[%c0, %c0_0, %c0_1] : memref<1x8x32xf32, #tpu.memory_space<vmem>>, vector<1x8x32xf32>
    %1 = vector.shape_cast %0 : vector<1x8x32xf32> to vector<8x32xf32>
    %c0_2 = arith.constant 0 : index
    %c0_3 = arith.constant 0 : index
    %c0_4 = arith.constant 0 : index
    %2 = vector.load %arg2[%c0_2, %c0_3, %c0_4] : memref<1x8x32xf32, #tpu.memory_space<vmem>>, vector<1x8x32xf32>
    %3 = vector.shape_cast %2 : vector<1x8x32xf32> to vector<8x32xf32>
    %c0_5 = arith.constant 0 : index
    %c0_6 = arith.constant 0 : index
    %4 = vector.load %arg3[%c0_5, %c0_6] : memref<32x32xf32, #tpu.memory_space<vmem>>, vector<32x32xf32>
    %cst = arith.constant dense<0.000000e+00> : vector<8x32xf32>
    %5 = tpu.matmul %1, %4, %cst {dimension_numbers = #tpu.dot_dimension_numbers<[1], [0], [0], [1], [0, 0, 1, 1], [], []>} : vector<8x32xf32>, vector<32x32xf32>, vector<8x32xf32> -> vector<8x32xf32>
    %c0_7 = arith.constant 0 : index
    %c0_8 = arith.constant 0 : index
    %6 = vector.load %arg4[%c0_7, %c0_8] : memref<1x32xf32, #tpu.memory_space<vmem>>, vector<1x32xf32>
    %7 = vector.broadcast %6 : vector<1x32xf32> to vector<8x32xf32>
    %8 = arith.addf %5, %7 : vector<8x32xf32>
    %c0_9 = arith.constant 0 : index
    %c0_10 = arith.constant 0 : index
    %9 = vector.load %arg5[%c0_9, %c0_10] : memref<32x64xf32, #tpu.memory_space<vmem>>, vector<32x64xf32>
    %cst_11 = arith.constant dense<0.000000e+00> : vector<8x64xf32>
    %10 = tpu.matmul %3, %9, %cst_11 {dimension_numbers = #tpu.dot_dimension_numbers<[1], [0], [0], [1], [0, 0, 1, 1], [], []>} : vector<8x32xf32>, vector<32x64xf32>, vector<8x64xf32> -> vector<8x64xf32>
    %c0_12 = arith.constant 0 : index
    %c0_13 = arith.constant 0 : index
    %11 = vector.load %arg6[%c0_12, %c0_13] : memref<1x64xf32, #tpu.memory_space<vmem>>, vector<1x64xf32>
    %12 = vector.broadcast %11 : vector<1x64xf32> to vector<8x64xf32>
    %13 = arith.addf %10, %12 : vector<8x64xf32>
    %14 = vector.extract_strided_slice %13 {offsets = [0, 0], sizes = [8, 32], strides = [1, 1]} : vector<8x64xf32> to vector<8x32xf32>
    %15 = vector.extract_strided_slice %13 {offsets = [0, 32], sizes = [8, 32], strides = [1, 1]} : vector<8x64xf32> to vector<8x32xf32>
    %c0_14 = arith.constant 0 : index
    %c0_15 = arith.constant 0 : index
    %16 = vector.load %arg7[%c0_14, %c0_15] : memref<32x32xf32, #tpu.memory_space<vmem>>, vector<32x32xf32>
    %17 = tpu.iota {dimensions = array<i32: 0>} : vector<8x8xi32>
    %18 = tpu.iota {dimensions = array<i32: 1>} : vector<8x8xi32>
    %19 = arith.cmpi sgt, %18, %17 : vector<8x8xi32>
    %cst_16 = arith.constant 0.000000e+00 : f32
    %20 = vector.broadcast %cst_16 : f32 to vector<8x32xf32>
    %21 = vector.extract_strided_slice %8 {offsets = [0, 0], sizes = [8, 8], strides = [1, 1]} : vector<8x32xf32> to vector<8x8xf32>
    %22 = vector.extract_strided_slice %14 {offsets = [0, 0], sizes = [8, 8], strides = [1, 1]} : vector<8x32xf32> to vector<8x8xf32>
    %23 = vector.extract_strided_slice %15 {offsets = [0, 0], sizes = [8, 8], strides = [1, 1]} : vector<8x32xf32> to vector<8x8xf32>
    %cst_17 = arith.constant dense<0.000000e+00> : vector<8x8xf32>
    %24 = tpu.matmul %21, %22, %cst_17 {dimension_numbers = #tpu.dot_dimension_numbers<[1], [1], [0], [0], [0, 0, 1, 0], [], []>} : vector<8x8xf32>, vector<8x8xf32>, vector<8x8xf32> -> vector<8x8xf32>
    %cst_18 = arith.constant 0.353553385 : f32
    %25 = vector.broadcast %cst_18 : f32 to vector<8x8xf32>
    %26 = arith.mulf %24, %25 : vector<8x8xf32>
    %cst_19 = arith.constant -1.000000e+30 : f32
    %27 = vector.broadcast %cst_19 : f32 to vector<8x8xf32>
    %28 = arith.select %19, %27, %26 : vector<8x8xi1>, vector<8x8xf32>
    %cst_20 = arith.constant dense<0xFF800000> : vector<8xf32>
    %29 = vector.multi_reduction <maximumf>, %28, %cst_20 [1] : vector<8x8xf32> to vector<8xf32>
    %30 = vector.shape_cast %29 : vector<8xf32> to vector<8x1xf32>
    %31 = vector.broadcast %30 : vector<8x1xf32> to vector<8x8xf32>
    %32 = arith.subf %28, %31 : vector<8x8xf32>
    %33 = math.exp %32 : vector<8x8xf32>
    %cst_21 = arith.constant dense<0.000000e+00> : vector<8xf32>
    %34 = vector.multi_reduction <add>, %33, %cst_21 [1] : vector<8x8xf32> to vector<8xf32>
    %35 = vector.shape_cast %34 : vector<8xf32> to vector<8x1xf32>
    %36 = tpu.reciprocal %35 {approx = true} : vector<8x1xf32> -> vector<8x1xf32>
    %37 = vector.broadcast %36 : vector<8x1xf32> to vector<8x8xf32>
    %38 = arith.mulf %33, %37 : vector<8x8xf32>
    %cst_22 = arith.constant dense<0.000000e+00> : vector<8x8xf32>
    %39 = tpu.matmul %38, %23, %cst_22 {dimension_numbers = #tpu.dot_dimension_numbers<[1], [0], [0], [1], [0, 0, 1, 1], [], []>} : vector<8x8xf32>, vector<8x8xf32>, vector<8x8xf32> -> vector<8x8xf32>
    %40 = vector.extract_strided_slice %16 {offsets = [0, 0], sizes = [8, 32], strides = [1, 1]} : vector<32x32xf32> to vector<8x32xf32>
    %cst_23 = arith.constant dense<0.000000e+00> : vector<8x32xf32>
    %41 = tpu.matmul %39, %40, %cst_23 {dimension_numbers = #tpu.dot_dimension_numbers<[1], [0], [0], [1], [0, 0, 1, 1], [], []>} : vector<8x8xf32>, vector<8x32xf32>, vector<8x32xf32> -> vector<8x32xf32>
    %42 = arith.addf %20, %41 : vector<8x32xf32>
    %43 = vector.extract_strided_slice %8 {offsets = [0, 8], sizes = [8, 8], strides = [1, 1]} : vector<8x32xf32> to vector<8x8xf32>
    %44 = vector.extract_strided_slice %14 {offsets = [0, 8], sizes = [8, 8], strides = [1, 1]} : vector<8x32xf32> to vector<8x8xf32>
    %45 = vector.extract_strided_slice %15 {offsets = [0, 8], sizes = [8, 8], strides = [1, 1]} : vector<8x32xf32> to vector<8x8xf32>
    %cst_24 = arith.constant dense<0.000000e+00> : vector<8x8xf32>
    %46 = tpu.matmul %43, %44, %cst_24 {dimension_numbers = #tpu.dot_dimension_numbers<[1], [1], [0], [0], [0, 0, 1, 0], [], []>} : vector<8x8xf32>, vector<8x8xf32>, vector<8x8xf32> -> vector<8x8xf32>
    %cst_25 = arith.constant 0.353553385 : f32
    %47 = vector.broadcast %cst_25 : f32 to vector<8x8xf32>
    %48 = arith.mulf %46, %47 : vector<8x8xf32>
    %cst_26 = arith.constant -1.000000e+30 : f32
    %49 = vector.broadcast %cst_26 : f32 to vector<8x8xf32>
    %50 = arith.select %19, %49, %48 : vector<8x8xi1>, vector<8x8xf32>
    %cst_27 = arith.constant dense<0xFF800000> : vector<8xf32>
    %51 = vector.multi_reduction <maximumf>, %50, %cst_27 [1] : vector<8x8xf32> to vector<8xf32>
    %52 = vector.shape_cast %51 : vector<8xf32> to vector<8x1xf32>
    %53 = vector.broadcast %52 : vector<8x1xf32> to vector<8x8xf32>
    %54 = arith.subf %50, %53 : vector<8x8xf32>
    %55 = math.exp %54 : vector<8x8xf32>
    %cst_28 = arith.constant dense<0.000000e+00> : vector<8xf32>
    %56 = vector.multi_reduction <add>, %55, %cst_28 [1] : vector<8x8xf32> to vector<8xf32>
    %57 = vector.shape_cast %56 : vector<8xf32> to vector<8x1xf32>
    %58 = tpu.reciprocal %57 {approx = true} : vector<8x1xf32> -> vector<8x1xf32>
    %59 = vector.broadcast %58 : vector<8x1xf32> to vector<8x8xf32>
    %60 = arith.mulf %55, %59 : vector<8x8xf32>
    %cst_29 = arith.constant dense<0.000000e+00> : vector<8x8xf32>
    %61 = tpu.matmul %60, %45, %cst_29 {dimension_numbers = #tpu.dot_dimension_numbers<[1], [0], [0], [1], [0, 0, 1, 1], [], []>} : vector<8x8xf32>, vector<8x8xf32>, vector<8x8xf32> -> vector<8x8xf32>
    %62 = vector.extract_strided_slice %16 {offsets = [8, 0], sizes = [8, 32], strides = [1, 1]} : vector<32x32xf32> to vector<8x32xf32>
    %cst_30 = arith.constant dense<0.000000e+00> : vector<8x32xf32>
    %63 = tpu.matmul %61, %62, %cst_30 {dimension_numbers = #tpu.dot_dimension_numbers<[1], [0], [0], [1], [0, 0, 1, 1], [], []>} : vector<8x8xf32>, vector<8x32xf32>, vector<8x32xf32> -> vector<8x32xf32>
    %64 = arith.addf %42, %63 : vector<8x32xf32>
    %65 = vector.extract_strided_slice %8 {offsets = [0, 16], sizes = [8, 8], strides = [1, 1]} : vector<8x32xf32> to vector<8x8xf32>
    %66 = vector.extract_strided_slice %14 {offsets = [0, 16], sizes = [8, 8], strides = [1, 1]} : vector<8x32xf32> to vector<8x8xf32>
    %67 = vector.extract_strided_slice %15 {offsets = [0, 16], sizes = [8, 8], strides = [1, 1]} : vector<8x32xf32> to vector<8x8xf32>
    %cst_31 = arith.constant dense<0.000000e+00> : vector<8x8xf32>
    %68 = tpu.matmul %65, %66, %cst_31 {dimension_numbers = #tpu.dot_dimension_numbers<[1], [1], [0], [0], [0, 0, 1, 0], [], []>} : vector<8x8xf32>, vector<8x8xf32>, vector<8x8xf32> -> vector<8x8xf32>
    %cst_32 = arith.constant 0.353553385 : f32
    %69 = vector.broadcast %cst_32 : f32 to vector<8x8xf32>
    %70 = arith.mulf %68, %69 : vector<8x8xf32>
    %cst_33 = arith.constant -1.000000e+30 : f32
    %71 = vector.broadcast %cst_33 : f32 to vector<8x8xf32>
    %72 = arith.select %19, %71, %70 : vector<8x8xi1>, vector<8x8xf32>
    %cst_34 = arith.constant dense<0xFF800000> : vector<8xf32>
    %73 = vector.multi_reduction <maximumf>, %72, %cst_34 [1] : vector<8x8xf32> to vector<8xf32>
    %74 = vector.shape_cast %73 : vector<8xf32> to vector<8x1xf32>
    %75 = vector.broadcast %74 : vector<8x1xf32> to vector<8x8xf32>
    %76 = arith.subf %72, %75 : vector<8x8xf32>
    %77 = math.exp %76 : vector<8x8xf32>
    %cst_35 = arith.constant dense<0.000000e+00> : vector<8xf32>
    %78 = vector.multi_reduction <add>, %77, %cst_35 [1] : vector<8x8xf32> to vector<8xf32>
    %79 = vector.shape_cast %78 : vector<8xf32> to vector<8x1xf32>
    %80 = tpu.reciprocal %79 {approx = true} : vector<8x1xf32> -> vector<8x1xf32>
    %81 = vector.broadcast %80 : vector<8x1xf32> to vector<8x8xf32>
    %82 = arith.mulf %77, %81 : vector<8x8xf32>
    %cst_36 = arith.constant dense<0.000000e+00> : vector<8x8xf32>
    %83 = tpu.matmul %82, %67, %cst_36 {dimension_numbers = #tpu.dot_dimension_numbers<[1], [0], [0], [1], [0, 0, 1, 1], [], []>} : vector<8x8xf32>, vector<8x8xf32>, vector<8x8xf32> -> vector<8x8xf32>
    %84 = vector.extract_strided_slice %16 {offsets = [16, 0], sizes = [8, 32], strides = [1, 1]} : vector<32x32xf32> to vector<8x32xf32>
    %cst_37 = arith.constant dense<0.000000e+00> : vector<8x32xf32>
    %85 = tpu.matmul %83, %84, %cst_37 {dimension_numbers = #tpu.dot_dimension_numbers<[1], [0], [0], [1], [0, 0, 1, 1], [], []>} : vector<8x8xf32>, vector<8x32xf32>, vector<8x32xf32> -> vector<8x32xf32>
    %86 = arith.addf %64, %85 : vector<8x32xf32>
    %87 = vector.extract_strided_slice %8 {offsets = [0, 24], sizes = [8, 8], strides = [1, 1]} : vector<8x32xf32> to vector<8x8xf32>
    %88 = vector.extract_strided_slice %14 {offsets = [0, 24], sizes = [8, 8], strides = [1, 1]} : vector<8x32xf32> to vector<8x8xf32>
    %89 = vector.extract_strided_slice %15 {offsets = [0, 24], sizes = [8, 8], strides = [1, 1]} : vector<8x32xf32> to vector<8x8xf32>
    %cst_38 = arith.constant dense<0.000000e+00> : vector<8x8xf32>
    %90 = tpu.matmul %87, %88, %cst_38 {dimension_numbers = #tpu.dot_dimension_numbers<[1], [1], [0], [0], [0, 0, 1, 0], [], []>} : vector<8x8xf32>, vector<8x8xf32>, vector<8x8xf32> -> vector<8x8xf32>
    %cst_39 = arith.constant 0.353553385 : f32
    %91 = vector.broadcast %cst_39 : f32 to vector<8x8xf32>
    %92 = arith.mulf %90, %91 : vector<8x8xf32>
    %cst_40 = arith.constant -1.000000e+30 : f32
    %93 = vector.broadcast %cst_40 : f32 to vector<8x8xf32>
    %94 = arith.select %19, %93, %92 : vector<8x8xi1>, vector<8x8xf32>
    %cst_41 = arith.constant dense<0xFF800000> : vector<8xf32>
    %95 = vector.multi_reduction <maximumf>, %94, %cst_41 [1] : vector<8x8xf32> to vector<8xf32>
    %96 = vector.shape_cast %95 : vector<8xf32> to vector<8x1xf32>
    %97 = vector.broadcast %96 : vector<8x1xf32> to vector<8x8xf32>
    %98 = arith.subf %94, %97 : vector<8x8xf32>
    %99 = math.exp %98 : vector<8x8xf32>
    %cst_42 = arith.constant dense<0.000000e+00> : vector<8xf32>
    %100 = vector.multi_reduction <add>, %99, %cst_42 [1] : vector<8x8xf32> to vector<8xf32>
    %101 = vector.shape_cast %100 : vector<8xf32> to vector<8x1xf32>
    %102 = tpu.reciprocal %101 {approx = true} : vector<8x1xf32> -> vector<8x1xf32>
    %103 = vector.broadcast %102 : vector<8x1xf32> to vector<8x8xf32>
    %104 = arith.mulf %99, %103 : vector<8x8xf32>
    %cst_43 = arith.constant dense<0.000000e+00> : vector<8x8xf32>
    %105 = tpu.matmul %104, %89, %cst_43 {dimension_numbers = #tpu.dot_dimension_numbers<[1], [0], [0], [1], [0, 0, 1, 1], [], []>} : vector<8x8xf32>, vector<8x8xf32>, vector<8x8xf32> -> vector<8x8xf32>
    %106 = vector.extract_strided_slice %16 {offsets = [24, 0], sizes = [8, 32], strides = [1, 1]} : vector<32x32xf32> to vector<8x32xf32>
    %cst_44 = arith.constant dense<0.000000e+00> : vector<8x32xf32>
    %107 = tpu.matmul %105, %106, %cst_44 {dimension_numbers = #tpu.dot_dimension_numbers<[1], [0], [0], [1], [0, 0, 1, 1], [], []>} : vector<8x8xf32>, vector<8x32xf32>, vector<8x32xf32> -> vector<8x32xf32>
    %108 = arith.addf %86, %107 : vector<8x32xf32>
    %109 = arith.addf %1, %108 : vector<8x32xf32>
    %c0_45 = arith.constant 0 : index
    %c0_46 = arith.constant 0 : index
    %110 = vector.load %arg8[%c0_45, %c0_46] : memref<1x32xf32, #tpu.memory_space<vmem>>, vector<1x32xf32>
    %111 = vector.broadcast %110 : vector<1x32xf32> to vector<8x32xf32>
    %112 = arith.addf %109, %111 : vector<8x32xf32>
    %cst_47 = arith.constant dense<0.000000e+00> : vector<8xf32>
    %113 = vector.multi_reduction <add>, %112, %cst_47 [1] : vector<8x32xf32> to vector<8xf32>
    %114 = vector.shape_cast %113 : vector<8xf32> to vector<8x1xf32>
    %cst_48 = arith.constant 3.200000e+01 : f32
    %115 = vector.broadcast %cst_48 : f32 to vector<8x1xf32>
    %116 = arith.divf %114, %115 : vector<8x1xf32>
    %117 = vector.broadcast %116 : vector<8x1xf32> to vector<8x32xf32>
    %118 = arith.subf %112, %117 : vector<8x32xf32>
    %119 = arith.mulf %118, %118 : vector<8x32xf32>
    %cst_49 = arith.constant dense<0.000000e+00> : vector<8xf32>
    %120 = vector.multi_reduction <add>, %119, %cst_49 [1] : vector<8x32xf32> to vector<8xf32>
    %121 = vector.shape_cast %120 : vector<8xf32> to vector<8x1xf32>
    %cst_50 = arith.constant 3.200000e+01 : f32
    %122 = vector.broadcast %cst_50 : f32 to vector<8x1xf32>
    %123 = arith.divf %121, %122 : vector<8x1xf32>
    %124 = vector.broadcast %116 : vector<8x1xf32> to vector<8x32xf32>
    %125 = arith.subf %112, %124 : vector<8x32xf32>
    %cst_51 = arith.constant 9.99999974E-6 : f32
    %126 = vector.broadcast %cst_51 : f32 to vector<8x1xf32>
    %127 = arith.addf %123, %126 : vector<8x1xf32>
    %128 = math.rsqrt %127 : vector<8x1xf32>
    %129 = vector.broadcast %128 : vector<8x1xf32> to vector<8x32xf32>
    %130 = arith.mulf %125, %129 : vector<8x32xf32>
    %c0_52 = arith.constant 0 : index
    %c0_53 = arith.constant 0 : index
    %131 = vector.load %arg9[%c0_52, %c0_53] : memref<1x32xf32, #tpu.memory_space<vmem>>, vector<1x32xf32>
    %132 = vector.broadcast %131 : vector<1x32xf32> to vector<8x32xf32>
    %133 = arith.mulf %130, %132 : vector<8x32xf32>
    %c0_54 = arith.constant 0 : index
    %c0_55 = arith.constant 0 : index
    %134 = vector.load %arg10[%c0_54, %c0_55] : memref<1x32xf32, #tpu.memory_space<vmem>>, vector<1x32xf32>
    %135 = vector.broadcast %134 : vector<1x32xf32> to vector<8x32xf32>
    %136 = arith.addf %133, %135 : vector<8x32xf32>
    %c0_56 = arith.constant 0 : index
    %c0_57 = arith.constant 0 : index
    %c0_58 = arith.constant 0 : index
    %137 = vector.load %arg11[%c0_56, %c0_57, %c0_58] : memref<1x8x32xf32, #tpu.memory_space<vmem>>, vector<1x8x32xf32>
    %138 = vector.shape_cast %137 : vector<1x8x32xf32> to vector<8x32xf32>
    %139 = vector.shape_cast %136 : vector<8x32xf32> to vector<1x8x32xf32>
    tpu.vector_store %arg11[%c0_56, %c0_57, %c0_58], %139 {strides = array<i32>} : memref<1x8x32xf32, #tpu.memory_space<vmem>>, vector<1x8x32xf32>,
    return
  }
  func.func @transform_0(%arg0: i32) -> (i32, i32, i32) {
    %c0_i32 = arith.constant 0 : i32
    %c0_i32_0 = arith.constant 0 : i32
    %c0_i32_1 = arith.constant 0 : i32
    return %arg0, %c0_i32, %c0_i32_0 : i32, i32, i32
  }
  func.func @transform_1(%arg0: i32) -> (i32, i32, i32) {
    %c0_i32 = arith.constant 0 : i32
    %c0_i32_0 = arith.constant 0 : i32
    %c0_i32_1 = arith.constant 0 : i32
    return %arg0, %c0_i32, %c0_i32_0 : i32, i32, i32
  }
  func.func @transform_2(%arg0: i32) -> (i32, i32) {
    %c0_i32 = arith.constant 0 : i32
    %c0_i32_0 = arith.constant 0 : i32
    %c0_i32_1 = arith.constant 0 : i32
    return %c0_i32, %c0_i32_0 : i32, i32
  }
  func.func @transform_3(%arg0: i32) -> (i32, i32) {
    %c0_i32 = arith.constant 0 : i32
    %c0_i32_0 = arith.constant 0 : i32
    %c0_i32_1 = arith.constant 0 : i32
    return %c0_i32, %c0_i32_0 : i32, i32
  }
  func.func @transform_4(%arg0: i32) -> (i32, i32) {
    %c0_i32 = arith.constant 0 : i32
    %c0_i32_0 = arith.constant 0 : i32
    %c0_i32_1 = arith.constant 0 : i32
    return %c0_i32, %c0_i32_0 : i32, i32
  }
  func.func @transform_5(%arg0: i32) -> (i32, i32) {
    %c0_i32 = arith.constant 0 : i32
    %c0_i32_0 = arith.constant 0 : i32
    %c0_i32_1 = arith.constant 0 : i32
    return %c0_i32, %c0_i32_0 : i32, i32
  }
  func.func @transform_6(%arg0: i32) -> (i32, i32) {
    %c0_i32 = arith.constant 0 : i32
    %c0_i32_0 = arith.constant 0 : i32
    %c0_i32_1 = arith.constant 0 : i32
    return %c0_i32, %c0_i32_0 : i32, i32
  }
  func.func @transform_7(%arg0: i32) -> (i32, i32) {
    %c0_i32 = arith.constant 0 : i32
    %c0_i32_0 = arith.constant 0 : i32
    %c0_i32_1 = arith.constant 0 : i32
    return %c0_i32, %c0_i32_0 : i32, i32
  }
  func.func @transform_8(%arg0: i32) -> (i32, i32) {
    %c0_i32 = arith.constant 0 : i32
    %c0_i32_0 = arith.constant 0 : i32
    %c0_i32_1 = arith.constant 0 : i32
    return %c0_i32, %c0_i32_0 : i32, i32
  }
  func.func @transform_9(%arg0: i32) -> (i32, i32) {
    %c0_i32 = arith.constant 0 : i32
    %c0_i32_0 = arith.constant 0 : i32
    %c0_i32_1 = arith.constant 0 : i32
    return %c0_i32, %c0_i32_0 : i32, i32
  }
  func.func @transform_10(%arg0: i32) -> (i32, i32, i32) {
    %c0_i32 = arith.constant 0 : i32
    %c0_i32_0 = arith.constant 0 : i32
    %c0_i32_1 = arith.constant 0 : i32
    return %arg0, %c0_i32, %c0_i32_0 : i32, i32, i32
  }
}

module attributes {stable_mosaic.version = 11 : i64} {
  func.func @_mha_sublayer_kernel(%arg0: i32, %arg1: memref<1x8x32xf32, #tpu.memory_space<vmem>>, %arg2: memref<1x9x32xf32, #tpu.memory_space<vmem>>, %arg3: memref<32x32xf32, #tpu.memory_space<vmem>>, %arg4: memref<1x32xf32, #tpu.memory_space<vmem>>, %arg5: memref<32x64xf32, #tpu.memory_space<vmem>>, %arg6: memref<1x64xf32, #tpu.memory_space<vmem>>, %arg7: memref<32x32xf32, #tpu.memory_space<vmem>>, %arg8: memref<1x32xf32, #tpu.memory_space<vmem>>, %arg9: memref<1x32xf32, #tpu.memory_space<vmem>>, %arg10: memref<1x32xf32, #tpu.memory_space<vmem>>, %arg11: memref<1x8x32xf32, #tpu.memory_space<vmem>>) attributes {dimension_semantics = [#tpu.dimension_semantics<parallel>], iteration_bounds = array<i64: 2>, scalar_prefetch = 0 : i64, scratch_operands = 0 : i64, tpu.core_type = #tpu.core_type<tc>, window_params = [{transform_indices = @transform_0, window_bounds = array<i64: 1, 8, 32>}, {transform_indices = @transform_1, window_bounds = array<i64: 1, 9, 32>}, {pipeline_mode = #tpu.pipeline_mode<synchronous>, transform_indices = @transform_2, window_bounds = array<i64: 32, 32>}, {pipeline_mode = #tpu.pipeline_mode<synchronous>, transform_indices = @transform_3, window_bounds = array<i64: 1, 32>}, {pipeline_mode = #tpu.pipeline_mode<synchronous>, transform_indices = @transform_4, window_bounds = array<i64: 32, 64>}, {pipeline_mode = #tpu.pipeline_mode<synchronous>, transform_indices = @transform_5, window_bounds = array<i64: 1, 64>}, {pipeline_mode = #tpu.pipeline_mode<synchronous>, transform_indices = @transform_6, window_bounds = array<i64: 32, 32>}, {pipeline_mode = #tpu.pipeline_mode<synchronous>, transform_indices = @transform_7, window_bounds = array<i64: 1, 32>}, {pipeline_mode = #tpu.pipeline_mode<synchronous>, transform_indices = @transform_8, window_bounds = array<i64: 1, 32>}, {pipeline_mode = #tpu.pipeline_mode<synchronous>, transform_indices = @transform_9, window_bounds = array<i64: 1, 32>}, {transform_indices = @transform_10, window_bounds = array<i64: 1, 8, 32>}]} {
    %c0 = arith.constant 0 : index
    %c0_0 = arith.constant 0 : index
    %c0_1 = arith.constant 0 : index
    %0 = vector.load %arg1[%c0, %c0_0, %c0_1] : memref<1x8x32xf32, #tpu.memory_space<vmem>>, vector<1x8x32xf32>
    %1 = vector.shape_cast %0 : vector<1x8x32xf32> to vector<8x32xf32>
    %c0_2 = arith.constant 0 : index
    %c0_3 = arith.constant 0 : index
    %c0_4 = arith.constant 0 : index
    %2 = vector.load %arg2[%c0_2, %c0_3, %c0_4] : memref<1x9x32xf32, #tpu.memory_space<vmem>>, vector<1x9x32xf32>
    %3 = vector.shape_cast %2 : vector<1x9x32xf32> to vector<9x32xf32>
    %c0_5 = arith.constant 0 : index
    %c0_6 = arith.constant 0 : index
    %4 = vector.load %arg3[%c0_5, %c0_6] : memref<32x32xf32, #tpu.memory_space<vmem>>, vector<32x32xf32>
    %cst = arith.constant dense<0.000000e+00> : vector<8x32xf32>
    %5 = tpu.matmul %1, %4, %cst {dimension_numbers = #tpu.dot_dimension_numbers<[1], [0], [0], [1], [0, 0, 1, 1], [], []>} : vector<8x32xf32>, vector<32x32xf32>, vector<8x32xf32> -> vector<8x32xf32>
    %c0_7 = arith.constant 0 : index
    %c0_8 = arith.constant 0 : index
    %6 = vector.load %arg4[%c0_7, %c0_8] : memref<1x32xf32, #tpu.memory_space<vmem>>, vector<1x32xf32>
    %7 = vector.broadcast %6 : vector<1x32xf32> to vector<8x32xf32>
    %8 = arith.addf %5, %7 : vector<8x32xf32>
    %c0_9 = arith.constant 0 : index
    %c0_10 = arith.constant 0 : index
    %9 = vector.load %arg5[%c0_9, %c0_10] : memref<32x64xf32, #tpu.memory_space<vmem>>, vector<32x64xf32>
    %cst_11 = arith.constant dense<0.000000e+00> : vector<9x64xf32>
    %10 = tpu.matmul %3, %9, %cst_11 {dimension_numbers = #tpu.dot_dimension_numbers<[1], [0], [0], [1], [0, 0, 1, 1], [], []>} : vector<9x32xf32>, vector<32x64xf32>, vector<9x64xf32> -> vector<9x64xf32>
    %c0_12 = arith.constant 0 : index
    %c0_13 = arith.constant 0 : index
    %11 = vector.load %arg6[%c0_12, %c0_13] : memref<1x64xf32, #tpu.memory_space<vmem>>, vector<1x64xf32>
    %12 = vector.broadcast %11 : vector<1x64xf32> to vector<9x64xf32>
    %13 = arith.addf %10, %12 : vector<9x64xf32>
    %14 = vector.extract_strided_slice %13 {offsets = [0, 0], sizes = [9, 32], strides = [1, 1]} : vector<9x64xf32> to vector<9x32xf32>
    %15 = vector.extract_strided_slice %13 {offsets = [0, 32], sizes = [9, 32], strides = [1, 1]} : vector<9x64xf32> to vector<9x32xf32>
    %c0_14 = arith.constant 0 : index
    %c0_15 = arith.constant 0 : index
    %16 = vector.load %arg7[%c0_14, %c0_15] : memref<32x32xf32, #tpu.memory_space<vmem>>, vector<32x32xf32>
    %cst_16 = arith.constant 0.000000e+00 : f32
    %17 = vector.broadcast %cst_16 : f32 to vector<8x32xf32>
    %18 = vector.extract_strided_slice %8 {offsets = [0, 0], sizes = [8, 8], strides = [1, 1]} : vector<8x32xf32> to vector<8x8xf32>
    %19 = vector.extract_strided_slice %14 {offsets = [0, 0], sizes = [9, 8], strides = [1, 1]} : vector<9x32xf32> to vector<9x8xf32>
    %20 = vector.extract_strided_slice %15 {offsets = [0, 0], sizes = [9, 8], strides = [1, 1]} : vector<9x32xf32> to vector<9x8xf32>
    %cst_17 = arith.constant dense<0.000000e+00> : vector<8x9xf32>
    %21 = tpu.matmul %18, %19, %cst_17 {dimension_numbers = #tpu.dot_dimension_numbers<[1], [1], [0], [0], [0, 0, 1, 0], [], []>} : vector<8x8xf32>, vector<9x8xf32>, vector<8x9xf32> -> vector<8x9xf32>
    %cst_18 = arith.constant 0.353553385 : f32
    %22 = vector.broadcast %cst_18 : f32 to vector<8x9xf32>
    %23 = arith.mulf %21, %22 : vector<8x9xf32>
    %cst_19 = arith.constant dense<0xFF800000> : vector<8xf32>
    %24 = vector.multi_reduction <maximumf>, %23, %cst_19 [1] : vector<8x9xf32> to vector<8xf32>
    %25 = vector.shape_cast %24 : vector<8xf32> to vector<8x1xf32>
    %26 = vector.broadcast %25 : vector<8x1xf32> to vector<8x9xf32>
    %27 = arith.subf %23, %26 : vector<8x9xf32>
    %28 = math.exp %27 : vector<8x9xf32>
    %cst_20 = arith.constant dense<0.000000e+00> : vector<8xf32>
    %29 = vector.multi_reduction <add>, %28, %cst_20 [1] : vector<8x9xf32> to vector<8xf32>
    %30 = vector.shape_cast %29 : vector<8xf32> to vector<8x1xf32>
    %31 = tpu.reciprocal %30 {approx = true} : vector<8x1xf32> -> vector<8x1xf32>
    %32 = vector.broadcast %31 : vector<8x1xf32> to vector<8x9xf32>
    %33 = arith.mulf %28, %32 : vector<8x9xf32>
    %cst_21 = arith.constant dense<0.000000e+00> : vector<8x8xf32>
    %34 = tpu.matmul %33, %20, %cst_21 {dimension_numbers = #tpu.dot_dimension_numbers<[1], [0], [0], [1], [0, 0, 1, 1], [], []>} : vector<8x9xf32>, vector<9x8xf32>, vector<8x8xf32> -> vector<8x8xf32>
    %35 = vector.extract_strided_slice %16 {offsets = [0, 0], sizes = [8, 32], strides = [1, 1]} : vector<32x32xf32> to vector<8x32xf32>
    %cst_22 = arith.constant dense<0.000000e+00> : vector<8x32xf32>
    %36 = tpu.matmul %34, %35, %cst_22 {dimension_numbers = #tpu.dot_dimension_numbers<[1], [0], [0], [1], [0, 0, 1, 1], [], []>} : vector<8x8xf32>, vector<8x32xf32>, vector<8x32xf32> -> vector<8x32xf32>
    %37 = arith.addf %17, %36 : vector<8x32xf32>
    %38 = vector.extract_strided_slice %8 {offsets = [0, 8], sizes = [8, 8], strides = [1, 1]} : vector<8x32xf32> to vector<8x8xf32>
    %39 = vector.extract_strided_slice %14 {offsets = [0, 8], sizes = [9, 8], strides = [1, 1]} : vector<9x32xf32> to vector<9x8xf32>
    %40 = vector.extract_strided_slice %15 {offsets = [0, 8], sizes = [9, 8], strides = [1, 1]} : vector<9x32xf32> to vector<9x8xf32>
    %cst_23 = arith.constant dense<0.000000e+00> : vector<8x9xf32>
    %41 = tpu.matmul %38, %39, %cst_23 {dimension_numbers = #tpu.dot_dimension_numbers<[1], [1], [0], [0], [0, 0, 1, 0], [], []>} : vector<8x8xf32>, vector<9x8xf32>, vector<8x9xf32> -> vector<8x9xf32>
    %cst_24 = arith.constant 0.353553385 : f32
    %42 = vector.broadcast %cst_24 : f32 to vector<8x9xf32>
    %43 = arith.mulf %41, %42 : vector<8x9xf32>
    %cst_25 = arith.constant dense<0xFF800000> : vector<8xf32>
    %44 = vector.multi_reduction <maximumf>, %43, %cst_25 [1] : vector<8x9xf32> to vector<8xf32>
    %45 = vector.shape_cast %44 : vector<8xf32> to vector<8x1xf32>
    %46 = vector.broadcast %45 : vector<8x1xf32> to vector<8x9xf32>
    %47 = arith.subf %43, %46 : vector<8x9xf32>
    %48 = math.exp %47 : vector<8x9xf32>
    %cst_26 = arith.constant dense<0.000000e+00> : vector<8xf32>
    %49 = vector.multi_reduction <add>, %48, %cst_26 [1] : vector<8x9xf32> to vector<8xf32>
    %50 = vector.shape_cast %49 : vector<8xf32> to vector<8x1xf32>
    %51 = tpu.reciprocal %50 {approx = true} : vector<8x1xf32> -> vector<8x1xf32>
    %52 = vector.broadcast %51 : vector<8x1xf32> to vector<8x9xf32>
    %53 = arith.mulf %48, %52 : vector<8x9xf32>
    %cst_27 = arith.constant dense<0.000000e+00> : vector<8x8xf32>
    %54 = tpu.matmul %53, %40, %cst_27 {dimension_numbers = #tpu.dot_dimension_numbers<[1], [0], [0], [1], [0, 0, 1, 1], [], []>} : vector<8x9xf32>, vector<9x8xf32>, vector<8x8xf32> -> vector<8x8xf32>
    %55 = vector.extract_strided_slice %16 {offsets = [8, 0], sizes = [8, 32], strides = [1, 1]} : vector<32x32xf32> to vector<8x32xf32>
    %cst_28 = arith.constant dense<0.000000e+00> : vector<8x32xf32>
    %56 = tpu.matmul %54, %55, %cst_28 {dimension_numbers = #tpu.dot_dimension_numbers<[1], [0], [0], [1], [0, 0, 1, 1], [], []>} : vector<8x8xf32>, vector<8x32xf32>, vector<8x32xf32> -> vector<8x32xf32>
    %57 = arith.addf %37, %56 : vector<8x32xf32>
    %58 = vector.extract_strided_slice %8 {offsets = [0, 16], sizes = [8, 8], strides = [1, 1]} : vector<8x32xf32> to vector<8x8xf32>
    %59 = vector.extract_strided_slice %14 {offsets = [0, 16], sizes = [9, 8], strides = [1, 1]} : vector<9x32xf32> to vector<9x8xf32>
    %60 = vector.extract_strided_slice %15 {offsets = [0, 16], sizes = [9, 8], strides = [1, 1]} : vector<9x32xf32> to vector<9x8xf32>
    %cst_29 = arith.constant dense<0.000000e+00> : vector<8x9xf32>
    %61 = tpu.matmul %58, %59, %cst_29 {dimension_numbers = #tpu.dot_dimension_numbers<[1], [1], [0], [0], [0, 0, 1, 0], [], []>} : vector<8x8xf32>, vector<9x8xf32>, vector<8x9xf32> -> vector<8x9xf32>
    %cst_30 = arith.constant 0.353553385 : f32
    %62 = vector.broadcast %cst_30 : f32 to vector<8x9xf32>
    %63 = arith.mulf %61, %62 : vector<8x9xf32>
    %cst_31 = arith.constant dense<0xFF800000> : vector<8xf32>
    %64 = vector.multi_reduction <maximumf>, %63, %cst_31 [1] : vector<8x9xf32> to vector<8xf32>
    %65 = vector.shape_cast %64 : vector<8xf32> to vector<8x1xf32>
    %66 = vector.broadcast %65 : vector<8x1xf32> to vector<8x9xf32>
    %67 = arith.subf %63, %66 : vector<8x9xf32>
    %68 = math.exp %67 : vector<8x9xf32>
    %cst_32 = arith.constant dense<0.000000e+00> : vector<8xf32>
    %69 = vector.multi_reduction <add>, %68, %cst_32 [1] : vector<8x9xf32> to vector<8xf32>
    %70 = vector.shape_cast %69 : vector<8xf32> to vector<8x1xf32>
    %71 = tpu.reciprocal %70 {approx = true} : vector<8x1xf32> -> vector<8x1xf32>
    %72 = vector.broadcast %71 : vector<8x1xf32> to vector<8x9xf32>
    %73 = arith.mulf %68, %72 : vector<8x9xf32>
    %cst_33 = arith.constant dense<0.000000e+00> : vector<8x8xf32>
    %74 = tpu.matmul %73, %60, %cst_33 {dimension_numbers = #tpu.dot_dimension_numbers<[1], [0], [0], [1], [0, 0, 1, 1], [], []>} : vector<8x9xf32>, vector<9x8xf32>, vector<8x8xf32> -> vector<8x8xf32>
    %75 = vector.extract_strided_slice %16 {offsets = [16, 0], sizes = [8, 32], strides = [1, 1]} : vector<32x32xf32> to vector<8x32xf32>
    %cst_34 = arith.constant dense<0.000000e+00> : vector<8x32xf32>
    %76 = tpu.matmul %74, %75, %cst_34 {dimension_numbers = #tpu.dot_dimension_numbers<[1], [0], [0], [1], [0, 0, 1, 1], [], []>} : vector<8x8xf32>, vector<8x32xf32>, vector<8x32xf32> -> vector<8x32xf32>
    %77 = arith.addf %57, %76 : vector<8x32xf32>
    %78 = vector.extract_strided_slice %8 {offsets = [0, 24], sizes = [8, 8], strides = [1, 1]} : vector<8x32xf32> to vector<8x8xf32>
    %79 = vector.extract_strided_slice %14 {offsets = [0, 24], sizes = [9, 8], strides = [1, 1]} : vector<9x32xf32> to vector<9x8xf32>
    %80 = vector.extract_strided_slice %15 {offsets = [0, 24], sizes = [9, 8], strides = [1, 1]} : vector<9x32xf32> to vector<9x8xf32>
    %cst_35 = arith.constant dense<0.000000e+00> : vector<8x9xf32>
    %81 = tpu.matmul %78, %79, %cst_35 {dimension_numbers = #tpu.dot_dimension_numbers<[1], [1], [0], [0], [0, 0, 1, 0], [], []>} : vector<8x8xf32>, vector<9x8xf32>, vector<8x9xf32> -> vector<8x9xf32>
    %cst_36 = arith.constant 0.353553385 : f32
    %82 = vector.broadcast %cst_36 : f32 to vector<8x9xf32>
    %83 = arith.mulf %81, %82 : vector<8x9xf32>
    %cst_37 = arith.constant dense<0xFF800000> : vector<8xf32>
    %84 = vector.multi_reduction <maximumf>, %83, %cst_37 [1] : vector<8x9xf32> to vector<8xf32>
    %85 = vector.shape_cast %84 : vector<8xf32> to vector<8x1xf32>
    %86 = vector.broadcast %85 : vector<8x1xf32> to vector<8x9xf32>
    %87 = arith.subf %83, %86 : vector<8x9xf32>
    %88 = math.exp %87 : vector<8x9xf32>
    %cst_38 = arith.constant dense<0.000000e+00> : vector<8xf32>
    %89 = vector.multi_reduction <add>, %88, %cst_38 [1] : vector<8x9xf32> to vector<8xf32>
    %90 = vector.shape_cast %89 : vector<8xf32> to vector<8x1xf32>
    %91 = tpu.reciprocal %90 {approx = true} : vector<8x1xf32> -> vector<8x1xf32>
    %92 = vector.broadcast %91 : vector<8x1xf32> to vector<8x9xf32>
    %93 = arith.mulf %88, %92 : vector<8x9xf32>
    %cst_39 = arith.constant dense<0.000000e+00> : vector<8x8xf32>
    %94 = tpu.matmul %93, %80, %cst_39 {dimension_numbers = #tpu.dot_dimension_numbers<[1], [0], [0], [1], [0, 0, 1, 1], [], []>} : vector<8x9xf32>, vector<9x8xf32>, vector<8x8xf32> -> vector<8x8xf32>
    %95 = vector.extract_strided_slice %16 {offsets = [24, 0], sizes = [8, 32], strides = [1, 1]} : vector<32x32xf32> to vector<8x32xf32>
    %cst_40 = arith.constant dense<0.000000e+00> : vector<8x32xf32>
    %96 = tpu.matmul %94, %95, %cst_40 {dimension_numbers = #tpu.dot_dimension_numbers<[1], [0], [0], [1], [0, 0, 1, 1], [], []>} : vector<8x8xf32>, vector<8x32xf32>, vector<8x32xf32> -> vector<8x32xf32>
    %97 = arith.addf %77, %96 : vector<8x32xf32>
    %98 = arith.addf %1, %97 : vector<8x32xf32>
    %c0_41 = arith.constant 0 : index
    %c0_42 = arith.constant 0 : index
    %99 = vector.load %arg8[%c0_41, %c0_42] : memref<1x32xf32, #tpu.memory_space<vmem>>, vector<1x32xf32>
    %100 = vector.broadcast %99 : vector<1x32xf32> to vector<8x32xf32>
    %101 = arith.addf %98, %100 : vector<8x32xf32>
    %cst_43 = arith.constant dense<0.000000e+00> : vector<8xf32>
    %102 = vector.multi_reduction <add>, %101, %cst_43 [1] : vector<8x32xf32> to vector<8xf32>
    %103 = vector.shape_cast %102 : vector<8xf32> to vector<8x1xf32>
    %cst_44 = arith.constant 3.200000e+01 : f32
    %104 = vector.broadcast %cst_44 : f32 to vector<8x1xf32>
    %105 = arith.divf %103, %104 : vector<8x1xf32>
    %106 = vector.broadcast %105 : vector<8x1xf32> to vector<8x32xf32>
    %107 = arith.subf %101, %106 : vector<8x32xf32>
    %108 = arith.mulf %107, %107 : vector<8x32xf32>
    %cst_45 = arith.constant dense<0.000000e+00> : vector<8xf32>
    %109 = vector.multi_reduction <add>, %108, %cst_45 [1] : vector<8x32xf32> to vector<8xf32>
    %110 = vector.shape_cast %109 : vector<8xf32> to vector<8x1xf32>
    %cst_46 = arith.constant 3.200000e+01 : f32
    %111 = vector.broadcast %cst_46 : f32 to vector<8x1xf32>
    %112 = arith.divf %110, %111 : vector<8x1xf32>
    %113 = vector.broadcast %105 : vector<8x1xf32> to vector<8x32xf32>
    %114 = arith.subf %101, %113 : vector<8x32xf32>
    %cst_47 = arith.constant 9.99999974E-6 : f32
    %115 = vector.broadcast %cst_47 : f32 to vector<8x1xf32>
    %116 = arith.addf %112, %115 : vector<8x1xf32>
    %117 = math.rsqrt %116 : vector<8x1xf32>
    %118 = vector.broadcast %117 : vector<8x1xf32> to vector<8x32xf32>
    %119 = arith.mulf %114, %118 : vector<8x32xf32>
    %c0_48 = arith.constant 0 : index
    %c0_49 = arith.constant 0 : index
    %120 = vector.load %arg9[%c0_48, %c0_49] : memref<1x32xf32, #tpu.memory_space<vmem>>, vector<1x32xf32>
    %121 = vector.broadcast %120 : vector<1x32xf32> to vector<8x32xf32>
    %122 = arith.mulf %119, %121 : vector<8x32xf32>
    %c0_50 = arith.constant 0 : index
    %c0_51 = arith.constant 0 : index
    %123 = vector.load %arg10[%c0_50, %c0_51] : memref<1x32xf32, #tpu.memory_space<vmem>>, vector<1x32xf32>
    %124 = vector.broadcast %123 : vector<1x32xf32> to vector<8x32xf32>
    %125 = arith.addf %122, %124 : vector<8x32xf32>
    %c0_52 = arith.constant 0 : index
    %c0_53 = arith.constant 0 : index
    %c0_54 = arith.constant 0 : index
    %126 = vector.load %arg11[%c0_52, %c0_53, %c0_54] : memref<1x8x32xf32, #tpu.memory_space<vmem>>, vector<1x8x32xf32>
    %127 = vector.shape_cast %126 : vector<1x8x32xf32> to vector<8x32xf32>
    %128 = vector.shape_cast %125 : vector<8x32xf32> to vector<1x8x32xf32>
    tpu.vector_store %arg11[%c0_52, %c0_53, %c0_54], %128 {strides = array<i32>} : memref<1x8x32xf32, #tpu.memory_space<vmem>>, vector<1x8x32xf32>,
    return
  }
  func.func @transform_0(%arg0: i32) -> (i32, i32, i32) {
    %c0_i32 = arith.constant 0 : i32
    %c0_i32_0 = arith.constant 0 : i32
    %c0_i32_1 = arith.constant 0 : i32
    return %arg0, %c0_i32, %c0_i32_0 : i32, i32, i32
  }
  func.func @transform_1(%arg0: i32) -> (i32, i32, i32) {
    %c0_i32 = arith.constant 0 : i32
    %c0_i32_0 = arith.constant 0 : i32
    %c0_i32_1 = arith.constant 0 : i32
    return %arg0, %c0_i32, %c0_i32_0 : i32, i32, i32
  }
  func.func @transform_2(%arg0: i32) -> (i32, i32) {
    %c0_i32 = arith.constant 0 : i32
    %c0_i32_0 = arith.constant 0 : i32
    %c0_i32_1 = arith.constant 0 : i32
    return %c0_i32, %c0_i32_0 : i32, i32
  }
  func.func @transform_3(%arg0: i32) -> (i32, i32) {
    %c0_i32 = arith.constant 0 : i32
    %c0_i32_0 = arith.constant 0 : i32
    %c0_i32_1 = arith.constant 0 : i32
    return %c0_i32, %c0_i32_0 : i32, i32
  }
  func.func @transform_4(%arg0: i32) -> (i32, i32) {
    %c0_i32 = arith.constant 0 : i32
    %c0_i32_0 = arith.constant 0 : i32
    %c0_i32_1 = arith.constant 0 : i32
    return %c0_i32, %c0_i32_0 : i32, i32
  }
  func.func @transform_5(%arg0: i32) -> (i32, i32) {
    %c0_i32 = arith.constant 0 : i32
    %c0_i32_0 = arith.constant 0 : i32
    %c0_i32_1 = arith.constant 0 : i32
    return %c0_i32, %c0_i32_0 : i32, i32
  }
  func.func @transform_6(%arg0: i32) -> (i32, i32) {
    %c0_i32 = arith.constant 0 : i32
    %c0_i32_0 = arith.constant 0 : i32
    %c0_i32_1 = arith.constant 0 : i32
    return %c0_i32, %c0_i32_0 : i32, i32
  }
  func.func @transform_7(%arg0: i32) -> (i32, i32) {
    %c0_i32 = arith.constant 0 : i32
    %c0_i32_0 = arith.constant 0 : i32
    %c0_i32_1 = arith.constant 0 : i32
    return %c0_i32, %c0_i32_0 : i32, i32
  }
  func.func @transform_8(%arg0: i32) -> (i32, i32) {
    %c0_i32 = arith.constant 0 : i32
    %c0_i32_0 = arith.constant 0 : i32
    %c0_i32_1 = arith.constant 0 : i32
    return %c0_i32, %c0_i32_0 : i32, i32
  }
  func.func @transform_9(%arg0: i32) -> (i32, i32) {
    %c0_i32 = arith.constant 0 : i32
    %c0_i32_0 = arith.constant 0 : i32
    %c0_i32_1 = arith.constant 0 : i32
    return %c0_i32, %c0_i32_0 : i32, i32
  }
  func.func @transform_10(%arg0: i32) -> (i32, i32, i32) {
    %c0_i32 = arith.constant 0 : i32
    %c0_i32_0 = arith.constant 0 : i32
    %c0_i32_1 = arith.constant 0 : i32
    return %arg0, %c0_i32, %c0_i32_0 : i32, i32, i32
  }
}

module attributes {stable_mosaic.version = 11 : i64} {
  func.func @_ffn_sublayer_kernel(%arg0: i32, %arg1: memref<1x8x32xf32, #tpu.memory_space<vmem>>, %arg2: memref<32x64xf32, #tpu.memory_space<vmem>>, %arg3: memref<1x64xf32, #tpu.memory_space<vmem>>, %arg4: memref<64x32xf32, #tpu.memory_space<vmem>>, %arg5: memref<1x32xf32, #tpu.memory_space<vmem>>, %arg6: memref<1x32xf32, #tpu.memory_space<vmem>>, %arg7: memref<1x32xf32, #tpu.memory_space<vmem>>, %arg8: memref<1x8x32xf32, #tpu.memory_space<vmem>>) attributes {dimension_semantics = [#tpu.dimension_semantics<parallel>], iteration_bounds = array<i64: 2>, scalar_prefetch = 0 : i64, scratch_operands = 0 : i64, tpu.core_type = #tpu.core_type<tc>, window_params = [{transform_indices = @transform_0, window_bounds = array<i64: 1, 8, 32>}, {pipeline_mode = #tpu.pipeline_mode<synchronous>, transform_indices = @transform_1, window_bounds = array<i64: 32, 64>}, {pipeline_mode = #tpu.pipeline_mode<synchronous>, transform_indices = @transform_2, window_bounds = array<i64: 1, 64>}, {pipeline_mode = #tpu.pipeline_mode<synchronous>, transform_indices = @transform_3, window_bounds = array<i64: 64, 32>}, {pipeline_mode = #tpu.pipeline_mode<synchronous>, transform_indices = @transform_4, window_bounds = array<i64: 1, 32>}, {pipeline_mode = #tpu.pipeline_mode<synchronous>, transform_indices = @transform_5, window_bounds = array<i64: 1, 32>}, {pipeline_mode = #tpu.pipeline_mode<synchronous>, transform_indices = @transform_6, window_bounds = array<i64: 1, 32>}, {transform_indices = @transform_7, window_bounds = array<i64: 1, 8, 32>}]} {
    %c0 = arith.constant 0 : index
    %c0_0 = arith.constant 0 : index
    %c0_1 = arith.constant 0 : index
    %0 = vector.load %arg1[%c0, %c0_0, %c0_1] : memref<1x8x32xf32, #tpu.memory_space<vmem>>, vector<1x8x32xf32>
    %1 = vector.shape_cast %0 : vector<1x8x32xf32> to vector<8x32xf32>
    %c0_2 = arith.constant 0 : index
    %c0_3 = arith.constant 0 : index
    %2 = vector.load %arg2[%c0_2, %c0_3] : memref<32x64xf32, #tpu.memory_space<vmem>>, vector<32x64xf32>
    %cst = arith.constant dense<0.000000e+00> : vector<8x64xf32>
    %3 = tpu.matmul %1, %2, %cst {dimension_numbers = #tpu.dot_dimension_numbers<[1], [0], [0], [1], [0, 0, 1, 1], [], []>} : vector<8x32xf32>, vector<32x64xf32>, vector<8x64xf32> -> vector<8x64xf32>
    %c0_4 = arith.constant 0 : index
    %c0_5 = arith.constant 0 : index
    %4 = vector.load %arg3[%c0_4, %c0_5] : memref<1x64xf32, #tpu.memory_space<vmem>>, vector<1x64xf32>
    %5 = vector.broadcast %4 : vector<1x64xf32> to vector<8x64xf32>
    %6 = arith.addf %3, %5 : vector<8x64xf32>
    %cst_6 = arith.constant 0.000000e+00 : f32
    %7 = vector.broadcast %cst_6 : f32 to vector<8x64xf32>
    %8 = arith.maximumf %6, %7 : vector<8x64xf32>
    %c0_7 = arith.constant 0 : index
    %c0_8 = arith.constant 0 : index
    %9 = vector.load %arg4[%c0_7, %c0_8] : memref<64x32xf32, #tpu.memory_space<vmem>>, vector<64x32xf32>
    %cst_9 = arith.constant dense<0.000000e+00> : vector<8x32xf32>
    %10 = tpu.matmul %8, %9, %cst_9 {dimension_numbers = #tpu.dot_dimension_numbers<[1], [0], [0], [1], [0, 0, 1, 1], [], []>} : vector<8x64xf32>, vector<64x32xf32>, vector<8x32xf32> -> vector<8x32xf32>
    %11 = arith.addf %1, %10 : vector<8x32xf32>
    %c0_10 = arith.constant 0 : index
    %c0_11 = arith.constant 0 : index
    %12 = vector.load %arg5[%c0_10, %c0_11] : memref<1x32xf32, #tpu.memory_space<vmem>>, vector<1x32xf32>
    %13 = vector.broadcast %12 : vector<1x32xf32> to vector<8x32xf32>
    %14 = arith.addf %11, %13 : vector<8x32xf32>
    %cst_12 = arith.constant dense<0.000000e+00> : vector<8xf32>
    %15 = vector.multi_reduction <add>, %14, %cst_12 [1] : vector<8x32xf32> to vector<8xf32>
    %16 = vector.shape_cast %15 : vector<8xf32> to vector<8x1xf32>
    %cst_13 = arith.constant 3.200000e+01 : f32
    %17 = vector.broadcast %cst_13 : f32 to vector<8x1xf32>
    %18 = arith.divf %16, %17 : vector<8x1xf32>
    %19 = vector.broadcast %18 : vector<8x1xf32> to vector<8x32xf32>
    %20 = arith.subf %14, %19 : vector<8x32xf32>
    %21 = arith.mulf %20, %20 : vector<8x32xf32>
    %cst_14 = arith.constant dense<0.000000e+00> : vector<8xf32>
    %22 = vector.multi_reduction <add>, %21, %cst_14 [1] : vector<8x32xf32> to vector<8xf32>
    %23 = vector.shape_cast %22 : vector<8xf32> to vector<8x1xf32>
    %cst_15 = arith.constant 3.200000e+01 : f32
    %24 = vector.broadcast %cst_15 : f32 to vector<8x1xf32>
    %25 = arith.divf %23, %24 : vector<8x1xf32>
    %26 = vector.broadcast %18 : vector<8x1xf32> to vector<8x32xf32>
    %27 = arith.subf %14, %26 : vector<8x32xf32>
    %cst_16 = arith.constant 9.99999974E-6 : f32
    %28 = vector.broadcast %cst_16 : f32 to vector<8x1xf32>
    %29 = arith.addf %25, %28 : vector<8x1xf32>
    %30 = math.rsqrt %29 : vector<8x1xf32>
    %31 = vector.broadcast %30 : vector<8x1xf32> to vector<8x32xf32>
    %32 = arith.mulf %27, %31 : vector<8x32xf32>
    %c0_17 = arith.constant 0 : index
    %c0_18 = arith.constant 0 : index
    %33 = vector.load %arg6[%c0_17, %c0_18] : memref<1x32xf32, #tpu.memory_space<vmem>>, vector<1x32xf32>
    %34 = vector.broadcast %33 : vector<1x32xf32> to vector<8x32xf32>
    %35 = arith.mulf %32, %34 : vector<8x32xf32>
    %c0_19 = arith.constant 0 : index
    %c0_20 = arith.constant 0 : index
    %36 = vector.load %arg7[%c0_19, %c0_20] : memref<1x32xf32, #tpu.memory_space<vmem>>, vector<1x32xf32>
    %37 = vector.broadcast %36 : vector<1x32xf32> to vector<8x32xf32>
    %38 = arith.addf %35, %37 : vector<8x32xf32>
    %c0_21 = arith.constant 0 : index
    %c0_22 = arith.constant 0 : index
    %c0_23 = arith.constant 0 : index
    %39 = vector.load %arg8[%c0_21, %c0_22, %c0_23] : memref<1x8x32xf32, #tpu.memory_space<vmem>>, vector<1x8x32xf32>
    %40 = vector.shape_cast %39 : vector<1x8x32xf32> to vector<8x32xf32>
    %41 = vector.shape_cast %38 : vector<8x32xf32> to vector<1x8x32xf32>
    tpu.vector_store %arg8[%c0_21, %c0_22, %c0_23], %41 {strides = array<i32>} : memref<1x8x32xf32, #tpu.memory_space<vmem>>, vector<1x8x32xf32>,
    return
  }
  func.func @transform_0(%arg0: i32) -> (i32, i32, i32) {
    %c0_i32 = arith.constant 0 : i32
    %c0_i32_0 = arith.constant 0 : i32
    %c0_i32_1 = arith.constant 0 : i32
    return %arg0, %c0_i32, %c0_i32_0 : i32, i32, i32
  }
  func.func @transform_1(%arg0: i32) -> (i32, i32) {
    %c0_i32 = arith.constant 0 : i32
    %c0_i32_0 = arith.constant 0 : i32
    %c0_i32_1 = arith.constant 0 : i32
    return %c0_i32, %c0_i32_0 : i32, i32
  }
  func.func @transform_2(%arg0: i32) -> (i32, i32) {
    %c0_i32 = arith.constant 0 : i32
    %c0_i32_0 = arith.constant 0 : i32
    %c0_i32_1 = arith.constant 0 : i32
    return %c0_i32, %c0_i32_0 : i32, i32
  }
  func.func @transform_3(%arg0: i32) -> (i32, i32) {
    %c0_i32 = arith.constant 0 : i32
    %c0_i32_0 = arith.constant 0 : i32
    %c0_i32_1 = arith.constant 0 : i32
    return %c0_i32, %c0_i32_0 : i32, i32
  }
  func.func @transform_4(%arg0: i32) -> (i32, i32) {
    %c0_i32 = arith.constant 0 : i32
    %c0_i32_0 = arith.constant 0 : i32
    %c0_i32_1 = arith.constant 0 : i32
    return %c0_i32, %c0_i32_0 : i32, i32
  }
  func.func @transform_5(%arg0: i32) -> (i32, i32) {
    %c0_i32 = arith.constant 0 : i32
    %c0_i32_0 = arith.constant 0 : i32
    %c0_i32_1 = arith.constant 0 : i32
    return %c0_i32, %c0_i32_0 : i32, i32
  }
  func.func @transform_6(%arg0: i32) -> (i32, i32) {
    %c0_i32 = arith.constant 0 : i32
    %c0_i32_0 = arith.constant 0 : i32
    %c0_i32_1 = arith.constant 0 : i32
    return %c0_i32, %c0_i32_0 : i32, i32
  }
  func.func @transform_7(%arg0: i32) -> (i32, i32, i32) {
    %c0_i32 = arith.constant 0 : i32
    %c0_i32_0 = arith.constant 0 : i32
    %c0_i32_1 = arith.constant 0 : i32
    return %arg0, %c0_i32, %c0_i32_0 : i32, i32, i32
  }
}

module attributes {stable_mosaic.version = 11 : i64} {
  func.func @_mha_sublayer_kernel(%arg0: i32, %arg1: memref<1x8x32xf32, #tpu.memory_space<vmem>>, %arg2: memref<1x8x32xf32, #tpu.memory_space<vmem>>, %arg3: memref<32x32xf32, #tpu.memory_space<vmem>>, %arg4: memref<1x32xf32, #tpu.memory_space<vmem>>, %arg5: memref<32x64xf32, #tpu.memory_space<vmem>>, %arg6: memref<1x64xf32, #tpu.memory_space<vmem>>, %arg7: memref<32x32xf32, #tpu.memory_space<vmem>>, %arg8: memref<1x32xf32, #tpu.memory_space<vmem>>, %arg9: memref<1x32xf32, #tpu.memory_space<vmem>>, %arg10: memref<1x32xf32, #tpu.memory_space<vmem>>, %arg11: memref<1x8x32xf32, #tpu.memory_space<vmem>>) attributes {dimension_semantics = [#tpu.dimension_semantics<parallel>], iteration_bounds = array<i64: 2>, scalar_prefetch = 0 : i64, scratch_operands = 0 : i64, tpu.core_type = #tpu.core_type<tc>, window_params = [{transform_indices = @transform_0, window_bounds = array<i64: 1, 8, 32>}, {transform_indices = @transform_1, window_bounds = array<i64: 1, 8, 32>}, {pipeline_mode = #tpu.pipeline_mode<synchronous>, transform_indices = @transform_2, window_bounds = array<i64: 32, 32>}, {pipeline_mode = #tpu.pipeline_mode<synchronous>, transform_indices = @transform_3, window_bounds = array<i64: 1, 32>}, {pipeline_mode = #tpu.pipeline_mode<synchronous>, transform_indices = @transform_4, window_bounds = array<i64: 32, 64>}, {pipeline_mode = #tpu.pipeline_mode<synchronous>, transform_indices = @transform_5, window_bounds = array<i64: 1, 64>}, {pipeline_mode = #tpu.pipeline_mode<synchronous>, transform_indices = @transform_6, window_bounds = array<i64: 32, 32>}, {pipeline_mode = #tpu.pipeline_mode<synchronous>, transform_indices = @transform_7, window_bounds = array<i64: 1, 32>}, {pipeline_mode = #tpu.pipeline_mode<synchronous>, transform_indices = @transform_8, window_bounds = array<i64: 1, 32>}, {pipeline_mode = #tpu.pipeline_mode<synchronous>, transform_indices = @transform_9, window_bounds = array<i64: 1, 32>}, {transform_indices = @transform_10, window_bounds = array<i64: 1, 8, 32>}]} {
    %c0 = arith.constant 0 : index
    %c0_0 = arith.constant 0 : index
    %c0_1 = arith.constant 0 : index
    %0 = vector.load %arg1[%c0, %c0_0, %c0_1] : memref<1x8x32xf32, #tpu.memory_space<vmem>>, vector<1x8x32xf32>
    %1 = vector.shape_cast %0 : vector<1x8x32xf32> to vector<8x32xf32>
    %c0_2 = arith.constant 0 : index
    %c0_3 = arith.constant 0 : index
    %c0_4 = arith.constant 0 : index
    %2 = vector.load %arg2[%c0_2, %c0_3, %c0_4] : memref<1x8x32xf32, #tpu.memory_space<vmem>>, vector<1x8x32xf32>
    %3 = vector.shape_cast %2 : vector<1x8x32xf32> to vector<8x32xf32>
    %c0_5 = arith.constant 0 : index
    %c0_6 = arith.constant 0 : index
    %4 = vector.load %arg3[%c0_5, %c0_6] : memref<32x32xf32, #tpu.memory_space<vmem>>, vector<32x32xf32>
    %cst = arith.constant dense<0.000000e+00> : vector<8x32xf32>
    %5 = tpu.matmul %1, %4, %cst {dimension_numbers = #tpu.dot_dimension_numbers<[1], [0], [0], [1], [0, 0, 1, 1], [], []>} : vector<8x32xf32>, vector<32x32xf32>, vector<8x32xf32> -> vector<8x32xf32>
    %c0_7 = arith.constant 0 : index
    %c0_8 = arith.constant 0 : index
    %6 = vector.load %arg4[%c0_7, %c0_8] : memref<1x32xf32, #tpu.memory_space<vmem>>, vector<1x32xf32>
    %7 = vector.broadcast %6 : vector<1x32xf32> to vector<8x32xf32>
    %8 = arith.addf %5, %7 : vector<8x32xf32>
    %c0_9 = arith.constant 0 : index
    %c0_10 = arith.constant 0 : index
    %9 = vector.load %arg5[%c0_9, %c0_10] : memref<32x64xf32, #tpu.memory_space<vmem>>, vector<32x64xf32>
    %cst_11 = arith.constant dense<0.000000e+00> : vector<8x64xf32>
    %10 = tpu.matmul %3, %9, %cst_11 {dimension_numbers = #tpu.dot_dimension_numbers<[1], [0], [0], [1], [0, 0, 1, 1], [], []>} : vector<8x32xf32>, vector<32x64xf32>, vector<8x64xf32> -> vector<8x64xf32>
    %c0_12 = arith.constant 0 : index
    %c0_13 = arith.constant 0 : index
    %11 = vector.load %arg6[%c0_12, %c0_13] : memref<1x64xf32, #tpu.memory_space<vmem>>, vector<1x64xf32>
    %12 = vector.broadcast %11 : vector<1x64xf32> to vector<8x64xf32>
    %13 = arith.addf %10, %12 : vector<8x64xf32>
    %14 = vector.extract_strided_slice %13 {offsets = [0, 0], sizes = [8, 32], strides = [1, 1]} : vector<8x64xf32> to vector<8x32xf32>
    %15 = vector.extract_strided_slice %13 {offsets = [0, 32], sizes = [8, 32], strides = [1, 1]} : vector<8x64xf32> to vector<8x32xf32>
    %c0_14 = arith.constant 0 : index
    %c0_15 = arith.constant 0 : index
    %16 = vector.load %arg7[%c0_14, %c0_15] : memref<32x32xf32, #tpu.memory_space<vmem>>, vector<32x32xf32>
    %17 = tpu.iota {dimensions = array<i32: 0>} : vector<8x8xi32>
    %18 = tpu.iota {dimensions = array<i32: 1>} : vector<8x8xi32>
    %19 = arith.cmpi sgt, %18, %17 : vector<8x8xi32>
    %cst_16 = arith.constant 0.000000e+00 : f32
    %20 = vector.broadcast %cst_16 : f32 to vector<8x32xf32>
    %21 = vector.extract_strided_slice %8 {offsets = [0, 0], sizes = [8, 8], strides = [1, 1]} : vector<8x32xf32> to vector<8x8xf32>
    %22 = vector.extract_strided_slice %14 {offsets = [0, 0], sizes = [8, 8], strides = [1, 1]} : vector<8x32xf32> to vector<8x8xf32>
    %23 = vector.extract_strided_slice %15 {offsets = [0, 0], sizes = [8, 8], strides = [1, 1]} : vector<8x32xf32> to vector<8x8xf32>
    %cst_17 = arith.constant dense<0.000000e+00> : vector<8x8xf32>
    %24 = tpu.matmul %21, %22, %cst_17 {dimension_numbers = #tpu.dot_dimension_numbers<[1], [1], [0], [0], [0, 0, 1, 0], [], []>} : vector<8x8xf32>, vector<8x8xf32>, vector<8x8xf32> -> vector<8x8xf32>
    %cst_18 = arith.constant 0.353553385 : f32
    %25 = vector.broadcast %cst_18 : f32 to vector<8x8xf32>
    %26 = arith.mulf %24, %25 : vector<8x8xf32>
    %cst_19 = arith.constant -1.000000e+30 : f32
    %27 = vector.broadcast %cst_19 : f32 to vector<8x8xf32>
    %28 = arith.select %19, %27, %26 : vector<8x8xi1>, vector<8x8xf32>
    %cst_20 = arith.constant dense<0xFF800000> : vector<8xf32>
    %29 = vector.multi_reduction <maximumf>, %28, %cst_20 [1] : vector<8x8xf32> to vector<8xf32>
    %30 = vector.shape_cast %29 : vector<8xf32> to vector<8x1xf32>
    %31 = vector.broadcast %30 : vector<8x1xf32> to vector<8x8xf32>
    %32 = arith.subf %28, %31 : vector<8x8xf32>
    %33 = math.exp %32 : vector<8x8xf32>
    %cst_21 = arith.constant dense<0.000000e+00> : vector<8xf32>
    %34 = vector.multi_reduction <add>, %33, %cst_21 [1] : vector<8x8xf32> to vector<8xf32>
    %35 = vector.shape_cast %34 : vector<8xf32> to vector<8x1xf32>
    %36 = tpu.reciprocal %35 {approx = true} : vector<8x1xf32> -> vector<8x1xf32>
    %37 = vector.broadcast %36 : vector<8x1xf32> to vector<8x8xf32>
    %38 = arith.mulf %33, %37 : vector<8x8xf32>
    %cst_22 = arith.constant dense<0.000000e+00> : vector<8x8xf32>
    %39 = tpu.matmul %38, %23, %cst_22 {dimension_numbers = #tpu.dot_dimension_numbers<[1], [0], [0], [1], [0, 0, 1, 1], [], []>} : vector<8x8xf32>, vector<8x8xf32>, vector<8x8xf32> -> vector<8x8xf32>
    %40 = vector.extract_strided_slice %16 {offsets = [0, 0], sizes = [8, 32], strides = [1, 1]} : vector<32x32xf32> to vector<8x32xf32>
    %cst_23 = arith.constant dense<0.000000e+00> : vector<8x32xf32>
    %41 = tpu.matmul %39, %40, %cst_23 {dimension_numbers = #tpu.dot_dimension_numbers<[1], [0], [0], [1], [0, 0, 1, 1], [], []>} : vector<8x8xf32>, vector<8x32xf32>, vector<8x32xf32> -> vector<8x32xf32>
    %42 = arith.addf %20, %41 : vector<8x32xf32>
    %43 = vector.extract_strided_slice %8 {offsets = [0, 8], sizes = [8, 8], strides = [1, 1]} : vector<8x32xf32> to vector<8x8xf32>
    %44 = vector.extract_strided_slice %14 {offsets = [0, 8], sizes = [8, 8], strides = [1, 1]} : vector<8x32xf32> to vector<8x8xf32>
    %45 = vector.extract_strided_slice %15 {offsets = [0, 8], sizes = [8, 8], strides = [1, 1]} : vector<8x32xf32> to vector<8x8xf32>
    %cst_24 = arith.constant dense<0.000000e+00> : vector<8x8xf32>
    %46 = tpu.matmul %43, %44, %cst_24 {dimension_numbers = #tpu.dot_dimension_numbers<[1], [1], [0], [0], [0, 0, 1, 0], [], []>} : vector<8x8xf32>, vector<8x8xf32>, vector<8x8xf32> -> vector<8x8xf32>
    %cst_25 = arith.constant 0.353553385 : f32
    %47 = vector.broadcast %cst_25 : f32 to vector<8x8xf32>
    %48 = arith.mulf %46, %47 : vector<8x8xf32>
    %cst_26 = arith.constant -1.000000e+30 : f32
    %49 = vector.broadcast %cst_26 : f32 to vector<8x8xf32>
    %50 = arith.select %19, %49, %48 : vector<8x8xi1>, vector<8x8xf32>
    %cst_27 = arith.constant dense<0xFF800000> : vector<8xf32>
    %51 = vector.multi_reduction <maximumf>, %50, %cst_27 [1] : vector<8x8xf32> to vector<8xf32>
    %52 = vector.shape_cast %51 : vector<8xf32> to vector<8x1xf32>
    %53 = vector.broadcast %52 : vector<8x1xf32> to vector<8x8xf32>
    %54 = arith.subf %50, %53 : vector<8x8xf32>
    %55 = math.exp %54 : vector<8x8xf32>
    %cst_28 = arith.constant dense<0.000000e+00> : vector<8xf32>
    %56 = vector.multi_reduction <add>, %55, %cst_28 [1] : vector<8x8xf32> to vector<8xf32>
    %57 = vector.shape_cast %56 : vector<8xf32> to vector<8x1xf32>
    %58 = tpu.reciprocal %57 {approx = true} : vector<8x1xf32> -> vector<8x1xf32>
    %59 = vector.broadcast %58 : vector<8x1xf32> to vector<8x8xf32>
    %60 = arith.mulf %55, %59 : vector<8x8xf32>
    %cst_29 = arith.constant dense<0.000000e+00> : vector<8x8xf32>
    %61 = tpu.matmul %60, %45, %cst_29 {dimension_numbers = #tpu.dot_dimension_numbers<[1], [0], [0], [1], [0, 0, 1, 1], [], []>} : vector<8x8xf32>, vector<8x8xf32>, vector<8x8xf32> -> vector<8x8xf32>
    %62 = vector.extract_strided_slice %16 {offsets = [8, 0], sizes = [8, 32], strides = [1, 1]} : vector<32x32xf32> to vector<8x32xf32>
    %cst_30 = arith.constant dense<0.000000e+00> : vector<8x32xf32>
    %63 = tpu.matmul %61, %62, %cst_30 {dimension_numbers = #tpu.dot_dimension_numbers<[1], [0], [0], [1], [0, 0, 1, 1], [], []>} : vector<8x8xf32>, vector<8x32xf32>, vector<8x32xf32> -> vector<8x32xf32>
    %64 = arith.addf %42, %63 : vector<8x32xf32>
    %65 = vector.extract_strided_slice %8 {offsets = [0, 16], sizes = [8, 8], strides = [1, 1]} : vector<8x32xf32> to vector<8x8xf32>
    %66 = vector.extract_strided_slice %14 {offsets = [0, 16], sizes = [8, 8], strides = [1, 1]} : vector<8x32xf32> to vector<8x8xf32>
    %67 = vector.extract_strided_slice %15 {offsets = [0, 16], sizes = [8, 8], strides = [1, 1]} : vector<8x32xf32> to vector<8x8xf32>
    %cst_31 = arith.constant dense<0.000000e+00> : vector<8x8xf32>
    %68 = tpu.matmul %65, %66, %cst_31 {dimension_numbers = #tpu.dot_dimension_numbers<[1], [1], [0], [0], [0, 0, 1, 0], [], []>} : vector<8x8xf32>, vector<8x8xf32>, vector<8x8xf32> -> vector<8x8xf32>
    %cst_32 = arith.constant 0.353553385 : f32
    %69 = vector.broadcast %cst_32 : f32 to vector<8x8xf32>
    %70 = arith.mulf %68, %69 : vector<8x8xf32>
    %cst_33 = arith.constant -1.000000e+30 : f32
    %71 = vector.broadcast %cst_33 : f32 to vector<8x8xf32>
    %72 = arith.select %19, %71, %70 : vector<8x8xi1>, vector<8x8xf32>
    %cst_34 = arith.constant dense<0xFF800000> : vector<8xf32>
    %73 = vector.multi_reduction <maximumf>, %72, %cst_34 [1] : vector<8x8xf32> to vector<8xf32>
    %74 = vector.shape_cast %73 : vector<8xf32> to vector<8x1xf32>
    %75 = vector.broadcast %74 : vector<8x1xf32> to vector<8x8xf32>
    %76 = arith.subf %72, %75 : vector<8x8xf32>
    %77 = math.exp %76 : vector<8x8xf32>
    %cst_35 = arith.constant dense<0.000000e+00> : vector<8xf32>
    %78 = vector.multi_reduction <add>, %77, %cst_35 [1] : vector<8x8xf32> to vector<8xf32>
    %79 = vector.shape_cast %78 : vector<8xf32> to vector<8x1xf32>
    %80 = tpu.reciprocal %79 {approx = true} : vector<8x1xf32> -> vector<8x1xf32>
    %81 = vector.broadcast %80 : vector<8x1xf32> to vector<8x8xf32>
    %82 = arith.mulf %77, %81 : vector<8x8xf32>
    %cst_36 = arith.constant dense<0.000000e+00> : vector<8x8xf32>
    %83 = tpu.matmul %82, %67, %cst_36 {dimension_numbers = #tpu.dot_dimension_numbers<[1], [0], [0], [1], [0, 0, 1, 1], [], []>} : vector<8x8xf32>, vector<8x8xf32>, vector<8x8xf32> -> vector<8x8xf32>
    %84 = vector.extract_strided_slice %16 {offsets = [16, 0], sizes = [8, 32], strides = [1, 1]} : vector<32x32xf32> to vector<8x32xf32>
    %cst_37 = arith.constant dense<0.000000e+00> : vector<8x32xf32>
    %85 = tpu.matmul %83, %84, %cst_37 {dimension_numbers = #tpu.dot_dimension_numbers<[1], [0], [0], [1], [0, 0, 1, 1], [], []>} : vector<8x8xf32>, vector<8x32xf32>, vector<8x32xf32> -> vector<8x32xf32>
    %86 = arith.addf %64, %85 : vector<8x32xf32>
    %87 = vector.extract_strided_slice %8 {offsets = [0, 24], sizes = [8, 8], strides = [1, 1]} : vector<8x32xf32> to vector<8x8xf32>
    %88 = vector.extract_strided_slice %14 {offsets = [0, 24], sizes = [8, 8], strides = [1, 1]} : vector<8x32xf32> to vector<8x8xf32>
    %89 = vector.extract_strided_slice %15 {offsets = [0, 24], sizes = [8, 8], strides = [1, 1]} : vector<8x32xf32> to vector<8x8xf32>
    %cst_38 = arith.constant dense<0.000000e+00> : vector<8x8xf32>
    %90 = tpu.matmul %87, %88, %cst_38 {dimension_numbers = #tpu.dot_dimension_numbers<[1], [1], [0], [0], [0, 0, 1, 0], [], []>} : vector<8x8xf32>, vector<8x8xf32>, vector<8x8xf32> -> vector<8x8xf32>
    %cst_39 = arith.constant 0.353553385 : f32
    %91 = vector.broadcast %cst_39 : f32 to vector<8x8xf32>
    %92 = arith.mulf %90, %91 : vector<8x8xf32>
    %cst_40 = arith.constant -1.000000e+30 : f32
    %93 = vector.broadcast %cst_40 : f32 to vector<8x8xf32>
    %94 = arith.select %19, %93, %92 : vector<8x8xi1>, vector<8x8xf32>
    %cst_41 = arith.constant dense<0xFF800000> : vector<8xf32>
    %95 = vector.multi_reduction <maximumf>, %94, %cst_41 [1] : vector<8x8xf32> to vector<8xf32>
    %96 = vector.shape_cast %95 : vector<8xf32> to vector<8x1xf32>
    %97 = vector.broadcast %96 : vector<8x1xf32> to vector<8x8xf32>
    %98 = arith.subf %94, %97 : vector<8x8xf32>
    %99 = math.exp %98 : vector<8x8xf32>
    %cst_42 = arith.constant dense<0.000000e+00> : vector<8xf32>
    %100 = vector.multi_reduction <add>, %99, %cst_42 [1] : vector<8x8xf32> to vector<8xf32>
    %101 = vector.shape_cast %100 : vector<8xf32> to vector<8x1xf32>
    %102 = tpu.reciprocal %101 {approx = true} : vector<8x1xf32> -> vector<8x1xf32>
    %103 = vector.broadcast %102 : vector<8x1xf32> to vector<8x8xf32>
    %104 = arith.mulf %99, %103 : vector<8x8xf32>
    %cst_43 = arith.constant dense<0.000000e+00> : vector<8x8xf32>
    %105 = tpu.matmul %104, %89, %cst_43 {dimension_numbers = #tpu.dot_dimension_numbers<[1], [0], [0], [1], [0, 0, 1, 1], [], []>} : vector<8x8xf32>, vector<8x8xf32>, vector<8x8xf32> -> vector<8x8xf32>
    %106 = vector.extract_strided_slice %16 {offsets = [24, 0], sizes = [8, 32], strides = [1, 1]} : vector<32x32xf32> to vector<8x32xf32>
    %cst_44 = arith.constant dense<0.000000e+00> : vector<8x32xf32>
    %107 = tpu.matmul %105, %106, %cst_44 {dimension_numbers = #tpu.dot_dimension_numbers<[1], [0], [0], [1], [0, 0, 1, 1], [], []>} : vector<8x8xf32>, vector<8x32xf32>, vector<8x32xf32> -> vector<8x32xf32>
    %108 = arith.addf %86, %107 : vector<8x32xf32>
    %109 = arith.addf %1, %108 : vector<8x32xf32>
    %c0_45 = arith.constant 0 : index
    %c0_46 = arith.constant 0 : index
    %110 = vector.load %arg8[%c0_45, %c0_46] : memref<1x32xf32, #tpu.memory_space<vmem>>, vector<1x32xf32>
    %111 = vector.broadcast %110 : vector<1x32xf32> to vector<8x32xf32>
    %112 = arith.addf %109, %111 : vector<8x32xf32>
    %cst_47 = arith.constant dense<0.000000e+00> : vector<8xf32>
    %113 = vector.multi_reduction <add>, %112, %cst_47 [1] : vector<8x32xf32> to vector<8xf32>
    %114 = vector.shape_cast %113 : vector<8xf32> to vector<8x1xf32>
    %cst_48 = arith.constant 3.200000e+01 : f32
    %115 = vector.broadcast %cst_48 : f32 to vector<8x1xf32>
    %116 = arith.divf %114, %115 : vector<8x1xf32>
    %117 = vector.broadcast %116 : vector<8x1xf32> to vector<8x32xf32>
    %118 = arith.subf %112, %117 : vector<8x32xf32>
    %119 = arith.mulf %118, %118 : vector<8x32xf32>
    %cst_49 = arith.constant dense<0.000000e+00> : vector<8xf32>
    %120 = vector.multi_reduction <add>, %119, %cst_49 [1] : vector<8x32xf32> to vector<8xf32>
    %121 = vector.shape_cast %120 : vector<8xf32> to vector<8x1xf32>
    %cst_50 = arith.constant 3.200000e+01 : f32
    %122 = vector.broadcast %cst_50 : f32 to vector<8x1xf32>
    %123 = arith.divf %121, %122 : vector<8x1xf32>
    %124 = vector.broadcast %116 : vector<8x1xf32> to vector<8x32xf32>
    %125 = arith.subf %112, %124 : vector<8x32xf32>
    %cst_51 = arith.constant 9.99999974E-6 : f32
    %126 = vector.broadcast %cst_51 : f32 to vector<8x1xf32>
    %127 = arith.addf %123, %126 : vector<8x1xf32>
    %128 = math.rsqrt %127 : vector<8x1xf32>
    %129 = vector.broadcast %128 : vector<8x1xf32> to vector<8x32xf32>
    %130 = arith.mulf %125, %129 : vector<8x32xf32>
    %c0_52 = arith.constant 0 : index
    %c0_53 = arith.constant 0 : index
    %131 = vector.load %arg9[%c0_52, %c0_53] : memref<1x32xf32, #tpu.memory_space<vmem>>, vector<1x32xf32>
    %132 = vector.broadcast %131 : vector<1x32xf32> to vector<8x32xf32>
    %133 = arith.mulf %130, %132 : vector<8x32xf32>
    %c0_54 = arith.constant 0 : index
    %c0_55 = arith.constant 0 : index
    %134 = vector.load %arg10[%c0_54, %c0_55] : memref<1x32xf32, #tpu.memory_space<vmem>>, vector<1x32xf32>
    %135 = vector.broadcast %134 : vector<1x32xf32> to vector<8x32xf32>
    %136 = arith.addf %133, %135 : vector<8x32xf32>
    %c0_56 = arith.constant 0 : index
    %c0_57 = arith.constant 0 : index
    %c0_58 = arith.constant 0 : index
    %137 = vector.load %arg11[%c0_56, %c0_57, %c0_58] : memref<1x8x32xf32, #tpu.memory_space<vmem>>, vector<1x8x32xf32>
    %138 = vector.shape_cast %137 : vector<1x8x32xf32> to vector<8x32xf32>
    %139 = vector.shape_cast %136 : vector<8x32xf32> to vector<1x8x32xf32>
    tpu.vector_store %arg11[%c0_56, %c0_57, %c0_58], %139 {strides = array<i32>} : memref<1x8x32xf32, #tpu.memory_space<vmem>>, vector<1x8x32xf32>,
    return
  }
  func.func @transform_0(%arg0: i32) -> (i32, i32, i32) {
    %c0_i32 = arith.constant 0 : i32
    %c0_i32_0 = arith.constant 0 : i32
    %c0_i32_1 = arith.constant 0 : i32
    return %arg0, %c0_i32, %c0_i32_0 : i32, i32, i32
  }
  func.func @transform_1(%arg0: i32) -> (i32, i32, i32) {
    %c0_i32 = arith.constant 0 : i32
    %c0_i32_0 = arith.constant 0 : i32
    %c0_i32_1 = arith.constant 0 : i32
    return %arg0, %c0_i32, %c0_i32_0 : i32, i32, i32
  }
  func.func @transform_2(%arg0: i32) -> (i32, i32) {
    %c0_i32 = arith.constant 0 : i32
    %c0_i32_0 = arith.constant 0 : i32
    %c0_i32_1 = arith.constant 0 : i32
    return %c0_i32, %c0_i32_0 : i32, i32
  }
  func.func @transform_3(%arg0: i32) -> (i32, i32) {
    %c0_i32 = arith.constant 0 : i32
    %c0_i32_0 = arith.constant 0 : i32
    %c0_i32_1 = arith.constant 0 : i32
    return %c0_i32, %c0_i32_0 : i32, i32
  }
  func.func @transform_4(%arg0: i32) -> (i32, i32) {
    %c0_i32 = arith.constant 0 : i32
    %c0_i32_0 = arith.constant 0 : i32
    %c0_i32_1 = arith.constant 0 : i32
    return %c0_i32, %c0_i32_0 : i32, i32
  }
  func.func @transform_5(%arg0: i32) -> (i32, i32) {
    %c0_i32 = arith.constant 0 : i32
    %c0_i32_0 = arith.constant 0 : i32
    %c0_i32_1 = arith.constant 0 : i32
    return %c0_i32, %c0_i32_0 : i32, i32
  }
  func.func @transform_6(%arg0: i32) -> (i32, i32) {
    %c0_i32 = arith.constant 0 : i32
    %c0_i32_0 = arith.constant 0 : i32
    %c0_i32_1 = arith.constant 0 : i32
    return %c0_i32, %c0_i32_0 : i32, i32
  }
  func.func @transform_7(%arg0: i32) -> (i32, i32) {
    %c0_i32 = arith.constant 0 : i32
    %c0_i32_0 = arith.constant 0 : i32
    %c0_i32_1 = arith.constant 0 : i32
    return %c0_i32, %c0_i32_0 : i32, i32
  }
  func.func @transform_8(%arg0: i32) -> (i32, i32) {
    %c0_i32 = arith.constant 0 : i32
    %c0_i32_0 = arith.constant 0 : i32
    %c0_i32_1 = arith.constant 0 : i32
    return %c0_i32, %c0_i32_0 : i32, i32
  }
  func.func @transform_9(%arg0: i32) -> (i32, i32) {
    %c0_i32 = arith.constant 0 : i32
    %c0_i32_0 = arith.constant 0 : i32
    %c0_i32_1 = arith.constant 0 : i32
    return %c0_i32, %c0_i32_0 : i32, i32
  }
  func.func @transform_10(%arg0: i32) -> (i32, i32, i32) {
    %c0_i32 = arith.constant 0 : i32
    %c0_i32_0 = arith.constant 0 : i32
    %c0_i32_1 = arith.constant 0 : i32
    return %arg0, %c0_i32, %c0_i32_0 : i32, i32, i32
  }
}

module attributes {stable_mosaic.version = 11 : i64} {
  func.func @_mha_sublayer_kernel(%arg0: i32, %arg1: memref<1x8x32xf32, #tpu.memory_space<vmem>>, %arg2: memref<1x9x32xf32, #tpu.memory_space<vmem>>, %arg3: memref<32x32xf32, #tpu.memory_space<vmem>>, %arg4: memref<1x32xf32, #tpu.memory_space<vmem>>, %arg5: memref<32x64xf32, #tpu.memory_space<vmem>>, %arg6: memref<1x64xf32, #tpu.memory_space<vmem>>, %arg7: memref<32x32xf32, #tpu.memory_space<vmem>>, %arg8: memref<1x32xf32, #tpu.memory_space<vmem>>, %arg9: memref<1x32xf32, #tpu.memory_space<vmem>>, %arg10: memref<1x32xf32, #tpu.memory_space<vmem>>, %arg11: memref<1x8x32xf32, #tpu.memory_space<vmem>>) attributes {dimension_semantics = [#tpu.dimension_semantics<parallel>], iteration_bounds = array<i64: 2>, scalar_prefetch = 0 : i64, scratch_operands = 0 : i64, tpu.core_type = #tpu.core_type<tc>, window_params = [{transform_indices = @transform_0, window_bounds = array<i64: 1, 8, 32>}, {transform_indices = @transform_1, window_bounds = array<i64: 1, 9, 32>}, {pipeline_mode = #tpu.pipeline_mode<synchronous>, transform_indices = @transform_2, window_bounds = array<i64: 32, 32>}, {pipeline_mode = #tpu.pipeline_mode<synchronous>, transform_indices = @transform_3, window_bounds = array<i64: 1, 32>}, {pipeline_mode = #tpu.pipeline_mode<synchronous>, transform_indices = @transform_4, window_bounds = array<i64: 32, 64>}, {pipeline_mode = #tpu.pipeline_mode<synchronous>, transform_indices = @transform_5, window_bounds = array<i64: 1, 64>}, {pipeline_mode = #tpu.pipeline_mode<synchronous>, transform_indices = @transform_6, window_bounds = array<i64: 32, 32>}, {pipeline_mode = #tpu.pipeline_mode<synchronous>, transform_indices = @transform_7, window_bounds = array<i64: 1, 32>}, {pipeline_mode = #tpu.pipeline_mode<synchronous>, transform_indices = @transform_8, window_bounds = array<i64: 1, 32>}, {pipeline_mode = #tpu.pipeline_mode<synchronous>, transform_indices = @transform_9, window_bounds = array<i64: 1, 32>}, {transform_indices = @transform_10, window_bounds = array<i64: 1, 8, 32>}]} {
    %c0 = arith.constant 0 : index
    %c0_0 = arith.constant 0 : index
    %c0_1 = arith.constant 0 : index
    %0 = vector.load %arg1[%c0, %c0_0, %c0_1] : memref<1x8x32xf32, #tpu.memory_space<vmem>>, vector<1x8x32xf32>
    %1 = vector.shape_cast %0 : vector<1x8x32xf32> to vector<8x32xf32>
    %c0_2 = arith.constant 0 : index
    %c0_3 = arith.constant 0 : index
    %c0_4 = arith.constant 0 : index
    %2 = vector.load %arg2[%c0_2, %c0_3, %c0_4] : memref<1x9x32xf32, #tpu.memory_space<vmem>>, vector<1x9x32xf32>
    %3 = vector.shape_cast %2 : vector<1x9x32xf32> to vector<9x32xf32>
    %c0_5 = arith.constant 0 : index
    %c0_6 = arith.constant 0 : index
    %4 = vector.load %arg3[%c0_5, %c0_6] : memref<32x32xf32, #tpu.memory_space<vmem>>, vector<32x32xf32>
    %cst = arith.constant dense<0.000000e+00> : vector<8x32xf32>
    %5 = tpu.matmul %1, %4, %cst {dimension_numbers = #tpu.dot_dimension_numbers<[1], [0], [0], [1], [0, 0, 1, 1], [], []>} : vector<8x32xf32>, vector<32x32xf32>, vector<8x32xf32> -> vector<8x32xf32>
    %c0_7 = arith.constant 0 : index
    %c0_8 = arith.constant 0 : index
    %6 = vector.load %arg4[%c0_7, %c0_8] : memref<1x32xf32, #tpu.memory_space<vmem>>, vector<1x32xf32>
    %7 = vector.broadcast %6 : vector<1x32xf32> to vector<8x32xf32>
    %8 = arith.addf %5, %7 : vector<8x32xf32>
    %c0_9 = arith.constant 0 : index
    %c0_10 = arith.constant 0 : index
    %9 = vector.load %arg5[%c0_9, %c0_10] : memref<32x64xf32, #tpu.memory_space<vmem>>, vector<32x64xf32>
    %cst_11 = arith.constant dense<0.000000e+00> : vector<9x64xf32>
    %10 = tpu.matmul %3, %9, %cst_11 {dimension_numbers = #tpu.dot_dimension_numbers<[1], [0], [0], [1], [0, 0, 1, 1], [], []>} : vector<9x32xf32>, vector<32x64xf32>, vector<9x64xf32> -> vector<9x64xf32>
    %c0_12 = arith.constant 0 : index
    %c0_13 = arith.constant 0 : index
    %11 = vector.load %arg6[%c0_12, %c0_13] : memref<1x64xf32, #tpu.memory_space<vmem>>, vector<1x64xf32>
    %12 = vector.broadcast %11 : vector<1x64xf32> to vector<9x64xf32>
    %13 = arith.addf %10, %12 : vector<9x64xf32>
    %14 = vector.extract_strided_slice %13 {offsets = [0, 0], sizes = [9, 32], strides = [1, 1]} : vector<9x64xf32> to vector<9x32xf32>
    %15 = vector.extract_strided_slice %13 {offsets = [0, 32], sizes = [9, 32], strides = [1, 1]} : vector<9x64xf32> to vector<9x32xf32>
    %c0_14 = arith.constant 0 : index
    %c0_15 = arith.constant 0 : index
    %16 = vector.load %arg7[%c0_14, %c0_15] : memref<32x32xf32, #tpu.memory_space<vmem>>, vector<32x32xf32>
    %cst_16 = arith.constant 0.000000e+00 : f32
    %17 = vector.broadcast %cst_16 : f32 to vector<8x32xf32>
    %18 = vector.extract_strided_slice %8 {offsets = [0, 0], sizes = [8, 8], strides = [1, 1]} : vector<8x32xf32> to vector<8x8xf32>
    %19 = vector.extract_strided_slice %14 {offsets = [0, 0], sizes = [9, 8], strides = [1, 1]} : vector<9x32xf32> to vector<9x8xf32>
    %20 = vector.extract_strided_slice %15 {offsets = [0, 0], sizes = [9, 8], strides = [1, 1]} : vector<9x32xf32> to vector<9x8xf32>
    %cst_17 = arith.constant dense<0.000000e+00> : vector<8x9xf32>
    %21 = tpu.matmul %18, %19, %cst_17 {dimension_numbers = #tpu.dot_dimension_numbers<[1], [1], [0], [0], [0, 0, 1, 0], [], []>} : vector<8x8xf32>, vector<9x8xf32>, vector<8x9xf32> -> vector<8x9xf32>
    %cst_18 = arith.constant 0.353553385 : f32
    %22 = vector.broadcast %cst_18 : f32 to vector<8x9xf32>
    %23 = arith.mulf %21, %22 : vector<8x9xf32>
    %cst_19 = arith.constant dense<0xFF800000> : vector<8xf32>
    %24 = vector.multi_reduction <maximumf>, %23, %cst_19 [1] : vector<8x9xf32> to vector<8xf32>
    %25 = vector.shape_cast %24 : vector<8xf32> to vector<8x1xf32>
    %26 = vector.broadcast %25 : vector<8x1xf32> to vector<8x9xf32>
    %27 = arith.subf %23, %26 : vector<8x9xf32>
    %28 = math.exp %27 : vector<8x9xf32>
    %cst_20 = arith.constant dense<0.000000e+00> : vector<8xf32>
    %29 = vector.multi_reduction <add>, %28, %cst_20 [1] : vector<8x9xf32> to vector<8xf32>
    %30 = vector.shape_cast %29 : vector<8xf32> to vector<8x1xf32>
    %31 = tpu.reciprocal %30 {approx = true} : vector<8x1xf32> -> vector<8x1xf32>
    %32 = vector.broadcast %31 : vector<8x1xf32> to vector<8x9xf32>
    %33 = arith.mulf %28, %32 : vector<8x9xf32>
    %cst_21 = arith.constant dense<0.000000e+00> : vector<8x8xf32>
    %34 = tpu.matmul %33, %20, %cst_21 {dimension_numbers = #tpu.dot_dimension_numbers<[1], [0], [0], [1], [0, 0, 1, 1], [], []>} : vector<8x9xf32>, vector<9x8xf32>, vector<8x8xf32> -> vector<8x8xf32>
    %35 = vector.extract_strided_slice %16 {offsets = [0, 0], sizes = [8, 32], strides = [1, 1]} : vector<32x32xf32> to vector<8x32xf32>
    %cst_22 = arith.constant dense<0.000000e+00> : vector<8x32xf32>
    %36 = tpu.matmul %34, %35, %cst_22 {dimension_numbers = #tpu.dot_dimension_numbers<[1], [0], [0], [1], [0, 0, 1, 1], [], []>} : vector<8x8xf32>, vector<8x32xf32>, vector<8x32xf32> -> vector<8x32xf32>
    %37 = arith.addf %17, %36 : vector<8x32xf32>
    %38 = vector.extract_strided_slice %8 {offsets = [0, 8], sizes = [8, 8], strides = [1, 1]} : vector<8x32xf32> to vector<8x8xf32>
    %39 = vector.extract_strided_slice %14 {offsets = [0, 8], sizes = [9, 8], strides = [1, 1]} : vector<9x32xf32> to vector<9x8xf32>
    %40 = vector.extract_strided_slice %15 {offsets = [0, 8], sizes = [9, 8], strides = [1, 1]} : vector<9x32xf32> to vector<9x8xf32>
    %cst_23 = arith.constant dense<0.000000e+00> : vector<8x9xf32>
    %41 = tpu.matmul %38, %39, %cst_23 {dimension_numbers = #tpu.dot_dimension_numbers<[1], [1], [0], [0], [0, 0, 1, 0], [], []>} : vector<8x8xf32>, vector<9x8xf32>, vector<8x9xf32> -> vector<8x9xf32>
    %cst_24 = arith.constant 0.353553385 : f32
    %42 = vector.broadcast %cst_24 : f32 to vector<8x9xf32>
    %43 = arith.mulf %41, %42 : vector<8x9xf32>
    %cst_25 = arith.constant dense<0xFF800000> : vector<8xf32>
    %44 = vector.multi_reduction <maximumf>, %43, %cst_25 [1] : vector<8x9xf32> to vector<8xf32>
    %45 = vector.shape_cast %44 : vector<8xf32> to vector<8x1xf32>
    %46 = vector.broadcast %45 : vector<8x1xf32> to vector<8x9xf32>
    %47 = arith.subf %43, %46 : vector<8x9xf32>
    %48 = math.exp %47 : vector<8x9xf32>
    %cst_26 = arith.constant dense<0.000000e+00> : vector<8xf32>
    %49 = vector.multi_reduction <add>, %48, %cst_26 [1] : vector<8x9xf32> to vector<8xf32>
    %50 = vector.shape_cast %49 : vector<8xf32> to vector<8x1xf32>
    %51 = tpu.reciprocal %50 {approx = true} : vector<8x1xf32> -> vector<8x1xf32>
    %52 = vector.broadcast %51 : vector<8x1xf32> to vector<8x9xf32>
    %53 = arith.mulf %48, %52 : vector<8x9xf32>
    %cst_27 = arith.constant dense<0.000000e+00> : vector<8x8xf32>
    %54 = tpu.matmul %53, %40, %cst_27 {dimension_numbers = #tpu.dot_dimension_numbers<[1], [0], [0], [1], [0, 0, 1, 1], [], []>} : vector<8x9xf32>, vector<9x8xf32>, vector<8x8xf32> -> vector<8x8xf32>
    %55 = vector.extract_strided_slice %16 {offsets = [8, 0], sizes = [8, 32], strides = [1, 1]} : vector<32x32xf32> to vector<8x32xf32>
    %cst_28 = arith.constant dense<0.000000e+00> : vector<8x32xf32>
    %56 = tpu.matmul %54, %55, %cst_28 {dimension_numbers = #tpu.dot_dimension_numbers<[1], [0], [0], [1], [0, 0, 1, 1], [], []>} : vector<8x8xf32>, vector<8x32xf32>, vector<8x32xf32> -> vector<8x32xf32>
    %57 = arith.addf %37, %56 : vector<8x32xf32>
    %58 = vector.extract_strided_slice %8 {offsets = [0, 16], sizes = [8, 8], strides = [1, 1]} : vector<8x32xf32> to vector<8x8xf32>
    %59 = vector.extract_strided_slice %14 {offsets = [0, 16], sizes = [9, 8], strides = [1, 1]} : vector<9x32xf32> to vector<9x8xf32>
    %60 = vector.extract_strided_slice %15 {offsets = [0, 16], sizes = [9, 8], strides = [1, 1]} : vector<9x32xf32> to vector<9x8xf32>
    %cst_29 = arith.constant dense<0.000000e+00> : vector<8x9xf32>
    %61 = tpu.matmul %58, %59, %cst_29 {dimension_numbers = #tpu.dot_dimension_numbers<[1], [1], [0], [0], [0, 0, 1, 0], [], []>} : vector<8x8xf32>, vector<9x8xf32>, vector<8x9xf32> -> vector<8x9xf32>
    %cst_30 = arith.constant 0.353553385 : f32
    %62 = vector.broadcast %cst_30 : f32 to vector<8x9xf32>
    %63 = arith.mulf %61, %62 : vector<8x9xf32>
    %cst_31 = arith.constant dense<0xFF800000> : vector<8xf32>
    %64 = vector.multi_reduction <maximumf>, %63, %cst_31 [1] : vector<8x9xf32> to vector<8xf32>
    %65 = vector.shape_cast %64 : vector<8xf32> to vector<8x1xf32>
    %66 = vector.broadcast %65 : vector<8x1xf32> to vector<8x9xf32>
    %67 = arith.subf %63, %66 : vector<8x9xf32>
    %68 = math.exp %67 : vector<8x9xf32>
    %cst_32 = arith.constant dense<0.000000e+00> : vector<8xf32>
    %69 = vector.multi_reduction <add>, %68, %cst_32 [1] : vector<8x9xf32> to vector<8xf32>
    %70 = vector.shape_cast %69 : vector<8xf32> to vector<8x1xf32>
    %71 = tpu.reciprocal %70 {approx = true} : vector<8x1xf32> -> vector<8x1xf32>
    %72 = vector.broadcast %71 : vector<8x1xf32> to vector<8x9xf32>
    %73 = arith.mulf %68, %72 : vector<8x9xf32>
    %cst_33 = arith.constant dense<0.000000e+00> : vector<8x8xf32>
    %74 = tpu.matmul %73, %60, %cst_33 {dimension_numbers = #tpu.dot_dimension_numbers<[1], [0], [0], [1], [0, 0, 1, 1], [], []>} : vector<8x9xf32>, vector<9x8xf32>, vector<8x8xf32> -> vector<8x8xf32>
    %75 = vector.extract_strided_slice %16 {offsets = [16, 0], sizes = [8, 32], strides = [1, 1]} : vector<32x32xf32> to vector<8x32xf32>
    %cst_34 = arith.constant dense<0.000000e+00> : vector<8x32xf32>
    %76 = tpu.matmul %74, %75, %cst_34 {dimension_numbers = #tpu.dot_dimension_numbers<[1], [0], [0], [1], [0, 0, 1, 1], [], []>} : vector<8x8xf32>, vector<8x32xf32>, vector<8x32xf32> -> vector<8x32xf32>
    %77 = arith.addf %57, %76 : vector<8x32xf32>
    %78 = vector.extract_strided_slice %8 {offsets = [0, 24], sizes = [8, 8], strides = [1, 1]} : vector<8x32xf32> to vector<8x8xf32>
    %79 = vector.extract_strided_slice %14 {offsets = [0, 24], sizes = [9, 8], strides = [1, 1]} : vector<9x32xf32> to vector<9x8xf32>
    %80 = vector.extract_strided_slice %15 {offsets = [0, 24], sizes = [9, 8], strides = [1, 1]} : vector<9x32xf32> to vector<9x8xf32>
    %cst_35 = arith.constant dense<0.000000e+00> : vector<8x9xf32>
    %81 = tpu.matmul %78, %79, %cst_35 {dimension_numbers = #tpu.dot_dimension_numbers<[1], [1], [0], [0], [0, 0, 1, 0], [], []>} : vector<8x8xf32>, vector<9x8xf32>, vector<8x9xf32> -> vector<8x9xf32>
    %cst_36 = arith.constant 0.353553385 : f32
    %82 = vector.broadcast %cst_36 : f32 to vector<8x9xf32>
    %83 = arith.mulf %81, %82 : vector<8x9xf32>
    %cst_37 = arith.constant dense<0xFF800000> : vector<8xf32>
    %84 = vector.multi_reduction <maximumf>, %83, %cst_37 [1] : vector<8x9xf32> to vector<8xf32>
    %85 = vector.shape_cast %84 : vector<8xf32> to vector<8x1xf32>
    %86 = vector.broadcast %85 : vector<8x1xf32> to vector<8x9xf32>
    %87 = arith.subf %83, %86 : vector<8x9xf32>
    %88 = math.exp %87 : vector<8x9xf32>
    %cst_38 = arith.constant dense<0.000000e+00> : vector<8xf32>
    %89 = vector.multi_reduction <add>, %88, %cst_38 [1] : vector<8x9xf32> to vector<8xf32>
    %90 = vector.shape_cast %89 : vector<8xf32> to vector<8x1xf32>
    %91 = tpu.reciprocal %90 {approx = true} : vector<8x1xf32> -> vector<8x1xf32>
    %92 = vector.broadcast %91 : vector<8x1xf32> to vector<8x9xf32>
    %93 = arith.mulf %88, %92 : vector<8x9xf32>
    %cst_39 = arith.constant dense<0.000000e+00> : vector<8x8xf32>
    %94 = tpu.matmul %93, %80, %cst_39 {dimension_numbers = #tpu.dot_dimension_numbers<[1], [0], [0], [1], [0, 0, 1, 1], [], []>} : vector<8x9xf32>, vector<9x8xf32>, vector<8x8xf32> -> vector<8x8xf32>
    %95 = vector.extract_strided_slice %16 {offsets = [24, 0], sizes = [8, 32], strides = [1, 1]} : vector<32x32xf32> to vector<8x32xf32>
    %cst_40 = arith.constant dense<0.000000e+00> : vector<8x32xf32>
    %96 = tpu.matmul %94, %95, %cst_40 {dimension_numbers = #tpu.dot_dimension_numbers<[1], [0], [0], [1], [0, 0, 1, 1], [], []>} : vector<8x8xf32>, vector<8x32xf32>, vector<8x32xf32> -> vector<8x32xf32>
    %97 = arith.addf %77, %96 : vector<8x32xf32>
    %98 = arith.addf %1, %97 : vector<8x32xf32>
    %c0_41 = arith.constant 0 : index
    %c0_42 = arith.constant 0 : index
    %99 = vector.load %arg8[%c0_41, %c0_42] : memref<1x32xf32, #tpu.memory_space<vmem>>, vector<1x32xf32>
    %100 = vector.broadcast %99 : vector<1x32xf32> to vector<8x32xf32>
    %101 = arith.addf %98, %100 : vector<8x32xf32>
    %cst_43 = arith.constant dense<0.000000e+00> : vector<8xf32>
    %102 = vector.multi_reduction <add>, %101, %cst_43 [1] : vector<8x32xf32> to vector<8xf32>
    %103 = vector.shape_cast %102 : vector<8xf32> to vector<8x1xf32>
    %cst_44 = arith.constant 3.200000e+01 : f32
    %104 = vector.broadcast %cst_44 : f32 to vector<8x1xf32>
    %105 = arith.divf %103, %104 : vector<8x1xf32>
    %106 = vector.broadcast %105 : vector<8x1xf32> to vector<8x32xf32>
    %107 = arith.subf %101, %106 : vector<8x32xf32>
    %108 = arith.mulf %107, %107 : vector<8x32xf32>
    %cst_45 = arith.constant dense<0.000000e+00> : vector<8xf32>
    %109 = vector.multi_reduction <add>, %108, %cst_45 [1] : vector<8x32xf32> to vector<8xf32>
    %110 = vector.shape_cast %109 : vector<8xf32> to vector<8x1xf32>
    %cst_46 = arith.constant 3.200000e+01 : f32
    %111 = vector.broadcast %cst_46 : f32 to vector<8x1xf32>
    %112 = arith.divf %110, %111 : vector<8x1xf32>
    %113 = vector.broadcast %105 : vector<8x1xf32> to vector<8x32xf32>
    %114 = arith.subf %101, %113 : vector<8x32xf32>
    %cst_47 = arith.constant 9.99999974E-6 : f32
    %115 = vector.broadcast %cst_47 : f32 to vector<8x1xf32>
    %116 = arith.addf %112, %115 : vector<8x1xf32>
    %117 = math.rsqrt %116 : vector<8x1xf32>
    %118 = vector.broadcast %117 : vector<8x1xf32> to vector<8x32xf32>
    %119 = arith.mulf %114, %118 : vector<8x32xf32>
    %c0_48 = arith.constant 0 : index
    %c0_49 = arith.constant 0 : index
    %120 = vector.load %arg9[%c0_48, %c0_49] : memref<1x32xf32, #tpu.memory_space<vmem>>, vector<1x32xf32>
    %121 = vector.broadcast %120 : vector<1x32xf32> to vector<8x32xf32>
    %122 = arith.mulf %119, %121 : vector<8x32xf32>
    %c0_50 = arith.constant 0 : index
    %c0_51 = arith.constant 0 : index
    %123 = vector.load %arg10[%c0_50, %c0_51] : memref<1x32xf32, #tpu.memory_space<vmem>>, vector<1x32xf32>
    %124 = vector.broadcast %123 : vector<1x32xf32> to vector<8x32xf32>
    %125 = arith.addf %122, %124 : vector<8x32xf32>
    %c0_52 = arith.constant 0 : index
    %c0_53 = arith.constant 0 : index
    %c0_54 = arith.constant 0 : index
    %126 = vector.load %arg11[%c0_52, %c0_53, %c0_54] : memref<1x8x32xf32, #tpu.memory_space<vmem>>, vector<1x8x32xf32>
    %127 = vector.shape_cast %126 : vector<1x8x32xf32> to vector<8x32xf32>
    %128 = vector.shape_cast %125 : vector<8x32xf32> to vector<1x8x32xf32>
    tpu.vector_store %arg11[%c0_52, %c0_53, %c0_54], %128 {strides = array<i32>} : memref<1x8x32xf32, #tpu.memory_space<vmem>>, vector<1x8x32xf32>,
    return
  }
  func.func @transform_0(%arg0: i32) -> (i32, i32, i32) {
    %c0_i32 = arith.constant 0 : i32
    %c0_i32_0 = arith.constant 0 : i32
    %c0_i32_1 = arith.constant 0 : i32
    return %arg0, %c0_i32, %c0_i32_0 : i32, i32, i32
  }
  func.func @transform_1(%arg0: i32) -> (i32, i32, i32) {
    %c0_i32 = arith.constant 0 : i32
    %c0_i32_0 = arith.constant 0 : i32
    %c0_i32_1 = arith.constant 0 : i32
    return %arg0, %c0_i32, %c0_i32_0 : i32, i32, i32
  }
  func.func @transform_2(%arg0: i32) -> (i32, i32) {
    %c0_i32 = arith.constant 0 : i32
    %c0_i32_0 = arith.constant 0 : i32
    %c0_i32_1 = arith.constant 0 : i32
    return %c0_i32, %c0_i32_0 : i32, i32
  }
  func.func @transform_3(%arg0: i32) -> (i32, i32) {
    %c0_i32 = arith.constant 0 : i32
    %c0_i32_0 = arith.constant 0 : i32
    %c0_i32_1 = arith.constant 0 : i32
    return %c0_i32, %c0_i32_0 : i32, i32
  }
  func.func @transform_4(%arg0: i32) -> (i32, i32) {
    %c0_i32 = arith.constant 0 : i32
    %c0_i32_0 = arith.constant 0 : i32
    %c0_i32_1 = arith.constant 0 : i32
    return %c0_i32, %c0_i32_0 : i32, i32
  }
  func.func @transform_5(%arg0: i32) -> (i32, i32) {
    %c0_i32 = arith.constant 0 : i32
    %c0_i32_0 = arith.constant 0 : i32
    %c0_i32_1 = arith.constant 0 : i32
    return %c0_i32, %c0_i32_0 : i32, i32
  }
  func.func @transform_6(%arg0: i32) -> (i32, i32) {
    %c0_i32 = arith.constant 0 : i32
    %c0_i32_0 = arith.constant 0 : i32
    %c0_i32_1 = arith.constant 0 : i32
    return %c0_i32, %c0_i32_0 : i32, i32
  }
  func.func @transform_7(%arg0: i32) -> (i32, i32) {
    %c0_i32 = arith.constant 0 : i32
    %c0_i32_0 = arith.constant 0 : i32
    %c0_i32_1 = arith.constant 0 : i32
    return %c0_i32, %c0_i32_0 : i32, i32
  }
  func.func @transform_8(%arg0: i32) -> (i32, i32) {
    %c0_i32 = arith.constant 0 : i32
    %c0_i32_0 = arith.constant 0 : i32
    %c0_i32_1 = arith.constant 0 : i32
    return %c0_i32, %c0_i32_0 : i32, i32
  }
  func.func @transform_9(%arg0: i32) -> (i32, i32) {
    %c0_i32 = arith.constant 0 : i32
    %c0_i32_0 = arith.constant 0 : i32
    %c0_i32_1 = arith.constant 0 : i32
    return %c0_i32, %c0_i32_0 : i32, i32
  }
  func.func @transform_10(%arg0: i32) -> (i32, i32, i32) {
    %c0_i32 = arith.constant 0 : i32
    %c0_i32_0 = arith.constant 0 : i32
    %c0_i32_1 = arith.constant 0 : i32
    return %arg0, %c0_i32, %c0_i32_0 : i32, i32, i32
  }
}

module attributes {stable_mosaic.version = 11 : i64} {
  func.func @_out_proj_kernel(%arg0: i32, %arg1: memref<16x32xf32, #tpu.memory_space<vmem>>, %arg2: memref<32x128xf32, #tpu.memory_space<vmem>>, %arg3: memref<1x128xf32, #tpu.memory_space<vmem>>, %arg4: memref<16x128xf32, #tpu.memory_space<vmem>>) attributes {dimension_semantics = [#tpu.dimension_semantics<arbitrary>], iteration_bounds = array<i64: 1>, scalar_prefetch = 0 : i64, scratch_operands = 0 : i64, tpu.core_type = #tpu.core_type<tc>, window_params = [{pipeline_mode = #tpu.pipeline_mode<synchronous>, transform_indices = @transform_0, window_bounds = array<i64: 16, 32>}, {pipeline_mode = #tpu.pipeline_mode<synchronous>, transform_indices = @transform_1, window_bounds = array<i64: 32, 128>}, {pipeline_mode = #tpu.pipeline_mode<synchronous>, transform_indices = @transform_2, window_bounds = array<i64: 1, 128>}, {pipeline_mode = #tpu.pipeline_mode<synchronous>, transform_indices = @transform_3, window_bounds = array<i64: 16, 128>}]} {
    %c0 = arith.constant 0 : index
    %c0_0 = arith.constant 0 : index
    %0 = vector.load %arg1[%c0, %c0_0] : memref<16x32xf32, #tpu.memory_space<vmem>>, vector<16x32xf32>
    %c0_1 = arith.constant 0 : index
    %c0_2 = arith.constant 0 : index
    %1 = vector.load %arg2[%c0_1, %c0_2] : memref<32x128xf32, #tpu.memory_space<vmem>>, vector<32x128xf32>
    %cst = arith.constant dense<0.000000e+00> : vector<16x128xf32>
    %2 = tpu.matmul %0, %1, %cst {dimension_numbers = #tpu.dot_dimension_numbers<[1], [0], [0], [1], [0, 0, 1, 1], [], []>} : vector<16x32xf32>, vector<32x128xf32>, vector<16x128xf32> -> vector<16x128xf32>
    %c0_3 = arith.constant 0 : index
    %c0_4 = arith.constant 0 : index
    %3 = vector.load %arg3[%c0_3, %c0_4] : memref<1x128xf32, #tpu.memory_space<vmem>>, vector<1x128xf32>
    %4 = vector.broadcast %3 : vector<1x128xf32> to vector<16x128xf32>
    %5 = arith.addf %2, %4 : vector<16x128xf32>
    %c0_5 = arith.constant 0 : index
    %c0_6 = arith.constant 0 : index
    %6 = vector.load %arg4[%c0_5, %c0_6] : memref<16x128xf32, #tpu.memory_space<vmem>>, vector<16x128xf32>
    tpu.vector_store %arg4[%c0_5, %c0_6], %5 {strides = array<i32>} : memref<16x128xf32, #tpu.memory_space<vmem>>, vector<16x128xf32>,
    return
  }
  func.func @transform_0(%arg0: i32) -> (i32, i32) {
    %c0_i32 = arith.constant 0 : i32
    %c0_i32_0 = arith.constant 0 : i32
    %c0_i32_1 = arith.constant 0 : i32
    return %c0_i32, %c0_i32_0 : i32, i32
  }
  func.func @transform_1(%arg0: i32) -> (i32, i32) {
    %c0_i32 = arith.constant 0 : i32
    %c0_i32_0 = arith.constant 0 : i32
    %c0_i32_1 = arith.constant 0 : i32
    return %c0_i32, %c0_i32_0 : i32, i32
  }
  func.func @transform_2(%arg0: i32) -> (i32, i32) {
    %c0_i32 = arith.constant 0 : i32
    %c0_i32_0 = arith.constant 0 : i32
    %c0_i32_1 = arith.constant 0 : i32
    return %c0_i32, %c0_i32_0 : i32, i32
  }
  func.func @transform_3(%arg0: i32) -> (i32, i32) {
    %c0_i32 = arith.constant 0 : i32
    %c0_i32_0 = arith.constant 0 : i32
    %c0_i32_1 = arith.constant 0 : i32
    return %c0_i32, %c0_i32_0 : i32, i32
  }
}

</mosaic_0001>

<bundles_post_ra>
// kernel: forward.12
= control target key start
LH: loop header
LB: loop body
LE: loop exit
PB: predicated region body
PF: predicated region fallthrough
CT: control target
= control target key end

     0   :  { %s585_s24 = smov 0   ;;  %s665_s0 = inlined_call_operand.vmem [shape: f32[2,9,32], index: 0, kind: input, shape index: {}]   ;;  %s666_s1 = inlined_call_operand.vmem [shape: f32[32,64], index: 1, kind: input, shape index: {}]   ;;  %s667_s2 = inlined_call_operand.vmem [shape: f32[1,64], index: 2, kind: input, shape index: {}]   ;;  %s668_s3 = inlined_call_operand.vmem [shape: f32[64,32], index: 3, kind: input, shape index: {}]   ;;  %s669_s4 = inlined_call_operand.vmem [shape: f32[1,32], index: 4, kind: input, shape index: {}]   ;;  %s670_s5 = inlined_call_operand.vmem [shape: f32[1,32], index: 5, kind: input, shape index: {}]   ;;  %s671_s6 = inlined_call_operand.vmem [shape: f32[1,32], index: 6, kind: input, shape index: {}]   ;;  %s672_s7 = inlined_call_operand.vmem [shape: f32[2,9,32], index: 7, kind: output, shape index: {}]  }
   0x1 LB: > { %s488_s25 = sadd.s32 4294967295, %s542_s24   ;;  %p492_p0 = scmp.ge.s32.totalorder %s542_s24, 1  ;;  %s542_s24 = sphi %s585_s24, %s17_s24  }
   0x2   : > { %p237_p1 = scmp.lt.s32.totalorder %s542_s24, 3 }
   0x4   : > { %p238_p2 = pnand %p492_p0, %p237_p1 }
   0x5   : > { %p269_p3 = scmp.lt.s32.totalorder (!%p238_p2), %s488_s25, 1 }
   0x6   : > { %241 = sbr.rel (%p238_p2) target bundleno = 560 (0x230), region = 48 }
   0xb   : > { %v284_v0 = vld [vmem:[%s666_s1 + $0x18] sm:$0xff]  ;;  %v283_v1 = vld [vmem:[%s666_s1 + $0x10] sm:$0xff]  ;;  %v282_v4 = vld [vmem:[%s666_s1 + $0x8] sm:$0xff]  ;;  %s674_s25 = smov (!%p269_p3, %s488_s25), 1  ;;  %vm289_vm0 = vcmask 261120   ;;  %vm329_vm1 = vcmask 523264  }
   0xc   : > { %308 = vmatpush.msra.mxu0 %v284_v0  ;;  %505 = vmatpush.msra.mxu3 %v284_v0  ;;  %v328_v2 = vld [vmem:[%s668_s3 + $0x38] sm:$0xff]  ;;  %v327_v3 = vld [vmem:[%s668_s3 + $0x30] sm:$0xff]  ;;  %v326_v5 = vld [vmem:[%s668_s3 + $0x28] sm:$0xff]  ;;  %s503_s17 = sshll.u32 %s674_s25, 4  ;;  %vm370_vm2 = vcmask 253952   ;;  %v544_v30 = vmov 32.0  }
   0xd   : > { %344 = vmatpush.msra.mxu1 %v328_v2  ;;  %509 = vmatpush.msra.mxu2 %v328_v2  ;;  %v281_v6 = vld [vmem:[%s666_s1] sm:$0xff]  ;;  %s273_s20 = scalar_lea.vmem %s665_s0, %s503_s17  ;;  %v324_v10 = vld [vmem:[%s668_s3 + $0x18] sm:$0xff]  ;;  %v323_v11 = vld [vmem:[%s668_s3 + $0x10] sm:$0xff]  ;;  %530 = vrcp.f32 %v544_v30  ;;  %s278_s21 = scalar_lea.vmem %s672_s7, %s503_s17 }
   0xe   : > { %309 = vmatpush.msra.mxu0 %v283_v1  ;;  %506 = vmatpush.msra.mxu3 %v283_v1  ;;  %v279_v7 = vld [vmem:[%s273_s20] sm:$0xff]  ;;  %v280_v8 = vld [vmem:[%s273_s20 + $0x8] sm:$0x1] }
   0xf   : > { %345 = vmatpush.msra.mxu1 %v327_v3  ;;  %510 = vmatpush.msra.mxu2 %v327_v3  ;;  %v325_v9 = vld [vmem:[%s668_s3 + $0x20] sm:$0xff]  ;;  %v322_v12 = vld [vmem:[%s668_s3 + $0x8] sm:$0xff] }
  0x10   : > { %310 = vmatpush.msra.mxu0 %v282_v4  ;;  %507 = vmatpush.msra.mxu3 %v282_v4  ;;  %v321_v13 = vld [vmem:[%s668_s3] sm:$0xff] }
  0x11   : > { %346 = vmatpush.msra.mxu1 %v326_v5  ;;  %511 = vmatpush.msra.mxu2 %v326_v5  ;;  %v526_v14 = vld [vmem:[%s667_s2] ss:$0 sm:$0xff] }
  0x12   : > { %311 = vmatpush.msra.mxu0 %v281_v6  ;;  %508 = vmatpush.msra.mxu3 %v281_v6  ;;  %v527_v21 = vld [vmem:[%s669_s4] ss:$0 sm:$0xff] }
  0x13   : > { %497 = vmatmul.msk.f32.vlgmr.msra.gmra.mxu0 %vm289_vm0, %v279_v7  ;;  %498 = vmatmul.msk.f32.vlgmr.msra.gmra.mxu3 %vm289_vm0, %v280_v8  ;;  %v531_v31 = vpop.eup %530  ;;  %v528_v59 = vld [vmem:[%s670_s5] ss:$0 sm:$0xff] }
  0x14   : > { %347 = vmatpush.msra.mxu1 %v325_v9  ;;  %512 = vmatpush.msra.mxu2 %v325_v9  ;;  %v375_v32 = vmul.f32 32.0, %v531_v31  ;;  %vm379_vm3 = vweird.f32 %v531_v31  ;;  %v529_v62 = vld [vmem:[%s671_s6] ss:$0 sm:$0xff] }
  0x16   : > { %348 = vmatpush.msra.mxu1 %v324_v10  ;;  %513 = vmatpush.msra.mxu2 %v324_v10  ;;  %v376_v33 = vsub.f32 1.0, %v375_v32 }
  0x18   : > { %349 = vmatpush.msra.mxu1 %v323_v11  ;;  %514 = vmatpush.msra.mxu2 %v323_v11  ;;  %v377_v34 = vmul.f32 %v531_v31, %v376_v33 }
  0x1a   : > { %350 = vmatpush.msra.mxu1 %v322_v12  ;;  %515 = vmatpush.msra.mxu2 %v322_v12  ;;  %v378_v35 = vadd.f32 %v531_v31, %v377_v34 }
  0x1c   : > { %351 = vmatpush.msra.mxu1 %v321_v13  ;;  %516 = vmatpush.msra.mxu2 %v321_v13  ;;  %v380_v36 = vsel %vm379_vm3, %v531_v31, %v378_v35 }
  0x90   : > { %v313_v15 = vpop.f32.mrf.mxu0 }
  0x91   : > { %v314_v16 = vadd.f32 %v526_v14, %v313_v15 }
  0x93   : > { %v319_v17 = vmax.f32 %v314_v16, 0.0 }
  0x95   : > { %499 = vmatmul.msk.f32.vlgmr.msra.gmra.mxu1 %vm329_vm1, %v319_v17 }
  0x96   : > { %v316_v18 = vpop.f32.mrf.mxu3 }
  0x97   : > { %v317_v19 = vadd.f32 %v526_v14, %v316_v18 }
  0x99   : > { %v320_v20 = vmax.f32 %v317_v19, 0.0 }
  0x9b   : > { %500 = vmatmul.msk.f32.vlgmr.msra.gmra.mxu2 %vm329_vm1, %v320_v20 }
 0x112   : > { %v353_v22 = vpop.f32.mrf.mxu1 }
 0x113   : > { %v359_v23 = vadd.f32 %v353_v22, %v279_v7 }
 0x115   : > { %v365_v24 = vadd.f32 %v527_v21, %v359_v23 }
 0x117   : > { %v367_v25 = vsel %vm289_vm0, %v365_v24, 0.0 }
 0x118   : > { %368 = vadd.xlane.f32.xlu0 %v367_v25 }
 0x11e   : > { %v356_v26 = vpop.f32.mrf.mxu2 }
 0x11f   : > { %v360_v27 = vadd.f32 %v356_v26, %v280_v8 }
 0x121   : > { %v366_v28 = vadd.f32 %v527_v21, %v360_v27 }
 0x123   : > { %v371_v29 = vsel %vm370_vm2, %v366_v28, 0.0 }
 0x124   : > { %372 = vadd.xlane.f32.xlu0 %v371_v29 }
 0x18b   : > { %v369_v37 = vpop.xlane.xlu0 %368 }
 0x18c   : > { %v381_v38 = vmul.f32 %v380_v36, %v369_v37 }
 0x18e   : > { %v383_v39 = vsub.f32 %v365_v24, %v381_v38 }
 0x190   : > { %v385_v40 = vmul.f32 %v383_v39, %v383_v39 }
 0x192   : > { %v387_v41 = vsel %vm289_vm0, %v385_v40, 0.0 }
 0x193   : > { %388 = vadd.xlane.f32.xlu1 %v387_v41 }
 0x197   : > { %v373_v42 = vpop.xlane.xlu0 %372 }
 0x198   : > { %v382_v43 = vmul.f32 %v380_v36, %v373_v42 }
 0x19a   : > { %v384_v44 = vsub.f32 %v366_v28, %v382_v43 }
 0x19c   : > { %v386_v45 = vmul.f32 %v384_v44, %v384_v44 }
 0x19e   : > { %v390_v46 = vsel %vm370_vm2, %v386_v45, 0.0 }
 0x19f   : > { %391 = vadd.xlane.f32.xlu1 %v390_v46 }
 0x206   : > { %v389_v47 = vpop.xlane.xlu1 %388 }
 0x207   : > { %v393_v48 = vmul.f32 %v389_v47, %v380_v36 }
 0x209   : > { %v395_v49 = vadd.f32 1e-05, %v393_v48 }
 0x20b   : > { %532 = vrsqrt.f32 %v395_v49  ;;  %vm403_vm5 = vweird.f32 %v395_v49 }
 0x211   : > { %v533_v50 = vpop.eup %532 }
 0x212   : > { %v398_v51 = vmul.f32 %v533_v50, %v395_v49  ;;  %v392_v52 = vpop.xlane.xlu1 %391  ;;  %vm404_vm4 = vweird.f32 %v533_v50 }
 0x213   : > { %v394_v53 = vmul.f32 %v392_v52, %v380_v36  ;;  %vm405_vm6 = vmor %vm403_vm5, %vm404_vm4 }
 0x214   : > { %v399_v54 = vmul.f32 %v533_v50, %v398_v51 }
 0x215   : > { %v396_v55 = vadd.f32 1e-05, %v394_v53 }
 0x216   : > { %v400_v56 = vmul.f32 0.5, %v399_v54 }
 0x217   : > { %534 = vrsqrt.f32 %v396_v55  ;;  %vm413_vm8 = vweird.f32 %v396_v55 }
 0x218   : > { %v401_v57 = vsub.f32 1.5, %v400_v56 }
 0x21a   : > { %v402_v58 = vmul.f32 %v533_v50, %v401_v57 }
 0x21c   : > { %v406_v60 = vsel %vm405_vm6, %v533_v50, %v402_v58 }
 0x21d   : > { %v535_v61 = vpop.eup %534  ;;  %v417_v63 = vmul.f32 %v406_v60, %v383_v39 }
 0x21e   : > { %v408_v0 = vmul.f32 %v535_v61, %v396_v55  ;;  %vm414_vm7 = vweird.f32 %v535_v61 }
 0x21f   : > { %v423_v1 = vmul.f32 %v528_v59, %v417_v63  ;;  %vm415_vm9 = vmor %vm413_vm8, %vm414_vm7 }
 0x220   : > { %v409_v2 = vmul.f32 %v535_v61, %v408_v0 }
 0x221   : > { %v429_v3 = vadd.f32 %v529_v62, %v423_v1 }
 0x222   : > { %v410_v4 = vmul.f32 0.5, %v409_v2 }
 0x223   : > { %431 = vst.msk [vmem:[%s278_s21] sm:$0xff] %vm289_vm0, %v429_v3 }
 0x224   : > { %v411_v5 = vsub.f32 1.5, %v410_v4 }
 0x226   : > { %v412_v6 = vmul.f32 %v535_v61, %v411_v5 }
 0x228   : > { %v416_v7 = vsel %vm415_vm9, %v535_v61, %v412_v6 }
 0x229   : > { %v418_v8 = vmul.f32 %v416_v7, %v384_v44 }
 0x22b   : > { %v424_v9 = vmul.f32 %v528_v59, %v418_v8 }
 0x22d   : > { %v430_v10 = vadd.f32 %v529_v62, %v424_v9 }
 0x22f   : > { %432 = vst.msk [vmem:[%s278_s21 + $0x8] sm:$0x1] %vm370_vm2, %v430_v10 }
 0x230 PF: > { %s17_s24 = sadd.s32 1, %s542_s24  }
 0x231   : > { %p14_p4 = scmp.ge.s32.totalorder %s17_s24, 4  }
 0x233   :  { %16 = sbr.rel (!%p14_p4) target bundleno = 1 (0x1), region = 78 }

// kernel: forward.11
= control target key start
LH: loop header
LB: loop body
LE: loop exit
PB: predicated region body
PF: predicated region fallthrough
CT: control target
= control target key end

     0   :  { %s1312_s13 = smov 0   ;;  %s1495_s0 = inlined_call_operand.vmem [shape: f32[2,9,32], index: 0, kind: input, shape index: {}, may-alias: {0,1}]   ;;  %s1496_s1 = inlined_call_operand.vmem [shape: f32[2,9,32], index: 1, kind: input, shape index: {}, may-alias: {0,1}]   ;;  %s1497_s2 = inlined_call_operand.vmem [shape: f32[32,32], index: 2, kind: input, shape index: {}]   ;;  %s1498_s3 = inlined_call_operand.vmem [shape: f32[1,32], index: 3, kind: input, shape index: {}]   ;;  %s1499_s4 = inlined_call_operand.vmem [shape: f32[32,64], index: 4, kind: input, shape index: {}]   ;;  %s1500_s5 = inlined_call_operand.vmem [shape: f32[1,64], index: 5, kind: input, shape index: {}]   ;;  %s1501_s6 = inlined_call_operand.vmem [shape: f32[32,32], index: 6, kind: input, shape index: {}]   ;;  %s1502_s7 = inlined_call_operand.vmem [shape: f32[1,32], index: 7, kind: input, shape index: {}]   ;;  %s1503_s8 = inlined_call_operand.vmem [shape: f32[1,32], index: 8, kind: input, shape index: {}]   ;;  %s1504_s9 = inlined_call_operand.vmem [shape: f32[1,32], index: 9, kind: input, shape index: {}]   ;;  %s1505_s10 = inlined_call_operand.vmem [shape: f32[2,9,32], index: 10, kind: output, shape index: {}]  }
   0x1 LB: > { %s1120_s14 = sadd.s32 4294967295, %s1247_s13   ;;  %p1124_p0 = scmp.ge.s32.totalorder %s1247_s13, 1  ;;  %s1247_s13 = sphi %s1312_s13, %s20_s13  }
   0x2   : > { %p322_p1 = scmp.lt.s32.totalorder %s1247_s13, 3 }
   0x4   : > { %p323_p2 = pnand %p1124_p0, %p322_p1 }
   0x5   : > { %p365_p3 = scmp.lt.s32.totalorder (!%p323_p2), %s1120_s14, 1  ;;  %s1249_s24 = smov (!%p323_p2), 120  }
   0x6   : > { %326 = sbr.rel (%p323_p2) target bundleno = 1673 (0x689), region = 60  ;;  %s1250_s25 = smov (!%p323_p2), 104  }
   0x7   : > { %s1252_s27 = smov (!%p323_p2), 96   ;;  %s1253_s28 = smov (!%p323_p2), 88  }
   0x8   : > { %s1254_s11 = smov (!%p323_p2), 72   ;;  %s1255_s12 = smov (!%p323_p2), 80  }
   0xb   : > { %v387_v0 = vld [vmem:[%s1497_s2 + $0x18] sm:$0xff]  ;;  %v386_v1 = vld [vmem:[%s1497_s2 + $0x10] sm:$0xff]  ;;  %v385_v2 = vld [vmem:[%s1497_s2 + $0x8] sm:$0xff]  ;;  %s1507_s14 = smov (!%p365_p3, %s1120_s14), 1  ;;  %vm392_vm0 = vcmask 261120   ;;  %vm463_vm1 = vcmask 64512  }
   0xc   : > { %1176 = vmatpush.msra.mxu1 %v387_v0  ;;  %411 = vmatpush.msra.mxu0 %v387_v0  ;;  %v384_v3 = vld [vmem:[%s1497_s2] sm:$0xff]  ;;  %s1332_s23 = sshll.u32 %s1507_s14, 4  ;;  %v425_v5 = vld [vmem:[%s1499_s4 + $0x18] sm:$0xff]  ;;  %v424_v7 = vld [vmem:[%s1499_s4 + $0x10] sm:$0xff]  ;;  %vm501_vm2 = vcmask 72704   ;;  %vm505_vm3 = vcmask 65536  }
   0xd   : > { %s369_s26 = scalar_lea.vmem %s1495_s0, %s1332_s23  ;;  %v423_v8 = vld [vmem:[%s1499_s4 + $0x8] sm:$0xff]  ;;  %s374_s16 = scalar_lea.vmem %s1496_s1, %s1332_s23  ;;  %v422_v9 = vld [vmem:[%s1499_s4] sm:$0xff]  ;;  %vm536_vm4 = vcmask 1040384   ;;  %vm990_vm5 = vcmask 253952  }
   0xe   : > { %1177 = vmatpush.msra.mxu1 %v386_v1  ;;  %412 = vmatpush.msra.mxu0 %v386_v1  ;;  %v1338_v4 = vld [vmem:[%s369_s26 + $0x8] sm:$0x1]  ;;  %v1343_v6 = vld [vmem:[%s369_s26] sm:$0xff]  ;;  %s1251_s26 = smov 112   ;;  %s379_s29 = scalar_lea.vmem %s1505_s10, %s1332_s23 }
   0xf   : > { %v382_v10 = vld [vmem:[%s374_s16] sm:$0xff]  ;;  %v383_v11 = vld [vmem:[%s374_s16 + $0x8] sm:$0x1] }
  0x10   : > { %1178 = vmatpush.msra.mxu1 %v385_v2  ;;  %413 = vmatpush.msra.mxu0 %v385_v2  ;;  %v1199_v14 = vld [vmem:[%s1500_s5] ss:$0 sm:$0xff] }
  0x11   : > { %v1198_v18 = vld [vmem:[%s1498_s3] ss:$0 sm:$0xff] }
  0x12   : > { %1179 = vmatpush.msra.mxu1 %v384_v3  ;;  %414 = vmatpush.msra.mxu0 %v384_v3  ;;  %v459_v49 = vld [vmem:[%s1501_s6] sm:$0xff] }
  0x13   : > { %1132 = vmatmul.msk.f32.vlgmr.msra.gmra.mxu1 %vm392_vm0, %v1338_v4  ;;  %1131 = vmatmul.msk.f32.vlgmr.msra.gmra.mxu0 %vm392_vm0, %v1343_v6 }
  0x14   : > { %448 = vmatpush.msrb.mxu1 %v425_v5 }
  0x16   : > { %449 = vmatpush.msrb.mxu1 %v424_v7 }
  0x18   : > { %450 = vmatpush.msrb.mxu1 %v423_v8 }
  0x1a   : > { %451 = vmatpush.msrb.mxu1 %v422_v9 }
  0x1b   : > { %1133 = vmatmul.msk.f32.vlgmr.msrb.gmra.mxu1 %vm392_vm0, %v382_v10 }
  0x23   : > { %1134 = vmatmul.msk.f32.gmra.mxu1 %vm392_vm0, %v383_v11 }
  0x90   : > { %v419_v12 = vpop.f32.mrf.mxu1  ;;  %v416_v17 = vpop.f32.mrf.mxu0 }
  0x91   : > { %v417_v20 = vadd.f32 %v1198_v18, %v416_v17  ;;  %v420_v21 = vadd.f32 %v1198_v18, %v419_v12 }
  0x98   : > { %v453_v13 = vpop.f32.mrf.mxu1 }
  0x99   : > { %v1374_v19 = vadd.f32 %v1199_v14, %v453_v13 }
  0xa0   : > { %v456_v15 = vpop.f32.mrf.mxu1 }
  0xa1   : > { %v1367_v16 = vadd.f32 %v1199_v14, %v456_v15 }
  0xa3   : > { %1135 = vmatpush.xpose.msk.msra.mxu2 %vm463_vm1, %v1367_v16 }
  0xa7   : > { %1136 = vmatpush.xpose.msk.msra.mxu2 %vm463_vm1, %v1374_v19 }
  0xaa   : > { %1137 = vmatmul.msk.f32.vlgmr.msra.gmra.mxu2 %vm463_vm1, %v417_v20 }
  0xb2   : > { %1138 = vmatmul.msk.f32.gmra.mxu2 %vm463_vm1, %v420_v21 }
 0x12d   : > { %v493_v22 = vpop.f32.mrf.mxu2 }
 0x12e   : > { %v499_v23 = vmul.f32 0.35355338, %v493_v22 }
 0x130   : > { %v502_v24 = vsel %vm501_vm2, %v499_v23, -inf }
 0x131   : > { %503 = vmax.xlane.f32.xlu0 %v502_v24 }
 0x135   : > { %v496_v25 = vpop.f32.mrf.mxu2 }
 0x136   : > { %v500_v26 = vmul.f32 0.35355338, %v496_v25 }
 0x138   : > { %v506_v27 = vsel %vm505_vm3, %v500_v26, -inf }
 0x139   : > { %507 = vmax.xlane.f32.xlu0 %v506_v27 }
 0x14d   : > { %568 = vrot.lane.b32.xlu0 %v1367_v16, %s1249_s24 }
 0x155   : > { %855 = vrot.lane.b32.xlu0 %v1367_v16, %s1250_s25 }
 0x15d   : > { %853 = vrot.lane.b32.xlu0 %v1374_v19, %s1250_s25 }
 0x165   : > { %719 = vrot.lane.b32.xlu0 %v417_v20, %s1251_s26 }
 0x1a4   : > { %v504_v28 = vpop.xlane.xlu0 %503 }
 0x1a5   : > { %v509_v29 = vsub.f32 %v499_v23, %v504_v28 }
 0x1a7   : > { %v511_v30 = vmul.f32 1.442695, %v509_v29 }
 0x1a9   : > { %1203 = vpow2.f32 %v511_v30 }
 0x1ac   : > { %v508_v31 = vpop.xlane.xlu0 %507 }
 0x1ad   : > { %v510_v32 = vsub.f32 %v500_v26, %v508_v31 }
 0x1af   : > { %v1204_v33 = vpop.eup %1203  ;;  %v513_v34 = vmul.f32 1.442695, %v510_v32 }
 0x1b0   : > { %v515_v35 = vsel %vm501_vm2, %v1204_v33, 0.0 }
 0x1b1   : > { %1205 = vpow2.f32 %v513_v34  ;;  %516 = vadd.xlane.f32.xlu1 %v515_v35 }
 0x1b7   : > { %v1206_v36 = vpop.eup %1205 }
 0x1b8   : > { %v518_v37 = vsel %vm505_vm3, %v1206_v36, 0.0 }
 0x1b9   : > { %519 = vadd.xlane.f32.xlu2 %v518_v37 }
 0x1bf   : > { %v569_v39 = vpop.permute.xlu0 %568 }
 0x1c7   : > { %v856_v44 = vpop.permute.xlu0 %855 }
 0x1ca   : > { %527 = vrot.lane.b32.xlu1 %v1367_v16, %s1252_s27 }
 0x1cf   : > { %v854_v52 = vpop.permute.xlu0 %853 }
 0x1d1   : > { %525 = vrot.lane.b32.xlu2 %v1374_v19, %s1252_s27 }
 0x1d2   : > { %562 = vrot.lane.b32.xlu1 %v417_v20, %s1249_s24 }
 0x1d7   : > { %v720_v57 = vpop.permute.xlu0 %719 }
 0x1d9   : > { %566 = vrot.lane.b32.xlu2 %v1374_v19, %s1249_s24 }
 0x1da   : > { %725 = vrot.lane.b32.xlu1 %v1367_v16, %s1251_s26 }
 0x1e1   : > { %564 = vrot.lane.b32.xlu2 %v420_v21, %s1249_s24 }
 0x1e2   : > { %723 = vrot.lane.b32.xlu1 %v1374_v19, %s1251_s26 }
 0x1e9   : > { %849 = vrot.lane.b32.xlu2 %v417_v20, %s1250_s25 }
 0x1ea   : > { %721 = vrot.lane.b32.xlu1 %v420_v21, %s1251_s26 }
 0x1f1   : > { %851 = vrot.lane.b32.xlu2 %v420_v21, %s1250_s25 }
 0x1f9   : > { %627 = vrot.lane.b32.xlu2 %v1367_v16, %s1253_s28 }
 0x224   : > { %v517_v40 = vpop.xlane.xlu1 %516 }
 0x225   : > { %1207 = vrcp.f32 %v517_v40 }
 0x22b   : > { %v1208_v42 = vpop.eup %1207 }
 0x22c   : > { %v520_v38 = vpop.xlane.xlu2 %519  ;;  %v523_v47 = vmul.f32 %v1208_v42, %v1204_v33 }
 0x22d   : > { %1209 = vrcp.f32 %v520_v38 }
 0x233   : > { %v1210_v43 = vpop.eup %1209 }
 0x234   : > { %v526_v41 = vpop.permute.xlu2 %525  ;;  %v524_v48 = vmul.f32 %v1210_v43, %v1206_v36 }
 0x23c   : > { %v528_v45 = vpop.permute.xlu1 %527  ;;  %v567_v46 = vpop.permute.xlu2 %566 }
 0x23d   : > { %1139 = vmatpush.msk.msrb.mxu2 %vm536_vm4, %v528_v45  ;;  %1180 = vmatpush.msk.msra.mxu3 %vm536_vm4, %v528_v45 }
 0x23f   : > { %554 = vmatpush.msrb.mxu2 %v526_v41  ;;  %1181 = vmatpush.msra.mxu3 %v526_v41 }
 0x240   : > { %1140 = vmatmul.msk.f32.vlgmr.msrb.gmra.mxu2 %vm501_vm2, %v523_v47  ;;  %1141 = vmatmul.msk.f32.vlgmr.msra.gmra.mxu3 %vm501_vm2, %v524_v48 }
 0x241   : > { %1142 = vmatpush.xpose.msk.msrb.mxu3 %vm463_vm1, %v569_v39  ;;  %711 = vmatpush.msra.mxu2 %v459_v49 }
 0x243   : > { %1162 = vmatpush.xpose.msk.msrb.mxu2 %vm463_vm1, %v856_v44 }
 0x244   : > { %v563_v50 = vpop.permute.xlu1 %562  ;;  %v565_v51 = vpop.permute.xlu2 %564 }
 0x245   : > { %1143 = vmatpush.xpose.msk.msrb.mxu3 %vm463_vm1, %v567_v46 }
 0x247   : > { %1163 = vmatpush.xpose.msk.msrb.mxu2 %vm463_vm1, %v854_v52 }
 0x248   : > { %1144 = vmatmul.msk.f32.vlgmr.msrb.gmra.mxu3 %vm463_vm1, %v563_v50 }
 0x24c   : > { %v726_v53 = vpop.permute.xlu1 %725  ;;  %v850_v54 = vpop.permute.xlu2 %849 }
 0x24d   : > { %1153 = vmatpush.xpose.msk.msra.mxu3 %vm463_vm1, %v726_v53 }
 0x250   : > { %1145 = vmatmul.msk.f32.gmra.mxu3 %vm463_vm1, %v565_v51 }
 0x254   : > { %v724_v55 = vpop.permute.xlu1 %723  ;;  %v852_v56 = vpop.permute.xlu2 %851 }
 0x255   : > { %1154 = vmatpush.xpose.msk.msra.mxu3 %vm463_vm1, %v724_v55 }
 0x258   : > { %1155 = vmatmul.msk.f32.vlgmr.msra.gmra.mxu3 %vm463_vm1, %v720_v57 }
 0x25c   : > { %v628_v58 = vpop.permute.xlu2 %627  ;;  %v722_v59 = vpop.permute.xlu1 %721 }
 0x25d   : > { %1146 = vmatpush.msk.msrb.mxu0 %vm536_vm4, %v628_v58 }
 0x260   : > { %1156 = vmatmul.msk.f32.gmra.mxu3 %vm463_vm1, %v722_v59 }
 0x2c3   : > { %v556_v60 = vpop.f32.mrf.mxu2  ;;  %v559_v61 = vpop.f32.mrf.mxu3 }
 0x2c4   : > { %1151 = vmatmul.msk.f32.vlgmr.msra.gmra.mxu2 %vm463_vm1, %v556_v60  ;;  %v460_v60 = vld [vmem:[%s1501_s6 + $0x8] sm:$0xff] }
 0x2c5   : > { %682 = vmatpush.msra.mxu1 %v460_v60 }
 0x2cb   : > { %v595_v62 = vpop.f32.mrf.mxu3 }
 0x2cc   : > { %v601_v63 = vmul.f32 0.35355338, %v595_v62  ;;  %1152 = vmatmul.msk.f32.gmra.mxu2 %vm463_vm1, %v559_v61 }
 0x2ce   : > { %v603_v0 = vsel %vm501_vm2, %v601_v63, -inf }
 0x2cf   : > { %604 = vmax.xlane.f32.xlu0 %v603_v0 }
 0x2d3   : > { %v598_v1 = vpop.f32.mrf.mxu3 }
 0x2d4   : > { %v602_v2 = vmul.f32 0.35355338, %v598_v1  ;;  %1164 = vmatmul.msk.f32.vlgmr.msrb.gmra.mxu2 %vm463_vm1, %v850_v54 }
 0x2d6   : > { %v606_v3 = vsel %vm505_vm3, %v602_v2, -inf }
 0x2d7   : > { %607 = vmax.xlane.f32.xlu2 %v606_v3 }
 0x2db   : > { %v752_v5 = vpop.f32.mrf.mxu3 }
 0x2dc   : > { %v758_v7 = vmul.f32 0.35355338, %v752_v5  ;;  %1165 = vmatmul.msk.f32.gmra.mxu2 %vm463_vm1, %v852_v56 }
 0x2de   : > { %v760_v8 = vsel %vm501_vm2, %v758_v7, -inf }
 0x2df   : > { %761 = vmax.xlane.f32.xlu0 %v760_v8 }
 0x2e3   : > { %v755_v9 = vpop.f32.mrf.mxu3 }
 0x2e4   : > { %v759_v10 = vmul.f32 0.35355338, %v755_v9 }
 0x2e6   : > { %v763_v11 = vsel %vm505_vm3, %v759_v10, -inf }
 0x2e7   : > { %764 = vmax.xlane.f32.xlu1 %v763_v11 }
 0x2ef   : > { %914 = vrot.lane.b32.xlu2 %v1367_v16, %s1254_s11 }
 0x342   : > { %v605_v12 = vpop.xlane.xlu0 %604 }
 0x343   : > { %v609_v13 = vsub.f32 %v601_v63, %v605_v12 }
 0x345   : > { %v611_v14 = vmul.f32 1.442695, %v609_v13 }
 0x347   : > { %1211 = vpow2.f32 %v611_v14  ;;  %v1422_v15 = vpop.f32.mrf.mxu2  ;;  %v461_v14 = vld [vmem:[%s1501_s6 + $0x10] sm:$0xff] }
 0x348   : > { %839 = vmatpush.msrb.mxu1 %v461_v14 }
 0x34a   : > { %v608_v17 = vpop.xlane.xlu2 %607 }
 0x34b   : > { %v610_v22 = vsub.f32 %v602_v2, %v608_v17  ;;  %v462_v17 = vld [vmem:[%s1501_s6 + $0x18] sm:$0xff] }
 0x34d   : > { %v1212_v18 = vpop.eup %1211  ;;  %v613_v24 = vmul.f32 1.442695, %v610_v22 }
 0x34e   : > { %v615_v20 = vsel %vm501_vm2, %v1212_v18, 0.0 }
 0x34f   : > { %v1425_v21 = vpop.f32.mrf.mxu2  ;;  %616 = vadd.xlane.f32.xlu0 %v615_v20  ;;  %1213 = vpow2.f32 %v613_v24 }
 0x352   : > { %v915_v23 = vpop.permute.xlu2 %914  ;;  %v762_v25 = vpop.xlane.xlu0 %761 }
 0x353   : > { %1166 = vmatpush.msk.msrb.mxu3 %vm536_vm4, %v915_v23  ;;  %v766_v28 = vsub.f32 %v758_v7, %v762_v25 }
 0x355   : > { %v768_v30 = vmul.f32 1.442695, %v766_v28  ;;  %v1214_v31 = vpop.eup %1213 }
 0x356   : > { %v618_v35 = vsel %vm505_vm3, %v1214_v31, 0.0 }
 0x357   : > { %v882_v26 = vpop.f32.mrf.mxu2  ;;  %1215 = vpow2.f32 %v768_v30 }
 0x358   : > { %v888_v27 = vmul.f32 0.35355338, %v882_v26 }
 0x35a   : > { %v890_v29 = vsel %vm501_vm2, %v888_v27, -inf  ;;  %v765_v38 = vpop.xlane.xlu1 %764 }
 0x35b   : > { %891 = vmax.xlane.f32.xlu1 %v890_v29  ;;  %v767_v39 = vsub.f32 %v759_v10, %v765_v38 }
 0x35d   : > { %v1433_v36 = vpop.eup %1215  ;;  %v770_v40 = vmul.f32 1.442695, %v767_v39 }
 0x35e   : > { %v772_v37 = vsel %vm501_vm2, %v1433_v36, 0.0 }
 0x35f   : > { %v885_v32 = vpop.f32.mrf.mxu2  ;;  %1217 = vpow2.f32 %v770_v40 }
 0x360   : > { %v889_v33 = vmul.f32 0.35355338, %v885_v32 }
 0x362   : > { %v893_v34 = vsel %vm505_vm3, %v889_v33, -inf }
 0x363   : > { %894 = vmax.xlane.f32.xlu2 %v893_v34  ;;  %619 = vadd.xlane.f32.xlu1 %v618_v35 }
 0x364   : > { %625 = vrot.lane.b32.xlu0 %v1374_v19, %s1253_s28 }
 0x365   : > { %v1218_v41 = vpop.eup %1217 }
 0x366   : > { %v775_v42 = vsel %vm505_vm3, %v1218_v41, 0.0 }
 0x36b   : > { %773 = vadd.xlane.f32.xlu1 %v772_v37 }
 0x37b   : > { %784 = vrot.lane.b32.xlu2 %v1367_v16, %s1255_s12 }
 0x3a4   : > { %776 = vadd.xlane.f32.xlu2 %v775_v42  ;;  %v1256_v42 = vmov 32.0  }
 0x3c2   : > { %v617_v43 = vpop.xlane.xlu0 %616 }
 0x3c3   : > { %1219 = vrcp.f32 %v617_v43 }
 0x3c9   : > { %v1220_v47 = vpop.eup %1219 }
 0x3ca   : > { %v623_v50 = vmul.f32 %v1220_v47, %v1212_v18 }
 0x3ce   : > { %v892_v44 = vpop.xlane.xlu1 %891 }
 0x3cf   : > { %v896_v45 = vsub.f32 %v888_v27, %v892_v44 }
 0x3d1   : > { %v898_v46 = vmul.f32 1.442695, %v896_v45 }
 0x3d3   : > { %1221 = vpow2.f32 %v898_v46 }
 0x3d6   : > { %v626_v48 = vpop.permute.xlu0 %625  ;;  %v895_v49 = vpop.xlane.xlu2 %894 }
 0x3d7   : > { %v897_v51 = vsub.f32 %v889_v33, %v895_v49  ;;  %v620_v16 = vpop.xlane.xlu1 %619  ;;  %653 = vmatpush.msrb.mxu0 %v626_v48 }
 0x3d8   : > { %1223 = vrcp.f32 %v620_v16  ;;  %1147 = vmatmul.msk.f32.vlgmr.msrb.gmra.mxu0 %vm501_vm2, %v623_v50 }
 0x3d9   : > { %v1222_v52 = vpop.eup %1221  ;;  %v900_v53 = vmul.f32 1.442695, %v897_v51 }
 0x3da   : > { %v902_v54 = vsel %vm501_vm2, %v1222_v52, 0.0 }
 0x3db   : > { %1225 = vpow2.f32 %v900_v53  ;;  %903 = vadd.xlane.f32.xlu1 %v902_v54 }
 0x3de   : > { %v1224_v55 = vpop.eup %1223  ;;  %v785_v56 = vpop.permute.xlu2 %784 }
 0x3df   : > { %1157 = vmatpush.msk.msra.mxu0 %vm536_vm4, %v785_v56  ;;  %v624_v57 = vmul.f32 %v1224_v55, %v1214_v31  ;;  %v774_v61 = vpop.xlane.xlu1 %773  ;;  %v1200_v31 = vld [vmem:[%s1502_s7] ss:$0 sm:$0xff] }
 0x3e1   : > { %v1226_v58 = vpop.eup %1225  ;;  %1148 = vmatmul.msk.f32.gmra.mxu0 %vm501_vm2, %v624_v57 }
 0x3e2   : > { %v905_v59 = vsel %vm505_vm3, %v1226_v58, 0.0 }
 0x3e3   : > { %906 = vadd.xlane.f32.xlu0 %v905_v59 }
 0x3f4   : > { %912 = vrot.lane.b32.xlu1 %v1374_v19, %s1254_s11 }
 0x3fc   : > { %782 = vrot.lane.b32.xlu1 %v1374_v19, %s1255_s12 }
 0x417   : > { %v777_v7 = vpop.xlane.xlu2 %776 }
 0x44e   : > { %v904_v63 = vpop.xlane.xlu1 %903 }
 0x44f   : > { %1227 = vrcp.f32 %v904_v63 }
 0x450   : > { %1229 = vrcp.f32 %v774_v61 }
 0x455   : > { %v655_v62 = vpop.f32.mrf.mxu0  ;;  %v1228_v2 = vpop.eup %1227 }
 0x456   : > { %1149 = vmatmul.msk.f32.vlgmr.msra.gmra.mxu1 %vm463_vm1, %v655_v62  ;;  %v907_v1 = vpop.xlane.xlu0 %906  ;;  %v910_v3 = vmul.f32 %v1228_v2, %v1222_v52  ;;  %v1230_v5 = vpop.eup %1229 }
 0x457   : > { %1231 = vrcp.f32 %v907_v1  ;;  %v780_v9 = vmul.f32 %v1230_v5, %v1433_v36  ;;  %v1201_v5 = vld [vmem:[%s1503_s8] ss:$0 sm:$0xff] }
 0x458   : > { %1233 = vrcp.f32 %v777_v7 }
 0x459   : > { %1235 = vrcp.f32 %v1256_v42 }
 0x45d   : > { %v1232_v8 = vpop.eup %1231 }
 0x45e   : > { %v658_v0 = vpop.f32.mrf.mxu0  ;;  %v911_v11 = vmul.f32 %v1232_v8, %v1226_v58  ;;  %v1234_v12 = vpop.eup %1233 }
 0x45f   : > { %1150 = vmatmul.msk.f32.gmra.mxu1 %vm463_vm1, %v658_v0  ;;  %v781_v13 = vmul.f32 %v1234_v12, %v1218_v41 }
 0x466   : > { %v913_v19 = vpop.permute.xlu1 %912 }
 0x467   : > { %940 = vmatpush.msrb.mxu3 %v913_v19 }
 0x468   : > { %1167 = vmatmul.msk.f32.vlgmr.msrb.gmra.mxu3 %vm501_vm2, %v910_v3 }
 0x46e   : > { %v783_v10 = vpop.permute.xlu1 %782 }
 0x46f   : > { %810 = vmatpush.msra.mxu0 %v783_v10 }
 0x470   : > { %1158 = vmatmul.msk.f32.vlgmr.msra.gmra.mxu0 %vm501_vm2, %v780_v9  ;;  %1168 = vmatmul.msk.f32.gmra.mxu3 %vm501_vm2, %v911_v11  ;;  %v1202_v9 = vld [vmem:[%s1504_s9] ss:$0 sm:$0xff] }
 0x471   : > { %969 = vmatpush.msrb.mxu0 %v462_v17 }
 0x478   : > { %1159 = vmatmul.msk.f32.gmra.mxu0 %vm501_vm2, %v781_v13 }
 0x4d3   : > { %v684_v24 = vpop.f32.mrf.mxu1 }
 0x4d4   : > { %v714_v26 = vadd.f32 %v1422_v15, %v684_v24 }
 0x4dc   : > { %v687_v25 = vpop.f32.mrf.mxu1 }
 0x4dd   : > { %v717_v33 = vadd.f32 %v1425_v21, %v687_v25 }
 0x4eb   : > { %v942_v18 = vpop.f32.mrf.mxu3 }
 0x4ec   : > { %1169 = vmatmul.msk.f32.vlgmr.msrb.gmra.mxu0 %vm463_vm1, %v942_v18 }
 0x4ed   : > { %v812_v20 = vpop.f32.mrf.mxu0 }
 0x4ee   : > { %1160 = vmatmul.msk.f32.vlgmr.msrb.gmra.mxu1 %vm463_vm1, %v812_v20 }
 0x4f3   : > { %v945_v22 = vpop.f32.mrf.mxu3 }
 0x4f4   : > { %1170 = vmatmul.msk.f32.gmra.mxu0 %vm463_vm1, %v945_v22 }
 0x4f5   : > { %v815_v23 = vpop.f32.mrf.mxu0 }
 0x4f6   : > { %1161 = vmatmul.msk.f32.gmra.mxu1 %vm463_vm1, %v815_v23 }
 0x569   : > { %v971_v27 = vpop.f32.mrf.mxu0 }
 0x56b   : > { %v841_v28 = vpop.f32.mrf.mxu1 }
 0x56c   : > { %v847_v29 = vadd.f32 %v841_v28, %v714_v26 }
 0x56e   : > { %v977_v30 = vadd.f32 %v971_v27, %v847_v29 }
 0x570   : > { %v979_v32 = vadd.f32 %v977_v30, %v1343_v6  ;;  %v1236_v6 = vpop.eup %1235 }
 0x571   : > { %v974_v38 = vpop.f32.mrf.mxu0  ;;  %v995_v43 = vmul.f32 32.0, %v1236_v6  ;;  %vm999_vm6 = vweird.f32 %v1236_v6 }
 0x572   : > { %v985_v34 = vadd.f32 %v1200_v31, %v979_v32 }
 0x573   : > { %v844_v35 = vpop.f32.mrf.mxu1  ;;  %v996_v21 = vsub.f32 1.0, %v995_v43 }
 0x574   : > { %v848_v36 = vadd.f32 %v844_v35, %v717_v33  ;;  %v987_v37 = vsel %vm392_vm0, %v985_v34, 0.0 }
 0x575   : > { %988 = vadd.xlane.f32.xlu1 %v987_v37  ;;  %v997_v44 = vmul.f32 %v1236_v6, %v996_v21 }
 0x576   : > { %v978_v15 = vadd.f32 %v974_v38, %v848_v36 }
 0x577   : > { %v998_v45 = vadd.f32 %v1236_v6, %v997_v44 }
 0x578   : > { %v980_v39 = vadd.f32 %v978_v15, %v1338_v4 }
 0x579   : > { %v1000_v46 = vsel %vm999_vm6, %v1236_v6, %v998_v45 }
 0x57a   : > { %v986_v40 = vadd.f32 %v1200_v31, %v980_v39 }
 0x57c   : > { %v991_v41 = vsel %vm990_vm5, %v986_v40, 0.0 }
 0x57d   : > { %992 = vadd.xlane.f32.xlu0 %v991_v41 }
 0x5e8   : > { %v989_v47 = vpop.xlane.xlu1 %988 }
 0x5e9   : > { %v1001_v48 = vmul.f32 %v1000_v46, %v989_v47 }
 0x5eb   : > { %v1003_v49 = vsub.f32 %v985_v34, %v1001_v48 }
 0x5ed   : > { %v1005_v50 = vmul.f32 %v1003_v49, %v1003_v49 }
 0x5ef   : > { %v1007_v4 = vsel %vm392_vm0, %v1005_v50, 0.0 }
 0x5f0   : > { %1008 = vadd.xlane.f32.xlu0 %v1007_v4  ;;  %v993_v51 = vpop.xlane.xlu0 %992 }
 0x5f1   : > { %v1002_v16 = vmul.f32 %v1000_v46, %v993_v51 }
 0x5f3   : > { %v1004_v52 = vsub.f32 %v986_v40, %v1002_v16 }
 0x5f5   : > { %v1006_v53 = vmul.f32 %v1004_v52, %v1004_v52 }
 0x5f7   : > { %v1010_v54 = vsel %vm990_vm5, %v1006_v53, 0.0 }
 0x5f8   : > { %1011 = vadd.xlane.f32.xlu2 %v1010_v54 }
 0x663   : > { %v1009_v55 = vpop.xlane.xlu0 %1008 }
 0x664   : > { %v1013_v56 = vmul.f32 %v1009_v55, %v1000_v46 }
 0x666   : > { %v1015_v57 = vadd.f32 1e-05, %v1013_v56 }
 0x668   : > { %1237 = vrsqrt.f32 %v1015_v57  ;;  %vm1023_vm8 = vweird.f32 %v1015_v57 }
 0x66b   : > { %v1012_v58 = vpop.xlane.xlu2 %1011 }
 0x66c   : > { %v1014_v59 = vmul.f32 %v1012_v58, %v1000_v46 }
 0x66e   : > { %v1238_v60 = vpop.eup %1237  ;;  %v1016_v61 = vadd.f32 1e-05, %v1014_v59 }
 0x66f   : > { %v1018_v62 = vmul.f32 %v1238_v60, %v1015_v57  ;;  %vm1024_vm7 = vweird.f32 %v1238_v60 }
 0x670   : > { %1239 = vrsqrt.f32 %v1016_v61  ;;  %vm1025_vm9 = vmor %vm1023_vm8, %vm1024_vm7  ;;  %vm1033_vm11 = vweird.f32 %v1016_v61 }
 0x671   : > { %v1019_v63 = vmul.f32 %v1238_v60, %v1018_v62 }
 0x673   : > { %v1020_v0 = vmul.f32 0.5, %v1019_v63 }
 0x675   : > { %v1021_v1 = vsub.f32 1.5, %v1020_v0 }
 0x676   : > { %v1240_v2 = vpop.eup %1239 }
 0x677   : > { %v1022_v3 = vmul.f32 %v1238_v60, %v1021_v1  ;;  %v1028_v19 = vmul.f32 %v1240_v2, %v1016_v61  ;;  %vm1034_vm10 = vweird.f32 %v1240_v2 }
 0x678   : > { %vm1035_vm12 = vmor %vm1033_vm11, %vm1034_vm10 }
 0x679   : > { %v1026_v7 = vsel %vm1025_vm9, %v1238_v60, %v1022_v3  ;;  %v1029_v8 = vmul.f32 %v1240_v2, %v1028_v19 }
 0x67a   : > { %v1037_v10 = vmul.f32 %v1026_v7, %v1003_v49 }
 0x67b   : > { %v1030_v11 = vmul.f32 0.5, %v1029_v8 }
 0x67c   : > { %v1043_v12 = vmul.f32 %v1201_v5, %v1037_v10 }
 0x67d   : > { %v1031_v13 = vsub.f32 1.5, %v1030_v11 }
 0x67e   : > { %v1049_v14 = vadd.f32 %v1202_v9, %v1043_v12 }
 0x67f   : > { %v1032_v17 = vmul.f32 %v1240_v2, %v1031_v13 }
 0x680   : > { %1051 = vst.msk [vmem:[%s379_s29] sm:$0xff] %vm392_vm0, %v1049_v14 }
 0x681   : > { %v1036_v18 = vsel %vm1035_vm12, %v1240_v2, %v1032_v17 }
 0x682   : > { %v1038_v20 = vmul.f32 %v1036_v18, %v1004_v52 }
 0x684   : > { %v1044_v22 = vmul.f32 %v1201_v5, %v1038_v20 }
 0x686   : > { %v1050_v23 = vadd.f32 %v1202_v9, %v1044_v22 }
 0x688   : > { %1052 = vst.msk [vmem:[%s379_s29 + $0x8] sm:$0x1] %vm990_vm5, %v1050_v23 }
 0x689 PF: > { %s20_s13 = sadd.s32 1, %s1247_s13  }
 0x68a   : > { %p17_p4 = scmp.ge.s32.totalorder %s20_s13, 4  }
 0x68c   :  { %19 = sbr.rel (!%p17_p4) target bundleno = 1 (0x1), region = 93 }

// kernel: forward.15
= control target key start
LH: loop header
LB: loop body
LE: loop exit
PB: predicated region body
PF: predicated region fallthrough
CT: control target
= control target key end

     0   :  { %s1058_s13 = smov 0   ;;  %s1184_s0 = inlined_call_operand.vmem [shape: f32[2,8,32], index: 0, kind: input, shape index: {}, may-alias: {0,1}]   ;;  %s1185_s1 = inlined_call_operand.vmem [shape: f32[2,8,32], index: 1, kind: input, shape index: {}, may-alias: {0,1}]   ;;  %s1186_s2 = inlined_call_operand.vmem [shape: f32[32,32], index: 2, kind: input, shape index: {}]   ;;  %s1187_s3 = inlined_call_operand.vmem [shape: f32[1,32], index: 3, kind: input, shape index: {}]   ;;  %s1188_s4 = inlined_call_operand.vmem [shape: f32[32,64], index: 4, kind: input, shape index: {}]   ;;  %s1189_s5 = inlined_call_operand.vmem [shape: f32[1,64], index: 5, kind: input, shape index: {}]   ;;  %s1190_s6 = inlined_call_operand.vmem [shape: f32[32,32], index: 6, kind: input, shape index: {}]   ;;  %s1191_s7 = inlined_call_operand.vmem [shape: f32[1,32], index: 7, kind: input, shape index: {}]   ;;  %s1192_s8 = inlined_call_operand.vmem [shape: f32[1,32], index: 8, kind: input, shape index: {}]   ;;  %s1193_s9 = inlined_call_operand.vmem [shape: f32[1,32], index: 9, kind: input, shape index: {}]   ;;  %s1194_s10 = inlined_call_operand.vmem [shape: f32[2,8,32], index: 10, kind: output, shape index: {}]  }
   0x1 LB: > { %s918_s14 = sadd.s32 4294967295, %s993_s13   ;;  %p922_p0 = scmp.ge.s32.totalorder %s993_s13, 1  ;;  %s993_s13 = sphi %s1058_s13, %s20_s13  }
   0x2   : > { %p320_p1 = scmp.lt.s32.totalorder %s993_s13, 3 }
   0x4   : > { %p321_p2 = pnand %p922_p0, %p320_p1 }
   0x5   : > { %p360_p3 = scmp.lt.s32.totalorder (!%p321_p2), %s918_s14, 1  ;;  %s995_s23 = smov (!%p321_p2), 96  }
   0x6   : > { %324 = sbr.rel (%p321_p2) target bundleno = 1622 (0x656), region = 60  ;;  %s996_s24 = smov (!%p321_p2), 120  }
   0x7   : > { %s997_s25 = smov (!%p321_p2), 112   ;;  %s998_s26 = smov (!%p321_p2), 104  }
   0x8   : > { %s999_s29 = smov (!%p321_p2), 72   ;;  %s1000_s30 = smov (!%p321_p2), 80  }
   0x9   : > { %s1001_s12 = smov (!%p321_p2), 88  }
   0xb   : > { %v377_v0 = vld [vmem:[%s1186_s2 + $0x18] sm:$0xff]  ;;  %v376_v2 = vld [vmem:[%s1186_s2 + $0x10] sm:$0xff]  ;;  %v375_v4 = vld [vmem:[%s1186_s2 + $0x8] sm:$0xff]  ;;  %s1196_s14 = smov (!%p360_p3, %s918_s14), 1  ;;  %vm382_vm0 = vcmask 261120   ;;  %vm446_vm1 = vcmask 64512   ;;  %v441_v18 = vlaneseq }
   0xc   : > { %v409_v1 = vld [vmem:[%s1188_s4 + $0x18] sm:$0xff]  ;;  %398 = vmatpush.msra.mxu0 %v377_v0  ;;  %v408_v3 = vld [vmem:[%s1188_s4 + $0x10] sm:$0xff]  ;;  %v407_v5 = vld [vmem:[%s1188_s4 + $0x8] sm:$0xff]  ;;  %s1090_s11 = sshll.u32 %s1196_s14, 3 }
   0xd   : > { %429 = vmatpush.msra.mxu1 %v409_v1  ;;  %v374_v6 = vld [vmem:[%s1186_s2] sm:$0xff]  ;;  %s363_s16 = scalar_lea.vmem %s1184_s0, %s1090_s11  ;;  %s367_s19 = scalar_lea.vmem %s1185_s1, %s1090_s11  ;;  %v442_v19 = vshrl.u32 %v441_v18, 7  ;;  %v444_v20 = vand.u32 127, %v441_v18  ;;  %v438_v18 = vld [vmem:[%s1190_s6 + $0x8] sm:$0xff] }
   0xe   : > { %399 = vmatpush.msra.mxu0 %v376_v2  ;;  %v406_v7 = vld [vmem:[%s1188_s4] sm:$0xff]  ;;  %s371_s28 = scalar_lea.vmem %s1194_s10, %s1090_s11 }
   0xf   : > { %430 = vmatpush.msra.mxu1 %v408_v3  ;;  %v1096_v8 = vld [vmem:[%s363_s16] sm:$0xff]  ;;  %vm445_vm2 = vcmp.gt.s32.totalorder %v444_v20, %v442_v19  ;;  %v439_v19 = vld [vmem:[%s1190_s6 + $0x10] sm:$0xff] }
  0x10   : > { %400 = vmatpush.msra.mxu0 %v375_v4  ;;  %v373_v9 = vld [vmem:[%s367_s19] sm:$0xff] }
  0x11   : > { %431 = vmatpush.msra.mxu1 %v407_v5  ;;  %v962_v10 = vld [vmem:[%s1187_s3] ss:$0 sm:$0xff] }
  0x12   : > { %401 = vmatpush.msra.mxu0 %v374_v6  ;;  %v963_v11 = vld [vmem:[%s1189_s5] ss:$0 sm:$0xff] }
  0x13   : > { %432 = vmatpush.msra.mxu1 %v406_v7  ;;  %926 = vmatmul.msk.f32.vlgmr.msra.gmra.mxu0 %vm382_vm0, %v1096_v8  ;;  %v437_v30 = vld [vmem:[%s1190_s6] sm:$0xff] }
  0x14   : > { %927 = vmatmul.msk.f32.vlgmr.msra.gmra.mxu1 %vm382_vm0, %v373_v9  ;;  %597 = vmatpush.msrb.mxu0 %v438_v18 }
  0x15   : > { %620 = vmatpush.msrb.mxu1 %v437_v30 }
  0x16   : > { %710 = vmatpush.msra.mxu0 %v439_v19 }
  0x90   : > { %v403_v12 = vpop.f32.mrf.mxu0 }
  0x91   : > { %v434_v13 = vpop.f32.mrf.mxu1  ;;  %v404_v14 = vadd.f32 %v962_v10, %v403_v12 }
  0x92   : > { %v1111_v15 = vadd.f32 %v963_v11, %v434_v13 }
  0x93   : > { %512 = vrot.lane.b32.xlu2 %v404_v14, %s996_s24 }
  0x94   : > { %486 = vrot.lane.b32.xlu1 %v1111_v15, %s995_s23  ;;  %928 = vmatpush.xpose.msk.msra.mxu2 %vm446_vm1, %v1111_v15 }
  0x97   : > { %929 = vmatmul.msk.f32.vlgmr.msra.gmra.mxu2 %vm446_vm1, %v404_v14 }
  0x9b   : > { %627 = vrot.lane.b32.xlu2 %v1111_v15, %s997_s25 }
  0x9c   : > { %514 = vrot.lane.b32.xlu1 %v1111_v15, %s996_s24 }
  0xa3   : > { %716 = vrot.lane.b32.xlu2 %v404_v14, %s998_s26 }
  0xa4   : > { %625 = vrot.lane.b32.xlu1 %v404_v14, %s997_s25 }
  0xed   : > { %v513_v31 = vpop.permute.xlu2 %512 }
  0xf5   : > { %v628_v35 = vpop.permute.xlu2 %627 }
  0xfd   : > { %v717_v39 = vpop.permute.xlu2 %716 }
 0x106   : > { %v487_v16 = vpop.permute.xlu1 %486 }
 0x107   : > { %507 = vmatpush.msra.mxu3 %v487_v16 }
 0x10e   : > { %v515_v17 = vpop.permute.xlu1 %514 }
 0x10f   : > { %931 = vmatpush.xpose.msk.msrb.mxu3 %vm446_vm1, %v515_v17  ;;  %v440_v17 = vld [vmem:[%s1190_s6 + $0x18] sm:$0xff] }
 0x116   : > { %v626_v37 = vpop.permute.xlu1 %625 }
 0x11a   : > { %v470_v21 = vpop.f32.mrf.mxu2 }
 0x11b   : > { %v473_v22 = vmul.f32 0.35355338, %v470_v21 }
 0x11d   : > { %v474_v23 = vsel %vm445_vm2, -1e+30, %v473_v22 }
 0x11e   : > { %v475_v24 = vsel %vm446_vm1, %v474_v23, -inf }
 0x11f   : > { %476 = vmax.xlane.f32.xlu0 %v475_v24 }
 0x192   : > { %v477_v25 = vpop.xlane.xlu0 %476 }
 0x193   : > { %v478_v26 = vsub.f32 %v474_v23, %v477_v25 }
 0x195   : > { %v479_v27 = vmul.f32 1.442695, %v478_v26 }
 0x197   : > { %967 = vpow2.f32 %v479_v27 }
 0x19d   : > { %v968_v28 = vpop.eup %967 }
 0x19e   : > { %v481_v29 = vsel %vm446_vm1, %v968_v28, 0.0 }
 0x19f   : > { %482 = vadd.xlane.f32.xlu0 %v481_v29  ;;  %v964_v29 = vld [vmem:[%s1191_s7] ss:$0 sm:$0xff] }
 0x1b3   : > { %718 = vrot.lane.b32.xlu0 %v1111_v15, %s998_s26 }
 0x212   : > { %v483_v32 = vpop.xlane.xlu0 %482 }
 0x213   : > { %969 = vrcp.f32 %v483_v32 }
 0x219   : > { %v970_v33 = vpop.eup %969 }
 0x21a   : > { %v485_v34 = vmul.f32 %v970_v33, %v968_v28  ;;  %v1002_v33 = vmov 32.0  }
 0x21c   : > { %930 = vmatmul.msk.f32.vlgmr.msra.gmra.mxu3 %vm446_vm1, %v485_v34 }
 0x21d   : > { %936 = vmatpush.xpose.msk.msra.mxu3 %vm446_vm1, %v628_v35 }
 0x224   : > { %932 = vmatmul.msk.f32.vlgmr.msrb.gmra.mxu3 %vm446_vm1, %v513_v31 }
 0x225   : > { %v719_v36 = vpop.permute.xlu0 %718 }
 0x226   : > { %940 = vmatpush.xpose.msk.msra.mxu1 %vm446_vm1, %v719_v36 }
 0x22c   : > { %937 = vmatmul.msk.f32.vlgmr.msra.gmra.mxu3 %vm446_vm1, %v626_v37 }
 0x29f   : > { %v509_v38 = vpop.f32.mrf.mxu3 }
 0x2a0   : > { %935 = vmatmul.msk.f32.vlgmr.msrb.gmra.mxu1 %vm446_vm1, %v509_v38 }
 0x2a7   : > { %v537_v40 = vpop.f32.mrf.mxu3 }
 0x2a8   : > { %v540_v41 = vmul.f32 0.35355338, %v537_v40  ;;  %941 = vmatmul.msk.f32.vlgmr.msra.gmra.mxu1 %vm446_vm1, %v717_v39 }
 0x2aa   : > { %v541_v42 = vsel %vm445_vm2, -1e+30, %v540_v41 }
 0x2ab   : > { %v542_v43 = vsel %vm446_vm1, %v541_v42, -inf }
 0x2ac   : > { %543 = vmax.xlane.f32.xlu1 %v542_v43 }
 0x2af   : > { %v650_v44 = vpop.f32.mrf.mxu3 }
 0x2b0   : > { %v653_v45 = vmul.f32 0.35355338, %v650_v44 }
 0x2b2   : > { %v654_v46 = vsel %vm445_vm2, -1e+30, %v653_v45 }
 0x2b3   : > { %v655_v47 = vsel %vm446_vm1, %v654_v46, -inf }
 0x2b4   : > { %656 = vmax.xlane.f32.xlu0 %v655_v47 }
 0x2c8   : > { %757 = vrot.lane.b32.xlu0 %v1111_v15, %s999_s29 }
 0x31d   : > { %v1139_v48 = vpop.f32.mrf.mxu1 }
 0x31f   : > { %v544_v49 = vpop.xlane.xlu1 %543 }
 0x320   : > { %v545_v50 = vsub.f32 %v541_v42, %v544_v49 }
 0x322   : > { %v546_v51 = vmul.f32 1.442695, %v545_v50 }
 0x324   : > { %971 = vpow2.f32 %v546_v51 }
 0x325   : > { %v741_v52 = vpop.f32.mrf.mxu1 }
 0x326   : > { %v744_v53 = vmul.f32 0.35355338, %v741_v52 }
 0x327   : > { %v657_v54 = vpop.xlane.xlu0 %656 }
 0x328   : > { %v658_v55 = vsub.f32 %v654_v46, %v657_v54  ;;  %v745_v56 = vsel %vm445_vm2, -1e+30, %v744_v53  ;;  %v965_v53 = vld [vmem:[%s1192_s8] ss:$0 sm:$0xff] }
 0x329   : > { %v746_v57 = vsel %vm446_vm1, %v745_v56, -inf }
 0x32a   : > { %747 = vmax.xlane.f32.xlu2 %v746_v57  ;;  %v659_v58 = vmul.f32 1.442695, %v658_v55  ;;  %v972_v59 = vpop.eup %971  ;;  %v966_v55 = vld [vmem:[%s1193_s9] ss:$0 sm:$0xff] }
 0x32b   : > { %v548_v60 = vsel %vm446_vm1, %v972_v59, 0.0 }
 0x32c   : > { %973 = vpow2.f32 %v659_v58 }
 0x332   : > { %549 = vadd.xlane.f32.xlu2 %v548_v60  ;;  %v974_v61 = vpop.eup %973 }
 0x333   : > { %v661_v62 = vsel %vm446_vm1, %v974_v61, 0.0 }
 0x33a   : > { %662 = vadd.xlane.f32.xlu2 %v661_v62  ;;  %v758_v63 = vpop.permute.xlu0 %757 }
 0x33b   : > { %778 = vmatpush.msrb.mxu3 %v758_v63 }
 0x352   : > { %666 = vrot.lane.b32.xlu2 %v1111_v15, %s1000_s30 }
 0x39d   : > { %v748_v0 = vpop.xlane.xlu2 %747 }
 0x39e   : > { %v749_v1 = vsub.f32 %v745_v56, %v748_v0 }
 0x3a0   : > { %v750_v2 = vmul.f32 1.442695, %v749_v1 }
 0x3a2   : > { %975 = vpow2.f32 %v750_v2 }
 0x3a5   : > { %v550_v6 = vpop.xlane.xlu2 %549 }
 0x3a8   : > { %v976_v3 = vpop.eup %975 }
 0x3a9   : > { %v752_v4 = vsel %vm446_vm1, %v976_v3, 0.0 }
 0x3aa   : > { %753 = vadd.xlane.f32.xlu1 %v752_v4 }
 0x3ad   : > { %v663_v10 = vpop.xlane.xlu2 %662 }
 0x3b5   : > { %v667_v14 = vpop.permute.xlu2 %666 }
 0x3c3   : > { %553 = vrot.lane.b32.xlu1 %v1111_v15, %s1001_s12 }
 0x41d   : > { %v754_v5 = vpop.xlane.xlu1 %753 }
 0x41e   : > { %977 = vrcp.f32 %v754_v5 }
 0x41f   : > { %979 = vrcp.f32 %v550_v6 }
 0x420   : > { %981 = vrcp.f32 %v663_v10 }
 0x421   : > { %983 = vrcp.f32 %v1002_v33 }
 0x424   : > { %v978_v7 = vpop.eup %977 }
 0x425   : > { %v756_v9 = vmul.f32 %v978_v7, %v976_v3  ;;  %v980_v11 = vpop.eup %979 }
 0x426   : > { %v552_v13 = vmul.f32 %v980_v11, %v972_v59  ;;  %v982_v16 = vpop.eup %981 }
 0x427   : > { %942 = vmatmul.msk.f32.vlgmr.msrb.gmra.mxu3 %vm446_vm1, %v756_v9  ;;  %v665_v15 = vmul.f32 %v982_v16, %v974_v61  ;;  %v984_v34 = vpop.eup %983 }
 0x428   : > { %v817_v35 = vmul.f32 32.0, %v984_v34  ;;  %vm821_vm3 = vweird.f32 %v984_v34 }
 0x42a   : > { %v818_v36 = vsub.f32 1.0, %v817_v35 }
 0x42c   : > { %v819_v37 = vmul.f32 %v984_v34, %v818_v36 }
 0x42e   : > { %v820_v38 = vadd.f32 %v984_v34, %v819_v37 }
 0x430   : > { %v822_v39 = vsel %vm821_vm3, %v984_v34, %v820_v38 }
 0x435   : > { %v554_v12 = vpop.permute.xlu1 %553 }
 0x436   : > { %574 = vmatpush.msrb.mxu2 %v554_v12 }
 0x437   : > { %933 = vmatmul.msk.f32.vlgmr.msrb.gmra.mxu2 %vm446_vm1, %v552_v13 }
 0x438   : > { %687 = vmatpush.msra.mxu2 %v667_v14 }
 0x43a   : > { %801 = vmatpush.msrb.mxu2 %v440_v17 }
 0x43f   : > { %938 = vmatmul.msk.f32.vlgmr.msra.gmra.mxu2 %vm446_vm1, %v665_v15 }
 0x4aa   : > { %v780_v20 = vpop.f32.mrf.mxu3 }
 0x4ab   : > { %943 = vmatmul.msk.f32.vlgmr.msrb.gmra.mxu2 %vm446_vm1, %v780_v20 }
 0x4ba   : > { %v576_v21 = vpop.f32.mrf.mxu2 }
 0x4bb   : > { %934 = vmatmul.msk.f32.vlgmr.msrb.gmra.mxu0 %vm446_vm1, %v576_v21 }
 0x4c2   : > { %v689_v22 = vpop.f32.mrf.mxu2 }
 0x4c3   : > { %939 = vmatmul.msk.f32.vlgmr.msra.gmra.mxu0 %vm446_vm1, %v689_v22 }
 0x52e   : > { %v803_v27 = vpop.f32.mrf.mxu2 }
 0x538   : > { %v599_v23 = vpop.f32.mrf.mxu0 }
 0x539   : > { %v623_v24 = vadd.f32 %v1139_v48, %v599_v23 }
 0x540   : > { %v712_v25 = vpop.f32.mrf.mxu0 }
 0x541   : > { %v715_v26 = vadd.f32 %v712_v25, %v623_v24 }
 0x543   : > { %v806_v28 = vadd.f32 %v803_v27, %v715_v26 }
 0x545   : > { %v807_v30 = vadd.f32 %v806_v28, %v1096_v8 }
 0x547   : > { %v812_v31 = vadd.f32 %v964_v29, %v807_v30 }
 0x549   : > { %v813_v32 = vsel %vm382_vm0, %v812_v31, 0.0 }
 0x54a   : > { %814 = vadd.xlane.f32.xlu0 %v813_v32 }
 0x5bd   : > { %v815_v40 = vpop.xlane.xlu0 %814 }
 0x5be   : > { %v823_v41 = vmul.f32 %v822_v39, %v815_v40 }
 0x5c0   : > { %v824_v42 = vsub.f32 %v812_v31, %v823_v41 }
 0x5c2   : > { %v825_v43 = vmul.f32 %v824_v42, %v824_v42 }
 0x5c4   : > { %v826_v44 = vsel %vm382_vm0, %v825_v43, 0.0 }
 0x5c5   : > { %827 = vadd.xlane.f32.xlu1 %v826_v44 }
 0x638   : > { %v828_v8 = vpop.xlane.xlu1 %827 }
 0x639   : > { %v829_v45 = vmul.f32 %v828_v8, %v822_v39 }
 0x63b   : > { %v830_v46 = vadd.f32 1e-05, %v829_v45 }
 0x63d   : > { %985 = vrsqrt.f32 %v830_v46  ;;  %vm837_vm5 = vweird.f32 %v830_v46 }
 0x643   : > { %v986_v47 = vpop.eup %985 }
 0x644   : > { %v832_v48 = vmul.f32 %v986_v47, %v830_v46  ;;  %vm838_vm4 = vweird.f32 %v986_v47 }
 0x645   : > { %vm839_vm6 = vmor %vm837_vm5, %vm838_vm4 }
 0x646   : > { %v833_v49 = vmul.f32 %v986_v47, %v832_v48 }
 0x648   : > { %v834_v50 = vmul.f32 0.5, %v833_v49 }
 0x64a   : > { %v835_v51 = vsub.f32 1.5, %v834_v50 }
 0x64c   : > { %v836_v52 = vmul.f32 %v986_v47, %v835_v51 }
 0x64e   : > { %v840_v54 = vsel %vm839_vm6, %v986_v47, %v836_v52 }
 0x64f   : > { %v841_v56 = vmul.f32 %v840_v54, %v824_v42 }
 0x651   : > { %v846_v57 = vmul.f32 %v965_v53, %v841_v56 }
 0x653   : > { %v851_v58 = vadd.f32 %v966_v55, %v846_v57 }
 0x655   : > { %852 = vst.msk [vmem:[%s371_s28] sm:$0xff] %vm382_vm0, %v851_v58 }
 0x656 PF: > { %s20_s13 = sadd.s32 1, %s993_s13  }
 0x657   : > { %p17_p4 = scmp.ge.s32.totalorder %s20_s13, 4  }
 0x659   :  { %19 = sbr.rel (!%p17_p4) target bundleno = 1 (0x1), region = 93 }

// kernel: forward.16
= control target key start
LH: loop header
LB: loop body
LE: loop exit
PB: predicated region body
PF: predicated region fallthrough
CT: control target
= control target key end

     0   :  { %15 = vsyncpa [#allocation3], 0  ;;  %s1412_s0 = inlined_call_operand.vmem [shape: f32[2,8,32], index: 0, kind: input, shape index: {}]   ;;  %s1413_s1 = inlined_call_operand.vmem [shape: f32[2,9,32], index: 1, kind: input, shape index: {}]   ;;  %s1414_s2 = inlined_call_operand.vmem [shape: f32[32,32], index: 2, kind: input, shape index: {}]   ;;  %s1415_s3 = inlined_call_operand.vmem [shape: f32[1,32], index: 3, kind: input, shape index: {}]   ;;  %s1416_s4 = inlined_call_operand.vmem [shape: f32[32,64], index: 4, kind: input, shape index: {}]   ;;  %s1417_s5 = inlined_call_operand.vmem [shape: f32[1,64], index: 5, kind: input, shape index: {}]   ;;  %s1418_s6 = inlined_call_operand.vmem [shape: f32[32,32], index: 6, kind: input, shape index: {}]   ;;  %s1419_s7 = inlined_call_operand.vmem [shape: f32[1,32], index: 7, kind: input, shape index: {}]   ;;  %s1420_s8 = inlined_call_operand.hbm [shape: f32[1,32], index: 8, kind: input, shape index: {}]   ;;  %s1421_s9 = inlined_call_operand.hbm [shape: f32[1,32], index: 9, kind: input, shape index: {}]   ;;  %s1422_s10 = inlined_call_operand.vmem [shape: f32[2,8,32], index: 10, kind: output, shape index: {}]  }
   0x1   :  { %16 = vsyncpa [#allocation5], 0  ;;  %s1250_s13 = smov 0  }
   0x2 LB: > { %s303_s16 = sshll.u32 %s1420_s8, 4  ;;  %s1004_s17 = sadd.s32 4294967295, %s1183_s13   ;;  %s1183_s13 = sphi %s1250_s13, %s22_s13   ;;  %s304_s16 = int_to_ptr.hbm [resolvable:$true] %s303_s16 }
   0x3   : > { %p1006_p0 = scmp.ge.s32.totalorder %s1183_s13, 1  ;;  %p273_p1 = scmp.lt.s32.totalorder %s1183_s13, 3 }
   0x4   : > { %p1062_p2 = scmp.eq.s32.totalorder %s1004_s17, 0  ;;  %s1185_s19 = smov [#allocation2]  }
   0x5   : > { %p1261_p3 = pnand %p1006_p0, %p273_p1  ;;  %s305_s20 = sshll.u32 %s1185_s19, 4  ;;  %s306_s20 = int_to_ptr.vmem [resolvable:$true] %s305_s20 }
   0x6   : > { %s315_s23 = sshll.u32 %s1421_s9, 4  ;;  %s1186_s24 = smov [#allocation4]   ;;  %s316_s23 = int_to_ptr.hbm [resolvable:$true] %s315_s23 }
   0x7   : > { %p1055_p4 = pneg %p1261_p3  ;;  %s317_s25 = sshll.u32 %s1186_s24, 4  ;;  %s318_s25 = int_to_ptr.vmem [resolvable:$true] %s317_s25 }
   0x8   : > { %345 = sbr.rel (%p1261_p3) target bundleno = 1893 (0x765), region = 60 }
   0x9   : > { %p1056_p5 = pnand %p1062_p2, %p1055_p4 }
   0xb   : > { %1058 = dma.hbm_to_vmem [thread:$0]  (!%p1056_p5), %s304_s16, 16, %s306_s20, [#allocation3]  }
   0xc   : > { %1061 = dma.hbm_to_vmem [thread:$0]  (!%p1056_p5), %s316_s23, 16, %s318_s25, [#allocation5]  }
   0xd   : > { %1174 = dma.done.wait (%p1062_p2), [#allocation3], 16  }
   0xe   : > { %1176 = vsyncadd (%p1062_p2), [#allocation3], 4294967280 }
   0xf   : > { %1178 = dma.done.wait (%p1062_p2), [#allocation5], 16  }
  0x10   : > { %1180 = vsyncadd (%p1062_p2), [#allocation5], 4294967280  ;;  %p392_p6 = scmp.lt.s32.totalorder %s1004_s17, 1  ;;  %v443_v0 = vld [vmem:[%s1416_s4 + $0x18] sm:$0xff]  ;;  %v442_v1 = vld [vmem:[%s1416_s4 + $0x10] sm:$0xff]  ;;  %vm416_vm0 = vcmask 261120  }
  0x11   : > { %466 = vmatpush.msra.mxu1 %v443_v0  ;;  %v411_v2 = vld [vmem:[%s1414_s2 + $0x18] sm:$0xff]  ;;  %v441_v3 = vld [vmem:[%s1416_s4 + $0x8] sm:$0xff]  ;;  %v410_v4 = vld [vmem:[%s1414_s2 + $0x10] sm:$0xff]  ;;  %vm481_vm1 = vcmask 64512   ;;  %s1187_s18 = smov 120   ;;  %s1188_s19 = smov 96  }
  0x12   : > { %s1425_s17 = smov (!%p392_p6, %s1004_s17), 1  ;;  %432 = vmatpush.msra.mxu0 %v411_v2  ;;  %v440_v5 = vld [vmem:[%s1416_s4] sm:$0xff]  ;;  %v409_v6 = vld [vmem:[%s1414_s2 + $0x8] sm:$0xff]  ;;  %vm532_vm2 = vcmask 1040384   ;;  %vm512_vm3 = vcmask 72704   ;;  %s1189_s21 = smov 88  }
  0x13   : > { %s1046_s26 = sshll.u32 %s1425_s17, 4  ;;  %s1013_s11 = sshll.u32 %s1425_s17, 3  ;;  %467 = vmatpush.msra.mxu1 %v442_v1  ;;  %v408_v8 = vld [vmem:[%s1414_s2] sm:$0xff]  ;;  %v478_v56 = vld [vmem:[%s1418_s6 + $0x8] sm:$0xff] }
  0x14   : > { %s400_s15 = scalar_lea.vmem %s1413_s1, %s1046_s26  ;;  %s395_s29 = scalar_lea.vmem %s1412_s0, %s1013_s11  ;;  %433 = vmatpush.msra.mxu0 %v410_v4  ;;  %v1084_v12 = vld [vmem:[%s1417_s5] ss:$0 sm:$0xff] }
  0x15   : > { %v406_v7 = vld [vmem:[%s400_s15] sm:$0xff]  ;;  %468 = vmatpush.msra.mxu1 %v441_v3  ;;  %v407_v10 = vld [vmem:[%s400_s15 + $0x8] sm:$0x1]  ;;  %s1190_s22 = smov 112   ;;  %s1191_s23 = smov 104  }
  0x16   : > { %434 = vmatpush.msra.mxu0 %v409_v6  ;;  %v1313_v9 = vld [vmem:[%s395_s29] sm:$0xff]  ;;  %s1192_s24 = smov 80   ;;  %s1193_s29 = smov 72  }
  0x17   : > { %469 = vmatpush.msra.mxu1 %v440_v5  ;;  %v1085_v15 = vld [vmem:[%s1415_s3] ss:$0 sm:$0xff] }
  0x18   : > { %1018 = vmatmul.msk.f32.vlgmr.msra.gmra.mxu1 %vm416_vm0, %v406_v7  ;;  %435 = vmatpush.msra.mxu0 %v408_v8  ;;  %v477_v38 = vld [vmem:[%s1418_s6] sm:$0xff] }
  0x19   : > { %1017 = vmatmul.msk.f32.vlgmr.msra.gmra.mxu0 %vm416_vm0, %v1313_v9 }
  0x20   : > { %1019 = vmatmul.msk.f32.gmra.mxu1 %vm416_vm0, %v407_v10 }
  0x95   : > { %v471_v11 = vpop.f32.mrf.mxu1 }
  0x96   : > { %v437_v16 = vpop.f32.mrf.mxu0  ;;  %v1332_v17 = vadd.f32 %v1084_v12, %v471_v11 }
  0x97   : > { %v438_v18 = vadd.f32 %v1085_v15, %v437_v16 }
  0x9d   : > { %v474_v13 = vpop.f32.mrf.mxu1 }
  0x9e   : > { %v1322_v14 = vadd.f32 %v1084_v12, %v474_v13 }
  0xa0   : > { %559 = vrot.lane.b32.xlu2 %v1322_v14, %s1187_s18  ;;  %526 = vrot.lane.b32.xlu1 %v1322_v14, %s1188_s19 }
  0xa1   : > { %1020 = vmatpush.xpose.msk.msra.mxu2 %vm481_vm1, %v1322_v14 }
  0xa5   : > { %1021 = vmatpush.xpose.msk.msra.mxu2 %vm481_vm1, %v1332_v17 }
  0xa8   : > { %1022 = vmatmul.msk.f32.vlgmr.msra.gmra.mxu2 %vm481_vm1, %v438_v18  ;;  %557 = vrot.lane.b32.xlu2 %v1332_v17, %s1187_s18 }
  0xa9   : > { %524 = vrot.lane.b32.xlu1 %v1332_v17, %s1188_s19  ;;  %647 = vmatpush.msrb.mxu2 %v478_v56  ;;  %v1087_v56 = vld [vmem:[#allocation2] ss:$0 sm:$0xff] }
  0xfa   : > { %v560_v20 = vpop.permute.xlu2 %559 }
 0x102   : > { %v558_v22 = vpop.permute.xlu2 %557 }
 0x112   : > { %v527_v19 = vpop.permute.xlu1 %526 }
 0x113   : > { %1023 = vmatpush.msk.msra.mxu3 %vm532_vm2, %v527_v19 }
 0x11b   : > { %v525_v21 = vpop.permute.xlu1 %524 }
 0x11c   : > { %550 = vmatpush.msra.mxu3 %v525_v21 }
 0x11e   : > { %1025 = vmatpush.xpose.msk.msrb.mxu3 %vm481_vm1, %v560_v20 }
 0x122   : > { %1026 = vmatpush.xpose.msk.msrb.mxu3 %vm481_vm1, %v558_v22 }
 0x12b   : > { %v508_v23 = vpop.f32.mrf.mxu2 }
 0x12c   : > { %v511_v24 = vmul.f32 0.35355338, %v508_v23 }
 0x12e   : > { %v513_v25 = vsel %vm512_vm3, %v511_v24, -inf }
 0x12f   : > { %514 = vmax.xlane.f32.xlu0 %v513_v25 }
 0x1a2   : > { %v515_v26 = vpop.xlane.xlu0 %514 }
 0x1a3   : > { %v516_v27 = vsub.f32 %v511_v24, %v515_v26 }
 0x1a5   : > { %v517_v28 = vmul.f32 1.442695, %v516_v27 }
 0x1a7   : > { %1089 = vpow2.f32 %v517_v28 }
 0x1ad   : > { %v1090_v29 = vpop.eup %1089 }
 0x1ae   : > { %v519_v30 = vsel %vm512_vm3, %v1090_v29, 0.0 }
 0x1af   : > { %520 = vadd.xlane.f32.xlu0 %v519_v30 }
 0x1c3   : > { %555 = vrot.lane.b32.xlu0 %v438_v18, %s1187_s18 }
 0x1cb   : > { %601 = vrot.lane.b32.xlu0 %v1322_v14, %s1189_s21 }
 0x1d3   : > { %599 = vrot.lane.b32.xlu0 %v1332_v17, %s1189_s21  ;;  %s404_s21 = scalar_lea.vmem %s1422_s10, %s1013_s11 }
 0x1db   : > { %679 = vrot.lane.b32.xlu0 %v1322_v14, %s1190_s22 }
 0x1e3   : > { %775 = vrot.lane.b32.xlu0 %v1332_v17, %s1191_s23 }
 0x1eb   : > { %675 = vrot.lane.b32.xlu0 %v438_v18, %s1190_s22 }
 0x1f3   : > { %773 = vrot.lane.b32.xlu0 %v438_v18, %s1191_s23 }
 0x1fb   : > { %719 = vrot.lane.b32.xlu0 %v1332_v17, %s1192_s24 }
 0x222   : > { %v521_v31 = vpop.xlane.xlu0 %520 }
 0x223   : > { %1091 = vrcp.f32 %v521_v31 }
 0x229   : > { %v1092_v32 = vpop.eup %1091 }
 0x22a   : > { %v523_v33 = vmul.f32 %v1092_v32, %v1090_v29  ;;  %v1086_v32 = vld [vmem:[%s1419_s7] ss:$0 sm:$0xff] }
 0x22c   : > { %1024 = vmatmul.msk.f32.vlgmr.msra.gmra.mxu3 %vm512_vm3, %v523_v33 }
 0x22d   : > { %670 = vmatpush.msra.mxu3 %v477_v38 }
 0x235   : > { %v556_v34 = vpop.permute.xlu0 %555 }
 0x236   : > { %1027 = vmatmul.msk.f32.vlgmr.msrb.gmra.mxu3 %vm481_vm1, %v556_v34 }
 0x23d   : > { %v602_v35 = vpop.permute.xlu0 %601 }
 0x23e   : > { %1028 = vmatpush.msk.msrb.mxu0 %vm532_vm2, %v602_v35 }
 0x245   : > { %v600_v36 = vpop.permute.xlu0 %599 }
 0x246   : > { %624 = vmatpush.msrb.mxu0 %v600_v36  ;;  %v1194_v36 = vmov 32.0  }
 0x24d   : > { %v680_v37 = vpop.permute.xlu0 %679 }
 0x24e   : > { %1032 = vmatpush.xpose.msk.msra.mxu0 %vm481_vm1, %v680_v37 }
 0x255   : > { %v776_v49 = vpop.permute.xlu0 %775 }
 0x25d   : > { %v676_v51 = vpop.permute.xlu0 %675 }
 0x265   : > { %v774_v55 = vpop.permute.xlu0 %773 }
 0x26d   : > { %v720_v8 = vpop.permute.xlu0 %719 }
 0x2af   : > { %v552_v39 = vpop.f32.mrf.mxu3 }
 0x2b0   : > { %1031 = vmatmul.msk.f32.vlgmr.msra.gmra.mxu3 %vm481_vm1, %v552_v39 }
 0x2b9   : > { %v584_v40 = vpop.f32.mrf.mxu3 }
 0x2ba   : > { %v587_v41 = vmul.f32 0.35355338, %v584_v40 }
 0x2bc   : > { %v588_v42 = vsel %vm512_vm3, %v587_v41, -inf }
 0x2bd   : > { %589 = vmax.xlane.f32.xlu1 %v588_v42 }
 0x2d6   : > { %677 = vrot.lane.b32.xlu1 %v1332_v17, %s1190_s22 }
 0x330   : > { %v590_v43 = vpop.xlane.xlu1 %589 }
 0x331   : > { %v591_v44 = vsub.f32 %v587_v41, %v590_v43 }
 0x333   : > { %v592_v45 = vmul.f32 1.442695, %v591_v44  ;;  %v672_v58 = vpop.f32.mrf.mxu3 }
 0x335   : > { %1093 = vpow2.f32 %v592_v45 }
 0x33b   : > { %v1094_v46 = vpop.eup %1093 }
 0x33c   : > { %v594_v47 = vsel %vm512_vm3, %v1094_v46, 0.0 }
 0x33d   : > { %595 = vadd.xlane.f32.xlu2 %v594_v47 }
 0x348   : > { %v678_v48 = vpop.permute.xlu1 %677 }
 0x349   : > { %1033 = vmatpush.xpose.msk.msra.mxu0 %vm481_vm1, %v678_v48 }
 0x355   : > { %777 = vrot.lane.b32.xlu2 %v1322_v14, %s1191_s23 }
 0x3b0   : > { %v596_v50 = vpop.xlane.xlu2 %595 }
 0x3b1   : > { %1095 = vrcp.f32 %v596_v50 }
 0x3b7   : > { %v1096_v52 = vpop.eup %1095 }
 0x3b8   : > { %v778_v53 = vpop.permute.xlu2 %777  ;;  %v598_v54 = vmul.f32 %v1096_v52, %v1094_v46 }
 0x3b9   : > { %1038 = vmatpush.xpose.msk.msrb.mxu3 %vm481_vm1, %v778_v53 }
 0x3ba   : > { %1029 = vmatmul.msk.f32.vlgmr.msrb.gmra.mxu0 %vm512_vm3, %v598_v54 }
 0x3bd   : > { %1039 = vmatpush.xpose.msk.msrb.mxu3 %vm481_vm1, %v776_v49 }
 0x3c0   : > { %1040 = vmatmul.msk.f32.vlgmr.msrb.gmra.mxu3 %vm481_vm1, %v774_v55 }
 0x3c2   : > { %1034 = vmatmul.msk.f32.vlgmr.msra.gmra.mxu0 %vm481_vm1, %v676_v51 }
 0x437   : > { %v626_v57 = vpop.f32.mrf.mxu0 }
 0x438   : > { %1030 = vmatmul.msk.f32.vlgmr.msrb.gmra.mxu2 %vm481_vm1, %v626_v57 }
 0x43f   : > { %v704_v59 = vpop.f32.mrf.mxu0 }
 0x440   : > { %v707_v60 = vmul.f32 0.35355338, %v704_v59 }
 0x442   : > { %v708_v61 = vsel %vm512_vm3, %v707_v60, -inf }
 0x443   : > { %709 = vmax.xlane.f32.xlu2 %v708_v61  ;;  %v802_v62 = vpop.f32.mrf.mxu3 }
 0x444   : > { %v805_v63 = vmul.f32 0.35355338, %v802_v62 }
 0x446   : > { %v806_v0 = vsel %vm512_vm3, %v805_v63, -inf }
 0x447   : > { %807 = vmax.xlane.f32.xlu1 %v806_v0 }
 0x45b   : > { %721 = vrot.lane.b32.xlu2 %v1322_v14, %s1192_s24 }
 0x4b6   : > { %v710_v1 = vpop.xlane.xlu2 %709 }
 0x4b7   : > { %v711_v2 = vsub.f32 %v707_v60, %v710_v1 }
 0x4b9   : > { %v712_v3 = vmul.f32 1.442695, %v711_v2 }
 0x4ba   : > { %v808_v4 = vpop.xlane.xlu1 %807 }
 0x4bb   : > { %1097 = vpow2.f32 %v712_v3  ;;  %v809_v5 = vsub.f32 %v805_v63, %v808_v4  ;;  %v649_v26 = vpop.f32.mrf.mxu2 }
 0x4bc   : > { %v673_v28 = vadd.f32 %v672_v58, %v649_v26  ;;  %v1088_v58 = vld [vmem:[#allocation4] ss:$0 sm:$0xff] }
 0x4bd   : > { %v810_v6 = vmul.f32 1.442695, %v809_v5 }
 0x4be   : > { %v722_v7 = vpop.permute.xlu2 %721 }
 0x4bf   : > { %1099 = vpow2.f32 %v810_v6  ;;  %1035 = vmatpush.msk.msrb.mxu1 %vm532_vm2, %v722_v7 }
 0x4c1   : > { %v1098_v10 = vpop.eup %1097  ;;  %744 = vmatpush.msrb.mxu1 %v720_v8 }
 0x4c2   : > { %v714_v11 = vsel %vm512_vm3, %v1098_v10, 0.0 }
 0x4c3   : > { %715 = vadd.xlane.f32.xlu0 %v714_v11 }
 0x4c5   : > { %v1100_v12 = vpop.eup %1099 }
 0x4c6   : > { %v812_v13 = vsel %vm512_vm3, %v1100_v12, 0.0 }
 0x4c7   : > { %813 = vadd.xlane.f32.xlu1 %v812_v13 }
 0x4d7   : > { %817 = vrot.lane.b32.xlu0 %v1332_v17, %s1193_s29  ;;  %v480_v17 = vld [vmem:[%s1418_s6 + $0x18] sm:$0xff] }
 0x4d8   : > { %865 = vmatpush.msra.mxu1 %v480_v17 }
 0x4e0   : > { %819 = vrot.lane.b32.xlu1 %v1322_v14, %s1193_s29  ;;  %v479_v14 = vld [vmem:[%s1418_s6 + $0x10] sm:$0xff] }
 0x4e1   : > { %767 = vmatpush.msra.mxu2 %v479_v14 }
 0x536   : > { %v716_v15 = vpop.xlane.xlu0 %715 }
 0x537   : > { %1101 = vrcp.f32 %v716_v15 }
 0x53a   : > { %v814_v19 = vpop.xlane.xlu1 %813 }
 0x53b   : > { %1103 = vrcp.f32 %v814_v19 }
 0x53c   : > { %1105 = vrcp.f32 %v1194_v36 }
 0x53d   : > { %v1102_v16 = vpop.eup %1101 }
 0x53e   : > { %v718_v18 = vmul.f32 %v1102_v16, %v1098_v10 }
 0x540   : > { %1036 = vmatmul.msk.f32.vlgmr.msrb.gmra.mxu1 %vm512_vm3, %v718_v18 }
 0x541   : > { %v1104_v20 = vpop.eup %1103 }
 0x542   : > { %v816_v22 = vmul.f32 %v1104_v20, %v1100_v12  ;;  %v1106_v37 = vpop.eup %1105 }
 0x543   : > { %v881_v38 = vmul.f32 32.0, %v1106_v37  ;;  %vm885_vm4 = vweird.f32 %v1106_v37 }
 0x545   : > { %v882_v39 = vsub.f32 1.0, %v881_v38 }
 0x547   : > { %v883_v40 = vmul.f32 %v1106_v37, %v882_v39 }
 0x549   : > { %v818_v23 = vpop.permute.xlu0 %817  ;;  %v884_v41 = vadd.f32 %v1106_v37, %v883_v40 }
 0x54b   : > { %v886_v42 = vsel %vm885_vm4, %v1106_v37, %v884_v41 }
 0x552   : > { %v820_v21 = vpop.permute.xlu1 %819 }
 0x553   : > { %1041 = vmatpush.msk.msrb.mxu0 %vm532_vm2, %v820_v21 }
 0x555   : > { %842 = vmatpush.msrb.mxu0 %v818_v23 }
 0x556   : > { %1042 = vmatmul.msk.f32.vlgmr.msrb.gmra.mxu0 %vm512_vm3, %v816_v22 }
 0x5bd   : > { %v746_v24 = vpop.f32.mrf.mxu1 }
 0x5be   : > { %1037 = vmatmul.msk.f32.vlgmr.msra.gmra.mxu2 %vm481_vm1, %v746_v24 }
 0x5d3   : > { %v844_v25 = vpop.f32.mrf.mxu0 }
 0x5d4   : > { %1043 = vmatmul.msk.f32.vlgmr.msra.gmra.mxu1 %vm481_vm1, %v844_v25 }
 0x641   : > { %v769_v27 = vpop.f32.mrf.mxu2 }
 0x642   : > { %v772_v29 = vadd.f32 %v769_v27, %v673_v28 }
 0x651   : > { %v867_v30 = vpop.f32.mrf.mxu1 }
 0x652   : > { %v870_v31 = vadd.f32 %v867_v30, %v772_v29 }
 0x654   : > { %v871_v33 = vadd.f32 %v870_v31, %v1313_v9 }
 0x656   : > { %v876_v34 = vadd.f32 %v1086_v32, %v871_v33 }
 0x658   : > { %v877_v35 = vsel %vm416_vm0, %v876_v34, 0.0 }
 0x659   : > { %878 = vadd.xlane.f32.xlu2 %v877_v35 }
 0x6cc   : > { %v879_v43 = vpop.xlane.xlu2 %878 }
 0x6cd   : > { %v887_v44 = vmul.f32 %v886_v42, %v879_v43 }
 0x6cf   : > { %v888_v45 = vsub.f32 %v876_v34, %v887_v44 }
 0x6d1   : > { %v889_v46 = vmul.f32 %v888_v45, %v888_v45 }
 0x6d3   : > { %v890_v47 = vsel %vm416_vm0, %v889_v46, 0.0 }
 0x6d4   : > { %891 = vadd.xlane.f32.xlu0 %v890_v47 }
 0x747   : > { %v892_v9 = vpop.xlane.xlu0 %891 }
 0x748   : > { %v893_v48 = vmul.f32 %v892_v9, %v886_v42 }
 0x74a   : > { %v894_v49 = vadd.f32 1e-05, %v893_v48 }
 0x74c   : > { %1107 = vrsqrt.f32 %v894_v49  ;;  %vm901_vm6 = vweird.f32 %v894_v49 }
 0x752   : > { %v1108_v50 = vpop.eup %1107 }
 0x753   : > { %v896_v51 = vmul.f32 %v1108_v50, %v894_v49  ;;  %vm902_vm5 = vweird.f32 %v1108_v50 }
 0x754   : > { %vm903_vm7 = vmor %vm901_vm6, %vm902_vm5 }
 0x755   : > { %v897_v52 = vmul.f32 %v1108_v50, %v896_v51 }
 0x757   : > { %v898_v53 = vmul.f32 0.5, %v897_v52 }
 0x759   : > { %v899_v54 = vsub.f32 1.5, %v898_v53 }
 0x75b   : > { %v900_v55 = vmul.f32 %v1108_v50, %v899_v54 }
 0x75d   : > { %v904_v57 = vsel %vm903_vm7, %v1108_v50, %v900_v55 }
 0x75e   : > { %v905_v59 = vmul.f32 %v904_v57, %v888_v45 }
 0x760   : > { %v910_v60 = vmul.f32 %v1087_v56, %v905_v59 }
 0x762   : > { %v915_v61 = vadd.f32 %v1088_v58, %v910_v60 }
 0x764   : > { %916 = vst.msk [vmem:[%s404_s21] sm:$0xff] %vm416_vm0, %v915_v61 }
 0x765 PF: > { %s22_s13 = sadd.s32 1, %s1183_s13  }
 0x766   : > { %p19_p7 = scmp.ge.s32.totalorder %s22_s13, 4  }
 0x768   :  { %21 = sbr.rel (!%p19_p7) target bundleno = 2 (0x2), region = 102 }
 0x76d   :  { %936 = vsyncpa [#allocation3], 1 }
 0x76e   :  { %938 = vsyncpa [#allocation3 + $0x1], 1 }
 0x76f   :  { %939 = vsyncpa [#allocation5], 1 }

// kernel: forward.17
= control target key start
LH: loop header
LB: loop body
LE: loop exit
PB: predicated region body
PF: predicated region fallthrough
CT: control target
= control target key end

     0   :  { %s516_s24 = smov 0   ;;  %s592_s0 = inlined_call_operand.vmem [shape: f32[2,8,32], index: 0, kind: input, shape index: {}]   ;;  %s593_s1 = inlined_call_operand.vmem [shape: f32[32,64], index: 1, kind: input, shape index: {}]   ;;  %s594_s2 = inlined_call_operand.vmem [shape: f32[1,64], index: 2, kind: input, shape index: {}]   ;;  %s595_s3 = inlined_call_operand.vmem [shape: f32[64,32], index: 3, kind: input, shape index: {}]   ;;  %s596_s4 = inlined_call_operand.vmem [shape: f32[1,32], index: 4, kind: input, shape index: {}]   ;;  %s597_s5 = inlined_call_operand.vmem [shape: f32[1,32], index: 5, kind: input, shape index: {}]   ;;  %s598_s6 = inlined_call_operand.vmem [shape: f32[1,32], index: 6, kind: input, shape index: {}]   ;;  %s599_s7 = inlined_call_operand.vmem [shape: f32[2,8,32], index: 7, kind: output, shape index: {}]  }
   0x1 LB: > { %s439_s25 = sadd.s32 4294967295, %s473_s24   ;;  %p443_p0 = scmp.ge.s32.totalorder %s473_s24, 1  ;;  %s473_s24 = sphi %s516_s24, %s17_s24  }
   0x2   : > { %p236_p1 = scmp.lt.s32.totalorder %s473_s24, 3 }
   0x4   : > { %p237_p2 = pnand %p443_p0, %p236_p1 }
   0x5   : > { %p266_p3 = scmp.lt.s32.totalorder (!%p237_p2), %s439_s25, 1 }
   0x6   : > { %240 = sbr.rel (%p237_p2) target bundleno = 548 (0x224), region = 48 }
   0xb   : > { %v278_v0 = vld [vmem:[%s593_s1 + $0x18] sm:$0xff]  ;;  %v277_v1 = vld [vmem:[%s593_s1 + $0x10] sm:$0xff]  ;;  %v276_v4 = vld [vmem:[%s593_s1 + $0x8] sm:$0xff]  ;;  %s601_s25 = smov (!%p266_p3, %s439_s25), 1  ;;  %vm283_vm0 = vcmask 261120   ;;  %vm316_vm1 = vcmask 523264  }
   0xc   : > { %299 = vmatpush.msra.mxu0 %v278_v0  ;;  %v315_v2 = vld [vmem:[%s595_s3 + $0x38] sm:$0xff]  ;;  %v314_v3 = vld [vmem:[%s595_s3 + $0x30] sm:$0xff]  ;;  %v313_v5 = vld [vmem:[%s595_s3 + $0x28] sm:$0xff]  ;;  %s444_s17 = sshll.u32 %s601_s25, 3  ;;  %v475_v22 = vmov 32.0  }
   0xd   : > { %328 = vmatpush.msra.mxu1 %v315_v2  ;;  %v275_v6 = vld [vmem:[%s593_s1] sm:$0xff]  ;;  %s269_s20 = scalar_lea.vmem %s592_s0, %s444_s17  ;;  %v311_v9 = vld [vmem:[%s595_s3 + $0x18] sm:$0xff]  ;;  %v310_v10 = vld [vmem:[%s595_s3 + $0x10] sm:$0xff]  ;;  %463 = vrcp.f32 %v475_v22  ;;  %s273_s21 = scalar_lea.vmem %s599_s7, %s444_s17 }
   0xe   : > { %300 = vmatpush.msra.mxu0 %v277_v1  ;;  %v312_v7 = vld [vmem:[%s595_s3 + $0x20] sm:$0xff]  ;;  %v309_v11 = vld [vmem:[%s595_s3 + $0x8] sm:$0xff] }
   0xf   : > { %329 = vmatpush.msra.mxu1 %v314_v3  ;;  %v274_v8 = vld [vmem:[%s269_s20] sm:$0xff] }
  0x10   : > { %301 = vmatpush.msra.mxu0 %v276_v4  ;;  %v308_v12 = vld [vmem:[%s595_s3] sm:$0xff] }
  0x11   : > { %330 = vmatpush.msra.mxu1 %v313_v5  ;;  %v459_v13 = vld [vmem:[%s594_s2] ss:$0 sm:$0xff] }
  0x12   : > { %302 = vmatpush.msra.mxu0 %v275_v6  ;;  %v460_v17 = vld [vmem:[%s596_s4] ss:$0 sm:$0xff] }
  0x13   : > { %446 = vmatmul.msk.f32.vlgmr.msra.gmra.mxu0 %vm283_vm0, %v274_v8  ;;  %331 = vmatpush.msra.mxu1 %v312_v7  ;;  %v464_v23 = vpop.eup %463  ;;  %v461_v43 = vld [vmem:[%s597_s5] ss:$0 sm:$0xff] }
  0x14   : > { %v350_v24 = vmul.f32 32.0, %v464_v23  ;;  %vm354_vm2 = vweird.f32 %v464_v23  ;;  %v462_v45 = vld [vmem:[%s598_s6] ss:$0 sm:$0xff] }
  0x15   : > { %332 = vmatpush.msra.mxu1 %v311_v9 }
  0x16   : > { %v351_v25 = vsub.f32 1.0, %v350_v24 }
  0x17   : > { %333 = vmatpush.msra.mxu1 %v310_v10 }
  0x18   : > { %v352_v26 = vmul.f32 %v464_v23, %v351_v25 }
  0x19   : > { %334 = vmatpush.msra.mxu1 %v309_v11 }
  0x1a   : > { %v353_v27 = vadd.f32 %v464_v23, %v352_v26 }
  0x1b   : > { %335 = vmatpush.msra.mxu1 %v308_v12 }
  0x1c   : > { %v355_v28 = vsel %vm354_vm2, %v464_v23, %v353_v27 }
  0x90   : > { %v304_v14 = vpop.f32.mrf.mxu0 }
  0x91   : > { %v305_v15 = vadd.f32 %v459_v13, %v304_v14 }
  0x93   : > { %v307_v16 = vmax.f32 %v305_v15, 0.0 }
  0x95   : > { %447 = vmatmul.msk.f32.vlgmr.msra.gmra.mxu1 %vm316_vm1, %v307_v16 }
 0x112   : > { %v337_v18 = vpop.f32.mrf.mxu1 }
 0x113   : > { %v340_v19 = vadd.f32 %v337_v18, %v274_v8 }
 0x115   : > { %v345_v20 = vadd.f32 %v460_v17, %v340_v19 }
 0x117   : > { %v346_v21 = vsel %vm283_vm0, %v345_v20, 0.0 }
 0x118   : > { %347 = vadd.xlane.f32.xlu0 %v346_v21 }
 0x18b   : > { %v348_v29 = vpop.xlane.xlu0 %347 }
 0x18c   : > { %v356_v30 = vmul.f32 %v355_v28, %v348_v29 }
 0x18e   : > { %v357_v31 = vsub.f32 %v345_v20, %v356_v30 }
 0x190   : > { %v358_v32 = vmul.f32 %v357_v31, %v357_v31 }
 0x192   : > { %v359_v33 = vsel %vm283_vm0, %v358_v32, 0.0 }
 0x193   : > { %360 = vadd.xlane.f32.xlu0 %v359_v33 }
 0x206   : > { %v361_v34 = vpop.xlane.xlu0 %360 }
 0x207   : > { %v362_v35 = vmul.f32 %v361_v34, %v355_v28 }
 0x209   : > { %v363_v36 = vadd.f32 1e-05, %v362_v35 }
 0x20b   : > { %465 = vrsqrt.f32 %v363_v36  ;;  %vm370_vm4 = vweird.f32 %v363_v36 }
 0x211   : > { %v466_v37 = vpop.eup %465 }
 0x212   : > { %v365_v38 = vmul.f32 %v466_v37, %v363_v36  ;;  %vm371_vm3 = vweird.f32 %v466_v37 }
 0x213   : > { %vm372_vm5 = vmor %vm370_vm4, %vm371_vm3 }
 0x214   : > { %v366_v39 = vmul.f32 %v466_v37, %v365_v38 }
 0x216   : > { %v367_v40 = vmul.f32 0.5, %v366_v39 }
 0x218   : > { %v368_v41 = vsub.f32 1.5, %v367_v40 }
 0x21a   : > { %v369_v42 = vmul.f32 %v466_v37, %v368_v41 }
 0x21c   : > { %v373_v44 = vsel %vm372_vm5, %v466_v37, %v369_v42 }
 0x21d   : > { %v374_v46 = vmul.f32 %v373_v44, %v357_v31 }
 0x21f   : > { %v379_v47 = vmul.f32 %v461_v43, %v374_v46 }
 0x221   : > { %v384_v48 = vadd.f32 %v462_v45, %v379_v47 }
 0x223   : > { %385 = vst.msk [vmem:[%s273_s21] sm:$0xff] %vm283_vm0, %v384_v48 }
 0x224 PF: > { %s17_s24 = sadd.s32 1, %s473_s24  }
 0x225   : > { %p14_p4 = scmp.ge.s32.totalorder %s17_s24, 4  }
 0x227   :  { %16 = sbr.rel (!%p14_p4) target bundleno = 1 (0x1), region = 78 }

// kernel: forward.21
= control target key start
LH: loop header
LB: loop body
LE: loop exit
PB: predicated region body
PF: predicated region fallthrough
CT: control target
= control target key end

     0   :  { %vm24_vm0 = vcmask 261120   ;;  %s114_s1 = inlined_call_operand.vmem [shape: f32[32,128], index: 1, kind: input, shape index: {}]   ;;  %s115_s2 = inlined_call_operand.vmem [shape: f32[1,128], index: 2, kind: input, shape index: {}]   ;;  %s116_s0 = inlined_call_operand.vmem [shape: f32[16,32], index: 0, kind: input, shape index: {}]   ;;  %s117_s3 = inlined_call_operand.vmem [shape: f32[16,128], index: 3, kind: output, shape index: {}]  }
   0x1   :  { %v19_v0 = vld [vmem:[%s114_s1 + $0x18] sm:$0xff]  ;;  %v18_v1 = vld [vmem:[%s114_s1 + $0x10] sm:$0xff]  ;;  %v17_v2 = vld [vmem:[%s114_s1 + $0x8] sm:$0xff] }
   0x2   :  { %43 = vmatpush.msra.mxu0 %v19_v0  ;;  %62 = vmatpush.msra.mxu1 %v19_v0  ;;  %v16_v3 = vld [vmem:[%s114_s1] sm:$0xff]  ;;  %v15_v5 = vld [vmem:[%s116_s0 + $0x8] sm:$0xff] }
   0x3   :  { %v14_v4 = vld [vmem:[%s116_s0] sm:$0xff] }
   0x4   :  { %44 = vmatpush.msra.mxu0 %v18_v1  ;;  %63 = vmatpush.msra.mxu1 %v18_v1  ;;  %v66_v6 = vld [vmem:[%s115_s2] ss:$0 sm:$0xff] }
   0x6   :  { %45 = vmatpush.msra.mxu0 %v17_v2  ;;  %64 = vmatpush.msra.mxu1 %v17_v2 }
   0x8   :  { %46 = vmatpush.msra.mxu0 %v16_v3  ;;  %65 = vmatpush.msra.mxu1 %v16_v3 }
   0x9   :  { %60 = vmatmul.msk.f32.vlgmr.msra.gmra.mxu0 %vm24_vm0, %v14_v4  ;;  %61 = vmatmul.msk.f32.vlgmr.msra.gmra.mxu1 %vm24_vm0, %v15_v5 }
  0x86   :  { %v48_v7 = vpop.f32.mrf.mxu0  ;;  %v51_v8 = vpop.f32.mrf.mxu1 }
  0x87   :  { %v49_v9 = vadd.f32 %v66_v6, %v48_v7  ;;  %v52_v10 = vadd.f32 %v66_v6, %v51_v8 }
  0x89   :  { %54 = vst [vmem:[%s117_s3] sm:$0xff] %v49_v9 }
  0x8a   :  { %55 = vst [vmem:[%s117_s3 + $0x8] sm:$0xff] %v52_v10 }

// kernel: forward.18
= control target key start
LH: loop header
LB: loop body
LE: loop exit
PB: predicated region body
PF: predicated region fallthrough
CT: control target
= control target key end

     0   :  { %15 = vsyncpa [#allocation3], 0  ;;  %s1508_s0 = inlined_call_operand.vmem [shape: f32[2,8,32], index: 0, kind: input, shape index: {}, may-alias: {0,1}]   ;;  %s1509_s1 = inlined_call_operand.vmem [shape: f32[2,8,32], index: 1, kind: input, shape index: {}, may-alias: {0,1}]   ;;  %s1510_s2 = inlined_call_operand.vmem [shape: f32[32,32], index: 2, kind: input, shape index: {}]   ;;  %s1511_s3 = inlined_call_operand.vmem [shape: f32[1,32], index: 3, kind: input, shape index: {}]   ;;  %s1512_s4 = inlined_call_operand.vmem [shape: f32[32,64], index: 4, kind: input, shape index: {}]   ;;  %s1513_s5 = inlined_call_operand.hbm [shape: f32[1,64], index: 5, kind: input, shape index: {}]   ;;  %s1514_s6 = inlined_call_operand.vmem [shape: f32[32,32], index: 6, kind: input, shape index: {}]   ;;  %s1515_s7 = inlined_call_operand.hbm [shape: f32[1,32], index: 7, kind: input, shape index: {}]   ;;  %s1516_s8 = inlined_call_operand.hbm [shape: f32[1,32], index: 8, kind: input, shape index: {}]   ;;  %s1517_s9 = inlined_call_operand.hbm [shape: f32[1,32], index: 9, kind: input, shape index: {}]   ;;  %s1518_s10 = inlined_call_operand.vmem [shape: f32[2,8,32], index: 10, kind: output, shape index: {}]  }
   0x1   :  { %16 = vsyncpa [#allocation5], 0 }
   0x2   :  { %17 = vsyncpa [#allocation8], 0  ;;  %s1343_s13 = smov 0  }
   0x3 LB: > { %s310_s16 = sshll.u32 %s1515_s7, 4  ;;  %s1352_s17 = sadd.s32 4294967295, %s1274_s13   ;;  %s1274_s13 = sphi %s1343_s13, %s23_s13   ;;  %s311_s16 = int_to_ptr.hbm [resolvable:$true] %s310_s16 }
   0x4   : > { %p1020_p0 = scmp.ge.s32.totalorder %s1274_s13, 1  ;;  %p274_p1 = scmp.lt.s32.totalorder %s1274_s13, 3 }
   0x5   : > { %p1083_p2 = scmp.eq.s32.totalorder %s1352_s17, 0  ;;  %s1276_s19 = smov [#allocation4]  }
   0x6   : > { %p1357_p3 = pnand %p1020_p0, %p274_p1  ;;  %s312_s20 = sshll.u32 %s1276_s19, 4  ;;  %s313_s20 = int_to_ptr.vmem [resolvable:$true] %s312_s20 }
   0x7   : > { %s295_s23 = sshll.u32 %s1513_s5, 4  ;;  %s322_s26 = sshll.u32 %s1516_s8, 4  ;;  %s296_s23 = int_to_ptr.hbm [resolvable:$true] %s295_s23  ;;  %s323_s26 = int_to_ptr.hbm [resolvable:$true] %s322_s26 }
   0x8   : > { %p1070_p4 = pneg %p1357_p3  ;;  %s1277_s28 = smov [#allocation2]  }
   0x9   : > { %s297_s29 = sshll.u32 %s1277_s28, 4  ;;  %s1278_s30 = smov [#allocation6]   ;;  %s298_s29 = int_to_ptr.vmem [resolvable:$true] %s297_s29 }
   0xa   : > { %p1371_p5 = pnand %p1083_p2, %p1070_p4  ;;  %s324_s11 = sshll.u32 %s1278_s30, 4  ;;  %s325_s11 = int_to_ptr.vmem [resolvable:$true] %s324_s11 }
   0xb   : > { %s334_s15 = sshll.u32 %s1517_s9, 4  ;;  %s1279_s19 = smov [#allocation7]   ;;  %s335_s15 = int_to_ptr.hbm [resolvable:$true] %s334_s15 }
   0xc   : > { %1076 = dma.hbm_to_vmem [thread:$0]  (!%p1371_p5), %s311_s16, 16, %s313_s20, [#allocation5]  }
   0xd   : > { %1073 = dma.hbm_to_vmem [thread:$0]  (!%p1371_p5), %s296_s23, 16, %s298_s29, [#allocation3]  }
   0xe   : > { %1079 = dma.hbm_to_vmem [thread:$0]  (!%p1371_p5), %s323_s26, 16, %s325_s11, [#allocation5]  }
   0xf   : > { %s336_s21 = sshll.u32 %s1279_s19, 4  ;;  %363 = sbr.rel (%p1357_p3) target bundleno = 1636 (0x664), region = 60  ;;  %s337_s21 = int_to_ptr.vmem [resolvable:$true] %s336_s21 }
  0x10   : > { %1082 = dma.hbm_to_vmem [thread:$0]  (!%p1371_p5), %s335_s15, 16, %s337_s21, [#allocation8]  }
  0x14   : > { %1261 = dma.done.wait (%p1083_p2), [#allocation3], 16  }
  0x15   : > { %1263 = vsyncadd (%p1083_p2), [#allocation3], 4294967280 }
  0x16   : > { %1265 = dma.done.wait (%p1083_p2), [#allocation5], 32  }
  0x17   : > { %1267 = vsyncadd (%p1083_p2), [#allocation5], 4294967264 }
  0x18   : > { %1269 = dma.done.wait (%p1083_p2), [#allocation8], 16  }
  0x19   : > { %1271 = vsyncadd (%p1083_p2), [#allocation8], 4294967280  ;;  %p419_p6 = scmp.lt.s32.totalorder %s1352_s17, 1  ;;  %v436_v0 = vld [vmem:[%s1510_s2 + $0x18] sm:$0xff]  ;;  %v435_v2 = vld [vmem:[%s1510_s2 + $0x10] sm:$0xff]  ;;  %vm441_vm0 = vcmask 261120   ;;  %v500_v18 = vlaneseq }
  0x1a   : > { %v468_v1 = vld [vmem:[%s1512_s4 + $0x18] sm:$0xff]  ;;  %457 = vmatpush.msra.mxu0 %v436_v0  ;;  %v467_v3 = vld [vmem:[%s1512_s4 + $0x10] sm:$0xff]  ;;  %v434_v4 = vld [vmem:[%s1510_s2 + $0x8] sm:$0xff]  ;;  %vm505_vm1 = vcmask 64512   ;;  %s1280_s26 = smov 96   ;;  %s1281_s27 = smov 120  }
  0x1b   : > { %s1522_s17 = smov (!%p419_p6, %s1352_s17), 1  ;;  %488 = vmatpush.msra.mxu1 %v468_v1  ;;  %v466_v5 = vld [vmem:[%s1512_s4 + $0x8] sm:$0xff]  ;;  %v433_v6 = vld [vmem:[%s1510_s2] sm:$0xff]  ;;  %s1283_s28 = smov 104   ;;  %v501_v19 = vshrl.u32 %v500_v18, 7  ;;  %v503_v20 = vand.u32 127, %v500_v18 }
  0x1c   : > { %s1402_s16 = sshll.u32 %s1522_s17, 3  ;;  %458 = vmatpush.msra.mxu0 %v435_v2  ;;  %v465_v7 = vld [vmem:[%s1512_s4] sm:$0xff]  ;;  %s1282_s17 = smov 112   ;;  %v497_v18 = vld [vmem:[%s1514_s6 + $0x8] sm:$0xff] }
  0x1d   : > { %s422_s14 = scalar_lea.vmem %s1508_s0, %s1402_s16  ;;  %s426_s21 = scalar_lea.vmem %s1509_s1, %s1402_s16  ;;  %489 = vmatpush.msra.mxu1 %v467_v3  ;;  %v1111_v10 = vld [vmem:[%s1511_s3] ss:$0 sm:$0xff]  ;;  %vm504_vm2 = vcmp.gt.s32.totalorder %v503_v20, %v501_v19  ;;  %v498_v19 = vld [vmem:[%s1514_s6 + $0x10] sm:$0xff] }
  0x1e   : > { %459 = vmatpush.msra.mxu0 %v434_v4  ;;  %v1436_v8 = vld [vmem:[%s422_s14] sm:$0xff]  ;;  %s1284_s11 = smov 72   ;;  %s1285_s12 = smov 80  }
  0x1f   : > { %490 = vmatpush.msra.mxu1 %v466_v5  ;;  %v432_v9 = vld [vmem:[%s426_s21] sm:$0xff]  ;;  %s1286_s14 = smov 88   ;;  %s430_s25 = scalar_lea.vmem %s1518_s10, %s1402_s16 }
  0x20   : > { %460 = vmatpush.msra.mxu0 %v433_v6  ;;  %v1112_v11 = vld [vmem:[#allocation2] ss:$0 sm:$0xff] }
  0x21   : > { %491 = vmatpush.msra.mxu1 %v465_v7  ;;  %1034 = vmatmul.msk.f32.vlgmr.msra.gmra.mxu0 %vm441_vm0, %v1436_v8  ;;  %v496_v30 = vld [vmem:[%s1514_s6] sm:$0xff] }
  0x22   : > { %1035 = vmatmul.msk.f32.vlgmr.msra.gmra.mxu1 %vm441_vm0, %v432_v9  ;;  %656 = vmatpush.msrb.mxu0 %v497_v18 }
  0x23   : > { %679 = vmatpush.msrb.mxu1 %v496_v30 }
  0x24   : > { %769 = vmatpush.msra.mxu0 %v498_v19 }
  0x9e   : > { %v462_v12 = vpop.f32.mrf.mxu0 }
  0x9f   : > { %v493_v13 = vpop.f32.mrf.mxu1  ;;  %v463_v14 = vadd.f32 %v1111_v10, %v462_v12 }
  0xa0   : > { %v1444_v15 = vadd.f32 %v1112_v11, %v493_v13 }
  0xa1   : > { %571 = vrot.lane.b32.xlu2 %v463_v14, %s1281_s27 }
  0xa2   : > { %545 = vrot.lane.b32.xlu1 %v1444_v15, %s1280_s26  ;;  %1036 = vmatpush.xpose.msk.msra.mxu2 %vm505_vm1, %v1444_v15 }
  0xa5   : > { %1037 = vmatmul.msk.f32.vlgmr.msra.gmra.mxu2 %vm505_vm1, %v463_v14 }
  0xa9   : > { %686 = vrot.lane.b32.xlu2 %v1444_v15, %s1282_s17 }
  0xaa   : > { %573 = vrot.lane.b32.xlu1 %v1444_v15, %s1281_s27 }
  0xb1   : > { %775 = vrot.lane.b32.xlu2 %v463_v14, %s1283_s28 }
  0xb2   : > { %684 = vrot.lane.b32.xlu1 %v463_v14, %s1282_s17 }
  0xfb   : > { %v572_v31 = vpop.permute.xlu2 %571 }
 0x103   : > { %v687_v35 = vpop.permute.xlu2 %686 }
 0x10b   : > { %v776_v39 = vpop.permute.xlu2 %775 }
 0x114   : > { %v546_v16 = vpop.permute.xlu1 %545 }
 0x115   : > { %566 = vmatpush.msra.mxu3 %v546_v16 }
 0x11c   : > { %v574_v17 = vpop.permute.xlu1 %573 }
 0x11d   : > { %1039 = vmatpush.xpose.msk.msrb.mxu3 %vm505_vm1, %v574_v17  ;;  %v499_v17 = vld [vmem:[%s1514_s6 + $0x18] sm:$0xff] }
 0x124   : > { %v685_v37 = vpop.permute.xlu1 %684 }
 0x128   : > { %v529_v21 = vpop.f32.mrf.mxu2 }
 0x129   : > { %v532_v22 = vmul.f32 0.35355338, %v529_v21 }
 0x12b   : > { %v533_v23 = vsel %vm504_vm2, -1e+30, %v532_v22 }
 0x12c   : > { %v534_v24 = vsel %vm505_vm1, %v533_v23, -inf }
 0x12d   : > { %535 = vmax.xlane.f32.xlu0 %v534_v24 }
 0x1a0   : > { %v536_v25 = vpop.xlane.xlu0 %535 }
 0x1a1   : > { %v537_v26 = vsub.f32 %v533_v23, %v536_v25 }
 0x1a3   : > { %v538_v27 = vmul.f32 1.442695, %v537_v26 }
 0x1a5   : > { %1116 = vpow2.f32 %v538_v27 }
 0x1ab   : > { %v1117_v28 = vpop.eup %1116 }
 0x1ac   : > { %v540_v29 = vsel %vm505_vm1, %v1117_v28, 0.0 }
 0x1ad   : > { %541 = vadd.xlane.f32.xlu0 %v540_v29  ;;  %v1113_v29 = vld [vmem:[#allocation4] ss:$0 sm:$0xff] }
 0x1c1   : > { %777 = vrot.lane.b32.xlu0 %v1444_v15, %s1283_s28 }
 0x220   : > { %v542_v32 = vpop.xlane.xlu0 %541 }
 0x221   : > { %1118 = vrcp.f32 %v542_v32 }
 0x227   : > { %v1119_v33 = vpop.eup %1118 }
 0x228   : > { %v544_v34 = vmul.f32 %v1119_v33, %v1117_v28  ;;  %v1287_v33 = vmov 32.0  }
 0x22a   : > { %1038 = vmatmul.msk.f32.vlgmr.msra.gmra.mxu3 %vm505_vm1, %v544_v34 }
 0x22b   : > { %1044 = vmatpush.xpose.msk.msra.mxu3 %vm505_vm1, %v687_v35 }
 0x232   : > { %1040 = vmatmul.msk.f32.vlgmr.msrb.gmra.mxu3 %vm505_vm1, %v572_v31 }
 0x233   : > { %v778_v36 = vpop.permute.xlu0 %777 }
 0x234   : > { %1048 = vmatpush.xpose.msk.msra.mxu1 %vm505_vm1, %v778_v36 }
 0x23a   : > { %1045 = vmatmul.msk.f32.vlgmr.msra.gmra.mxu3 %vm505_vm1, %v685_v37 }
 0x2ad   : > { %v568_v38 = vpop.f32.mrf.mxu3 }
 0x2ae   : > { %1043 = vmatmul.msk.f32.vlgmr.msrb.gmra.mxu1 %vm505_vm1, %v568_v38 }
 0x2b5   : > { %v596_v40 = vpop.f32.mrf.mxu3 }
 0x2b6   : > { %v599_v41 = vmul.f32 0.35355338, %v596_v40  ;;  %1049 = vmatmul.msk.f32.vlgmr.msra.gmra.mxu1 %vm505_vm1, %v776_v39 }
 0x2b8   : > { %v600_v42 = vsel %vm504_vm2, -1e+30, %v599_v41 }
 0x2b9   : > { %v601_v43 = vsel %vm505_vm1, %v600_v42, -inf }
 0x2ba   : > { %602 = vmax.xlane.f32.xlu1 %v601_v43 }
 0x2bd   : > { %v709_v44 = vpop.f32.mrf.mxu3 }
 0x2be   : > { %v712_v45 = vmul.f32 0.35355338, %v709_v44 }
 0x2c0   : > { %v713_v46 = vsel %vm504_vm2, -1e+30, %v712_v45 }
 0x2c1   : > { %v714_v47 = vsel %vm505_vm1, %v713_v46, -inf }
 0x2c2   : > { %715 = vmax.xlane.f32.xlu0 %v714_v47 }
 0x2d6   : > { %816 = vrot.lane.b32.xlu0 %v1444_v15, %s1284_s11 }
 0x32b   : > { %v1472_v48 = vpop.f32.mrf.mxu1 }
 0x32d   : > { %v603_v49 = vpop.xlane.xlu1 %602 }
 0x32e   : > { %v604_v50 = vsub.f32 %v600_v42, %v603_v49 }
 0x330   : > { %v605_v51 = vmul.f32 1.442695, %v604_v50 }
 0x332   : > { %1120 = vpow2.f32 %v605_v51 }
 0x333   : > { %v800_v52 = vpop.f32.mrf.mxu1 }
 0x334   : > { %v803_v53 = vmul.f32 0.35355338, %v800_v52 }
 0x335   : > { %v716_v54 = vpop.xlane.xlu0 %715 }
 0x336   : > { %v717_v55 = vsub.f32 %v713_v46, %v716_v54  ;;  %v804_v56 = vsel %vm504_vm2, -1e+30, %v803_v53  ;;  %v1114_v53 = vld [vmem:[#allocation6] ss:$0 sm:$0xff] }
 0x337   : > { %v805_v57 = vsel %vm505_vm1, %v804_v56, -inf }
 0x338   : > { %806 = vmax.xlane.f32.xlu2 %v805_v57  ;;  %v718_v58 = vmul.f32 1.442695, %v717_v55  ;;  %v1121_v59 = vpop.eup %1120  ;;  %v1115_v55 = vld [vmem:[#allocation7] ss:$0 sm:$0xff] }
 0x339   : > { %v607_v60 = vsel %vm505_vm1, %v1121_v59, 0.0 }
 0x33a   : > { %1122 = vpow2.f32 %v718_v58 }
 0x340   : > { %608 = vadd.xlane.f32.xlu2 %v607_v60  ;;  %v1123_v61 = vpop.eup %1122 }
 0x341   : > { %v720_v62 = vsel %vm505_vm1, %v1123_v61, 0.0 }
 0x348   : > { %721 = vadd.xlane.f32.xlu2 %v720_v62  ;;  %v817_v63 = vpop.permute.xlu0 %816 }
 0x349   : > { %837 = vmatpush.msrb.mxu3 %v817_v63 }
 0x360   : > { %725 = vrot.lane.b32.xlu2 %v1444_v15, %s1285_s12 }
 0x3ab   : > { %v807_v0 = vpop.xlane.xlu2 %806 }
 0x3ac   : > { %v808_v1 = vsub.f32 %v804_v56, %v807_v0 }
 0x3ae   : > { %v809_v2 = vmul.f32 1.442695, %v808_v1 }
 0x3b0   : > { %1124 = vpow2.f32 %v809_v2 }
 0x3b3   : > { %v609_v6 = vpop.xlane.xlu2 %608 }
 0x3b6   : > { %v1125_v3 = vpop.eup %1124 }
 0x3b7   : > { %v811_v4 = vsel %vm505_vm1, %v1125_v3, 0.0 }
 0x3b8   : > { %812 = vadd.xlane.f32.xlu1 %v811_v4 }
 0x3bb   : > { %v722_v10 = vpop.xlane.xlu2 %721 }
 0x3c3   : > { %v726_v14 = vpop.permute.xlu2 %725 }
 0x3d1   : > { %612 = vrot.lane.b32.xlu1 %v1444_v15, %s1286_s14 }
 0x42b   : > { %v813_v5 = vpop.xlane.xlu1 %812 }
 0x42c   : > { %1126 = vrcp.f32 %v813_v5 }
 0x42d   : > { %1128 = vrcp.f32 %v609_v6 }
 0x42e   : > { %1130 = vrcp.f32 %v722_v10 }
 0x42f   : > { %1132 = vrcp.f32 %v1287_v33 }
 0x432   : > { %v1127_v7 = vpop.eup %1126 }
 0x433   : > { %v815_v9 = vmul.f32 %v1127_v7, %v1125_v3  ;;  %v1129_v11 = vpop.eup %1128 }
 0x434   : > { %v611_v13 = vmul.f32 %v1129_v11, %v1121_v59  ;;  %v1131_v16 = vpop.eup %1130 }
 0x435   : > { %1050 = vmatmul.msk.f32.vlgmr.msrb.gmra.mxu3 %vm505_vm1, %v815_v9  ;;  %v724_v15 = vmul.f32 %v1131_v16, %v1123_v61  ;;  %v1133_v34 = vpop.eup %1132 }
 0x436   : > { %v876_v35 = vmul.f32 32.0, %v1133_v34  ;;  %vm880_vm3 = vweird.f32 %v1133_v34 }
 0x438   : > { %v877_v36 = vsub.f32 1.0, %v876_v35 }
 0x43a   : > { %v878_v37 = vmul.f32 %v1133_v34, %v877_v36 }
 0x43c   : > { %v879_v38 = vadd.f32 %v1133_v34, %v878_v37 }
 0x43e   : > { %v881_v39 = vsel %vm880_vm3, %v1133_v34, %v879_v38 }
 0x443   : > { %v613_v12 = vpop.permute.xlu1 %612 }
 0x444   : > { %633 = vmatpush.msrb.mxu2 %v613_v12 }
 0x445   : > { %1041 = vmatmul.msk.f32.vlgmr.msrb.gmra.mxu2 %vm505_vm1, %v611_v13 }
 0x446   : > { %746 = vmatpush.msra.mxu2 %v726_v14 }
 0x448   : > { %860 = vmatpush.msrb.mxu2 %v499_v17 }
 0x44d   : > { %1046 = vmatmul.msk.f32.vlgmr.msra.gmra.mxu2 %vm505_vm1, %v724_v15 }
 0x4b8   : > { %v839_v20 = vpop.f32.mrf.mxu3 }
 0x4b9   : > { %1051 = vmatmul.msk.f32.vlgmr.msrb.gmra.mxu2 %vm505_vm1, %v839_v20 }
 0x4c8   : > { %v635_v21 = vpop.f32.mrf.mxu2 }
 0x4c9   : > { %1042 = vmatmul.msk.f32.vlgmr.msrb.gmra.mxu0 %vm505_vm1, %v635_v21 }
 0x4d0   : > { %v748_v22 = vpop.f32.mrf.mxu2 }
 0x4d1   : > { %1047 = vmatmul.msk.f32.vlgmr.msra.gmra.mxu0 %vm505_vm1, %v748_v22 }
 0x53c   : > { %v862_v27 = vpop.f32.mrf.mxu2 }
 0x546   : > { %v658_v23 = vpop.f32.mrf.mxu0 }
 0x547   : > { %v682_v24 = vadd.f32 %v1472_v48, %v658_v23 }
 0x54e   : > { %v771_v25 = vpop.f32.mrf.mxu0 }
 0x54f   : > { %v774_v26 = vadd.f32 %v771_v25, %v682_v24 }
 0x551   : > { %v865_v28 = vadd.f32 %v862_v27, %v774_v26 }
 0x553   : > { %v866_v30 = vadd.f32 %v865_v28, %v1436_v8 }
 0x555   : > { %v871_v31 = vadd.f32 %v1113_v29, %v866_v30 }
 0x557   : > { %v872_v32 = vsel %vm441_vm0, %v871_v31, 0.0 }
 0x558   : > { %873 = vadd.xlane.f32.xlu0 %v872_v32 }
 0x5cb   : > { %v874_v40 = vpop.xlane.xlu0 %873 }
 0x5cc   : > { %v882_v41 = vmul.f32 %v881_v39, %v874_v40 }
 0x5ce   : > { %v883_v42 = vsub.f32 %v871_v31, %v882_v41 }
 0x5d0   : > { %v884_v43 = vmul.f32 %v883_v42, %v883_v42 }
 0x5d2   : > { %v885_v44 = vsel %vm441_vm0, %v884_v43, 0.0 }
 0x5d3   : > { %886 = vadd.xlane.f32.xlu1 %v885_v44 }
 0x646   : > { %v887_v8 = vpop.xlane.xlu1 %886 }
 0x647   : > { %v888_v45 = vmul.f32 %v887_v8, %v881_v39 }
 0x649   : > { %v889_v46 = vadd.f32 1e-05, %v888_v45 }
 0x64b   : > { %1134 = vrsqrt.f32 %v889_v46  ;;  %vm896_vm5 = vweird.f32 %v889_v46 }
 0x651   : > { %v1135_v47 = vpop.eup %1134 }
 0x652   : > { %v891_v48 = vmul.f32 %v1135_v47, %v889_v46  ;;  %vm897_vm4 = vweird.f32 %v1135_v47 }
 0x653   : > { %vm898_vm6 = vmor %vm896_vm5, %vm897_vm4 }
 0x654   : > { %v892_v49 = vmul.f32 %v1135_v47, %v891_v48 }
 0x656   : > { %v893_v50 = vmul.f32 0.5, %v892_v49 }
 0x658   : > { %v894_v51 = vsub.f32 1.5, %v893_v50 }
 0x65a   : > { %v895_v52 = vmul.f32 %v1135_v47, %v894_v51 }
 0x65c   : > { %v899_v54 = vsel %vm898_vm6, %v1135_v47, %v895_v52 }
 0x65d   : > { %v900_v56 = vmul.f32 %v899_v54, %v883_v42 }
 0x65f   : > { %v905_v57 = vmul.f32 %v1114_v53, %v900_v56 }
 0x661   : > { %v910_v58 = vadd.f32 %v1115_v55, %v905_v57 }
 0x663   : > { %911 = vst.msk [vmem:[%s430_s25] sm:$0xff] %vm441_vm0, %v910_v58 }
 0x664 PF: > { %s23_s13 = sadd.s32 1, %s1274_s13  }
 0x665   : > { %p20_p7 = scmp.ge.s32.totalorder %s23_s13, 4  }
 0x667   :  { %22 = sbr.rel (!%p20_p7) target bundleno = 3 (0x3), region = 110 }
 0x66c   :  { %931 = vsyncpa [#allocation3], 1 }
 0x66d   :  { %933 = vsyncpa [#allocation3 + $0x1], 1 }
 0x66e   :  { %934 = vsyncpa [#allocation5], 1 }
 0x66f   :  { %935 = vsyncpa [#allocation8], 1 }

// kernel: forward.19
= control target key start
LH: loop header
LB: loop body
LE: loop exit
PB: predicated region body
PF: predicated region fallthrough
CT: control target
= control target key end

     0   :  { %15 = vsyncpa [#allocation3], 0  ;;  %s1576_s0 = inlined_call_operand.vmem [shape: f32[2,8,32], index: 0, kind: input, shape index: {}]   ;;  %s1577_s1 = inlined_call_operand.vmem [shape: f32[2,9,32], index: 1, kind: input, shape index: {}]   ;;  %s1578_s2 = inlined_call_operand.vmem [shape: f32[32,32], index: 2, kind: input, shape index: {}]   ;;  %s1579_s3 = inlined_call_operand.vmem [shape: f32[1,32], index: 3, kind: input, shape index: {}]   ;;  %s1580_s4 = inlined_call_operand.vmem [shape: f32[32,64], index: 4, kind: input, shape index: {}]   ;;  %s1581_s5 = inlined_call_operand.hbm [shape: f32[1,64], index: 5, kind: input, shape index: {}]   ;;  %s1582_s6 = inlined_call_operand.vmem [shape: f32[32,32], index: 6, kind: input, shape index: {}]   ;;  %s1583_s7 = inlined_call_operand.hbm [shape: f32[1,32], index: 7, kind: input, shape index: {}]   ;;  %s1584_s8 = inlined_call_operand.hbm [shape: f32[1,32], index: 8, kind: input, shape index: {}]   ;;  %s1585_s9 = inlined_call_operand.hbm [shape: f32[1,32], index: 9, kind: input, shape index: {}]   ;;  %s1586_s10 = inlined_call_operand.vmem [shape: f32[2,8,32], index: 10, kind: output, shape index: {}]  }
   0x1   :  { %16 = vsyncpa [#allocation5], 0 }
   0x2   :  { %17 = vsyncpa [#allocation8], 0  ;;  %s1388_s13 = smov 0  }
   0x3 LB: > { %s310_s16 = sshll.u32 %s1583_s7, 4  ;;  %s1397_s17 = sadd.s32 4294967295, %s1319_s13   ;;  %s1319_s13 = sphi %s1388_s13, %s23_s13   ;;  %s311_s16 = int_to_ptr.hbm [resolvable:$true] %s310_s16 }
   0x4   : > { %p1054_p0 = scmp.ge.s32.totalorder %s1319_s13, 1  ;;  %p274_p1 = scmp.lt.s32.totalorder %s1319_s13, 3 }
   0x5   : > { %p1128_p2 = scmp.eq.s32.totalorder %s1397_s17, 0  ;;  %s1321_s19 = smov [#allocation4]  }
   0x6   : > { %p1402_p3 = pnand %p1054_p0, %p274_p1  ;;  %s312_s20 = sshll.u32 %s1321_s19, 4  ;;  %s313_s20 = int_to_ptr.vmem [resolvable:$true] %s312_s20 }
   0x7   : > { %s295_s23 = sshll.u32 %s1581_s5, 4  ;;  %s322_s26 = sshll.u32 %s1584_s8, 4  ;;  %s296_s23 = int_to_ptr.hbm [resolvable:$true] %s295_s23  ;;  %s323_s26 = int_to_ptr.hbm [resolvable:$true] %s322_s26 }
   0x8   : > { %p1115_p4 = pneg %p1402_p3  ;;  %s1322_s28 = smov [#allocation2]  }
   0x9   : > { %s297_s29 = sshll.u32 %s1322_s28, 4  ;;  %s1323_s30 = smov [#allocation6]   ;;  %s298_s29 = int_to_ptr.vmem [resolvable:$true] %s297_s29 }
   0xa   : > { %p1416_p5 = pnand %p1128_p2, %p1115_p4  ;;  %s324_s11 = sshll.u32 %s1323_s30, 4  ;;  %s325_s11 = int_to_ptr.vmem [resolvable:$true] %s324_s11 }
   0xb   : > { %s334_s15 = sshll.u32 %s1585_s9, 4  ;;  %s1324_s19 = smov [#allocation7]   ;;  %s335_s15 = int_to_ptr.hbm [resolvable:$true] %s334_s15 }
   0xc   : > { %1121 = dma.hbm_to_vmem [thread:$0]  (!%p1416_p5), %s311_s16, 16, %s313_s20, [#allocation5]  }
   0xd   : > { %1118 = dma.hbm_to_vmem [thread:$0]  (!%p1416_p5), %s296_s23, 16, %s298_s29, [#allocation3]  }
   0xe   : > { %1124 = dma.hbm_to_vmem [thread:$0]  (!%p1416_p5), %s323_s26, 16, %s325_s11, [#allocation5]  }
   0xf   : > { %s336_s21 = sshll.u32 %s1324_s19, 4  ;;  %364 = sbr.rel (%p1402_p3) target bundleno = 1902 (0x76e), region = 60  ;;  %s337_s21 = int_to_ptr.vmem [resolvable:$true] %s336_s21 }
  0x10   : > { %1127 = dma.hbm_to_vmem [thread:$0]  (!%p1416_p5), %s335_s15, 16, %s337_s21, [#allocation8]  }
  0x14   : > { %1306 = dma.done.wait (%p1128_p2), [#allocation3], 16  }
  0x15   : > { %1308 = vsyncadd (%p1128_p2), [#allocation3], 4294967280 }
  0x16   : > { %1310 = dma.done.wait (%p1128_p2), [#allocation5], 32  }
  0x17   : > { %1312 = vsyncadd (%p1128_p2), [#allocation5], 4294967264 }
  0x18   : > { %1314 = dma.done.wait (%p1128_p2), [#allocation8], 16  }
  0x19   : > { %1316 = vsyncadd (%p1128_p2), [#allocation8], 4294967280  ;;  %p421_p6 = scmp.lt.s32.totalorder %s1397_s17, 1  ;;  %v472_v0 = vld [vmem:[%s1580_s4 + $0x18] sm:$0xff]  ;;  %v471_v1 = vld [vmem:[%s1580_s4 + $0x10] sm:$0xff]  ;;  %vm445_vm0 = vcmask 261120  }
  0x1a   : > { %495 = vmatpush.msra.mxu1 %v472_v0  ;;  %v440_v2 = vld [vmem:[%s1578_s2 + $0x18] sm:$0xff]  ;;  %v470_v3 = vld [vmem:[%s1580_s4 + $0x8] sm:$0xff]  ;;  %v439_v4 = vld [vmem:[%s1578_s2 + $0x10] sm:$0xff]  ;;  %vm510_vm1 = vcmask 64512   ;;  %s1325_s26 = smov 120   ;;  %s1326_s28 = smov 96  }
  0x1b   : > { %s1590_s17 = smov (!%p421_p6, %s1397_s17), 1  ;;  %461 = vmatpush.msra.mxu0 %v440_v2  ;;  %v469_v5 = vld [vmem:[%s1580_s4] sm:$0xff]  ;;  %v438_v6 = vld [vmem:[%s1578_s2 + $0x8] sm:$0xff]  ;;  %vm561_vm2 = vcmask 1040384   ;;  %vm541_vm3 = vcmask 72704   ;;  %s1328_s11 = smov 112  }
  0x1c   : > { %s1098_s16 = sshll.u32 %s1590_s17, 4  ;;  %s1065_s24 = sshll.u32 %s1590_s17, 3  ;;  %496 = vmatpush.msra.mxu1 %v471_v1  ;;  %v437_v8 = vld [vmem:[%s1578_s2] sm:$0xff]  ;;  %v507_v56 = vld [vmem:[%s1582_s6 + $0x8] sm:$0xff] }
  0x1d   : > { %s429_s27 = scalar_lea.vmem %s1577_s1, %s1098_s16  ;;  %s424_s22 = scalar_lea.vmem %s1576_s0, %s1065_s24  ;;  %462 = vmatpush.msra.mxu0 %v439_v4  ;;  %v1156_v12 = vld [vmem:[#allocation2] ss:$0 sm:$0xff] }
  0x1e   : > { %v435_v7 = vld [vmem:[%s429_s27] sm:$0xff]  ;;  %497 = vmatpush.msra.mxu1 %v470_v3  ;;  %v436_v10 = vld [vmem:[%s429_s27 + $0x8] sm:$0x1]  ;;  %s1327_s27 = smov 88   ;;  %s1329_s12 = smov 104  }
  0x1f   : > { %463 = vmatpush.msra.mxu0 %v438_v6  ;;  %v1483_v9 = vld [vmem:[%s424_s22] sm:$0xff]  ;;  %s1330_s14 = smov 80   ;;  %s1331_s18 = smov 72  }
  0x20   : > { %498 = vmatpush.msra.mxu1 %v469_v5  ;;  %v1157_v15 = vld [vmem:[%s1579_s3] ss:$0 sm:$0xff]  ;;  %s433_s29 = scalar_lea.vmem %s1586_s10, %s1065_s24 }
  0x21   : > { %1070 = vmatmul.msk.f32.vlgmr.msra.gmra.mxu1 %vm445_vm0, %v435_v7  ;;  %464 = vmatpush.msra.mxu0 %v437_v8  ;;  %v506_v38 = vld [vmem:[%s1582_s6] sm:$0xff] }
  0x22   : > { %1069 = vmatmul.msk.f32.vlgmr.msra.gmra.mxu0 %vm445_vm0, %v1483_v9 }
  0x29   : > { %1071 = vmatmul.msk.f32.gmra.mxu1 %vm445_vm0, %v436_v10 }
  0x9e   : > { %v500_v11 = vpop.f32.mrf.mxu1 }
  0x9f   : > { %v466_v16 = vpop.f32.mrf.mxu0  ;;  %v1499_v17 = vadd.f32 %v1156_v12, %v500_v11 }
  0xa0   : > { %v467_v18 = vadd.f32 %v1157_v15, %v466_v16 }
  0xa6   : > { %v503_v13 = vpop.f32.mrf.mxu1 }
  0xa7   : > { %v1489_v14 = vadd.f32 %v1156_v12, %v503_v13 }
  0xa9   : > { %588 = vrot.lane.b32.xlu2 %v1489_v14, %s1325_s26  ;;  %555 = vrot.lane.b32.xlu1 %v1489_v14, %s1326_s28 }
  0xaa   : > { %1072 = vmatpush.xpose.msk.msra.mxu2 %vm510_vm1, %v1489_v14 }
  0xae   : > { %1073 = vmatpush.xpose.msk.msra.mxu2 %vm510_vm1, %v1499_v17 }
  0xb1   : > { %1074 = vmatmul.msk.f32.vlgmr.msra.gmra.mxu2 %vm510_vm1, %v467_v18  ;;  %586 = vrot.lane.b32.xlu2 %v1499_v17, %s1325_s26 }
  0xb2   : > { %553 = vrot.lane.b32.xlu1 %v1499_v17, %s1326_s28  ;;  %676 = vmatpush.msrb.mxu2 %v507_v56  ;;  %v1159_v56 = vld [vmem:[#allocation6] ss:$0 sm:$0xff] }
 0x103   : > { %v589_v20 = vpop.permute.xlu2 %588 }
 0x10b   : > { %v587_v22 = vpop.permute.xlu2 %586 }
 0x11b   : > { %v556_v19 = vpop.permute.xlu1 %555 }
 0x11c   : > { %1075 = vmatpush.msk.msra.mxu3 %vm561_vm2, %v556_v19 }
 0x124   : > { %v554_v21 = vpop.permute.xlu1 %553 }
 0x125   : > { %579 = vmatpush.msra.mxu3 %v554_v21 }
 0x127   : > { %1077 = vmatpush.xpose.msk.msrb.mxu3 %vm510_vm1, %v589_v20 }
 0x12b   : > { %1078 = vmatpush.xpose.msk.msrb.mxu3 %vm510_vm1, %v587_v22 }
 0x134   : > { %v537_v23 = vpop.f32.mrf.mxu2 }
 0x135   : > { %v540_v24 = vmul.f32 0.35355338, %v537_v23 }
 0x137   : > { %v542_v25 = vsel %vm541_vm3, %v540_v24, -inf }
 0x138   : > { %543 = vmax.xlane.f32.xlu0 %v542_v25 }
 0x1ab   : > { %v544_v26 = vpop.xlane.xlu0 %543 }
 0x1ac   : > { %v545_v27 = vsub.f32 %v540_v24, %v544_v26 }
 0x1ae   : > { %v546_v28 = vmul.f32 1.442695, %v545_v27 }
 0x1b0   : > { %1161 = vpow2.f32 %v546_v28 }
 0x1b6   : > { %v1162_v29 = vpop.eup %1161 }
 0x1b7   : > { %v548_v30 = vsel %vm541_vm3, %v1162_v29, 0.0 }
 0x1b8   : > { %549 = vadd.xlane.f32.xlu0 %v548_v30 }
 0x1cc   : > { %584 = vrot.lane.b32.xlu0 %v467_v18, %s1325_s26 }
 0x1d4   : > { %630 = vrot.lane.b32.xlu0 %v1489_v14, %s1327_s27 }
 0x1dc   : > { %628 = vrot.lane.b32.xlu0 %v1499_v17, %s1327_s27 }
 0x1e4   : > { %708 = vrot.lane.b32.xlu0 %v1489_v14, %s1328_s11 }
 0x1ec   : > { %804 = vrot.lane.b32.xlu0 %v1499_v17, %s1329_s12 }
 0x1f4   : > { %704 = vrot.lane.b32.xlu0 %v467_v18, %s1328_s11 }
 0x1fc   : > { %802 = vrot.lane.b32.xlu0 %v467_v18, %s1329_s12 }
 0x204   : > { %748 = vrot.lane.b32.xlu0 %v1499_v17, %s1330_s14 }
 0x22b   : > { %v550_v31 = vpop.xlane.xlu0 %549 }
 0x22c   : > { %1163 = vrcp.f32 %v550_v31 }
 0x232   : > { %v1164_v32 = vpop.eup %1163 }
 0x233   : > { %v552_v33 = vmul.f32 %v1164_v32, %v1162_v29  ;;  %v1158_v32 = vld [vmem:[#allocation4] ss:$0 sm:$0xff] }
 0x235   : > { %1076 = vmatmul.msk.f32.vlgmr.msra.gmra.mxu3 %vm541_vm3, %v552_v33 }
 0x236   : > { %699 = vmatpush.msra.mxu3 %v506_v38 }
 0x23e   : > { %v585_v34 = vpop.permute.xlu0 %584 }
 0x23f   : > { %1079 = vmatmul.msk.f32.vlgmr.msrb.gmra.mxu3 %vm510_vm1, %v585_v34 }
 0x246   : > { %v631_v35 = vpop.permute.xlu0 %630 }
 0x247   : > { %1080 = vmatpush.msk.msrb.mxu0 %vm561_vm2, %v631_v35 }
 0x24e   : > { %v629_v36 = vpop.permute.xlu0 %628 }
 0x24f   : > { %653 = vmatpush.msrb.mxu0 %v629_v36  ;;  %v1332_v36 = vmov 32.0  }
 0x256   : > { %v709_v37 = vpop.permute.xlu0 %708 }
 0x257   : > { %1084 = vmatpush.xpose.msk.msra.mxu0 %vm510_vm1, %v709_v37 }
 0x25e   : > { %v805_v49 = vpop.permute.xlu0 %804 }
 0x266   : > { %v705_v51 = vpop.permute.xlu0 %704 }
 0x26e   : > { %v803_v55 = vpop.permute.xlu0 %802 }
 0x276   : > { %v749_v8 = vpop.permute.xlu0 %748 }
 0x2b8   : > { %v581_v39 = vpop.f32.mrf.mxu3 }
 0x2b9   : > { %1083 = vmatmul.msk.f32.vlgmr.msra.gmra.mxu3 %vm510_vm1, %v581_v39 }
 0x2c2   : > { %v613_v40 = vpop.f32.mrf.mxu3 }
 0x2c3   : > { %v616_v41 = vmul.f32 0.35355338, %v613_v40 }
 0x2c5   : > { %v617_v42 = vsel %vm541_vm3, %v616_v41, -inf }
 0x2c6   : > { %618 = vmax.xlane.f32.xlu1 %v617_v42 }
 0x2df   : > { %706 = vrot.lane.b32.xlu1 %v1499_v17, %s1328_s11 }
 0x339   : > { %v619_v43 = vpop.xlane.xlu1 %618 }
 0x33a   : > { %v620_v44 = vsub.f32 %v616_v41, %v619_v43 }
 0x33c   : > { %v621_v45 = vmul.f32 1.442695, %v620_v44  ;;  %v701_v58 = vpop.f32.mrf.mxu3 }
 0x33e   : > { %1165 = vpow2.f32 %v621_v45 }
 0x344   : > { %v1166_v46 = vpop.eup %1165 }
 0x345   : > { %v623_v47 = vsel %vm541_vm3, %v1166_v46, 0.0 }
 0x346   : > { %624 = vadd.xlane.f32.xlu2 %v623_v47 }
 0x351   : > { %v707_v48 = vpop.permute.xlu1 %706 }
 0x352   : > { %1085 = vmatpush.xpose.msk.msra.mxu0 %vm510_vm1, %v707_v48 }
 0x35e   : > { %806 = vrot.lane.b32.xlu2 %v1489_v14, %s1329_s12 }
 0x3b9   : > { %v625_v50 = vpop.xlane.xlu2 %624 }
 0x3ba   : > { %1167 = vrcp.f32 %v625_v50 }
 0x3c0   : > { %v1168_v52 = vpop.eup %1167 }
 0x3c1   : > { %v807_v53 = vpop.permute.xlu2 %806  ;;  %v627_v54 = vmul.f32 %v1168_v52, %v1166_v46 }
 0x3c2   : > { %1090 = vmatpush.xpose.msk.msrb.mxu3 %vm510_vm1, %v807_v53 }
 0x3c3   : > { %1081 = vmatmul.msk.f32.vlgmr.msrb.gmra.mxu0 %vm541_vm3, %v627_v54 }
 0x3c6   : > { %1091 = vmatpush.xpose.msk.msrb.mxu3 %vm510_vm1, %v805_v49 }
 0x3c9   : > { %1092 = vmatmul.msk.f32.vlgmr.msrb.gmra.mxu3 %vm510_vm1, %v803_v55 }
 0x3cb   : > { %1086 = vmatmul.msk.f32.vlgmr.msra.gmra.mxu0 %vm510_vm1, %v705_v51 }
 0x440   : > { %v655_v57 = vpop.f32.mrf.mxu0 }
 0x441   : > { %1082 = vmatmul.msk.f32.vlgmr.msrb.gmra.mxu2 %vm510_vm1, %v655_v57 }
 0x448   : > { %v733_v59 = vpop.f32.mrf.mxu0 }
 0x449   : > { %v736_v60 = vmul.f32 0.35355338, %v733_v59 }
 0x44b   : > { %v737_v61 = vsel %vm541_vm3, %v736_v60, -inf }
 0x44c   : > { %738 = vmax.xlane.f32.xlu2 %v737_v61  ;;  %v831_v62 = vpop.f32.mrf.mxu3 }
 0x44d   : > { %v834_v63 = vmul.f32 0.35355338, %v831_v62 }
 0x44f   : > { %v835_v0 = vsel %vm541_vm3, %v834_v63, -inf }
 0x450   : > { %836 = vmax.xlane.f32.xlu1 %v835_v0 }
 0x464   : > { %750 = vrot.lane.b32.xlu2 %v1489_v14, %s1330_s14 }
 0x4bf   : > { %v739_v1 = vpop.xlane.xlu2 %738 }
 0x4c0   : > { %v740_v2 = vsub.f32 %v736_v60, %v739_v1 }
 0x4c2   : > { %v741_v3 = vmul.f32 1.442695, %v740_v2 }
 0x4c3   : > { %v837_v4 = vpop.xlane.xlu1 %836 }
 0x4c4   : > { %1169 = vpow2.f32 %v741_v3  ;;  %v838_v5 = vsub.f32 %v834_v63, %v837_v4  ;;  %v678_v26 = vpop.f32.mrf.mxu2 }
 0x4c5   : > { %v702_v28 = vadd.f32 %v701_v58, %v678_v26  ;;  %v1160_v58 = vld [vmem:[#allocation7] ss:$0 sm:$0xff] }
 0x4c6   : > { %v839_v6 = vmul.f32 1.442695, %v838_v5 }
 0x4c7   : > { %v751_v7 = vpop.permute.xlu2 %750 }
 0x4c8   : > { %1171 = vpow2.f32 %v839_v6  ;;  %1087 = vmatpush.msk.msrb.mxu1 %vm561_vm2, %v751_v7 }
 0x4ca   : > { %v1170_v10 = vpop.eup %1169  ;;  %773 = vmatpush.msrb.mxu1 %v749_v8 }
 0x4cb   : > { %v743_v11 = vsel %vm541_vm3, %v1170_v10, 0.0 }
 0x4cc   : > { %744 = vadd.xlane.f32.xlu0 %v743_v11 }
 0x4ce   : > { %v1172_v12 = vpop.eup %1171 }
 0x4cf   : > { %v841_v13 = vsel %vm541_vm3, %v1172_v12, 0.0 }
 0x4d0   : > { %842 = vadd.xlane.f32.xlu1 %v841_v13 }
 0x4e0   : > { %846 = vrot.lane.b32.xlu0 %v1499_v17, %s1331_s18  ;;  %v509_v17 = vld [vmem:[%s1582_s6 + $0x18] sm:$0xff] }
 0x4e1   : > { %894 = vmatpush.msra.mxu1 %v509_v17 }
 0x4e9   : > { %848 = vrot.lane.b32.xlu1 %v1489_v14, %s1331_s18  ;;  %v508_v14 = vld [vmem:[%s1582_s6 + $0x10] sm:$0xff] }
 0x4ea   : > { %796 = vmatpush.msra.mxu2 %v508_v14 }
 0x53f   : > { %v745_v15 = vpop.xlane.xlu0 %744 }
 0x540   : > { %1173 = vrcp.f32 %v745_v15 }
 0x543   : > { %v843_v19 = vpop.xlane.xlu1 %842 }
 0x544   : > { %1175 = vrcp.f32 %v843_v19 }
 0x545   : > { %1177 = vrcp.f32 %v1332_v36 }
 0x546   : > { %v1174_v16 = vpop.eup %1173 }
 0x547   : > { %v747_v18 = vmul.f32 %v1174_v16, %v1170_v10 }
 0x549   : > { %1088 = vmatmul.msk.f32.vlgmr.msrb.gmra.mxu1 %vm541_vm3, %v747_v18 }
 0x54a   : > { %v1176_v20 = vpop.eup %1175 }
 0x54b   : > { %v845_v22 = vmul.f32 %v1176_v20, %v1172_v12  ;;  %v1178_v37 = vpop.eup %1177 }
 0x54c   : > { %v910_v38 = vmul.f32 32.0, %v1178_v37  ;;  %vm914_vm4 = vweird.f32 %v1178_v37 }
 0x54e   : > { %v911_v39 = vsub.f32 1.0, %v910_v38 }
 0x550   : > { %v912_v40 = vmul.f32 %v1178_v37, %v911_v39 }
 0x552   : > { %v847_v23 = vpop.permute.xlu0 %846  ;;  %v913_v41 = vadd.f32 %v1178_v37, %v912_v40 }
 0x554   : > { %v915_v42 = vsel %vm914_vm4, %v1178_v37, %v913_v41 }
 0x55b   : > { %v849_v21 = vpop.permute.xlu1 %848 }
 0x55c   : > { %1093 = vmatpush.msk.msrb.mxu0 %vm561_vm2, %v849_v21 }
 0x55e   : > { %871 = vmatpush.msrb.mxu0 %v847_v23 }
 0x55f   : > { %1094 = vmatmul.msk.f32.vlgmr.msrb.gmra.mxu0 %vm541_vm3, %v845_v22 }
 0x5c6   : > { %v775_v24 = vpop.f32.mrf.mxu1 }
 0x5c7   : > { %1089 = vmatmul.msk.f32.vlgmr.msra.gmra.mxu2 %vm510_vm1, %v775_v24 }
 0x5dc   : > { %v873_v25 = vpop.f32.mrf.mxu0 }
 0x5dd   : > { %1095 = vmatmul.msk.f32.vlgmr.msra.gmra.mxu1 %vm510_vm1, %v873_v25 }
 0x64a   : > { %v798_v27 = vpop.f32.mrf.mxu2 }
 0x64b   : > { %v801_v29 = vadd.f32 %v798_v27, %v702_v28 }
 0x65a   : > { %v896_v30 = vpop.f32.mrf.mxu1 }
 0x65b   : > { %v899_v31 = vadd.f32 %v896_v30, %v801_v29 }
 0x65d   : > { %v900_v33 = vadd.f32 %v899_v31, %v1483_v9 }
 0x65f   : > { %v905_v34 = vadd.f32 %v1158_v32, %v900_v33 }
 0x661   : > { %v906_v35 = vsel %vm445_vm0, %v905_v34, 0.0 }
 0x662   : > { %907 = vadd.xlane.f32.xlu2 %v906_v35 }
 0x6d5   : > { %v908_v43 = vpop.xlane.xlu2 %907 }
 0x6d6   : > { %v916_v44 = vmul.f32 %v915_v42, %v908_v43 }
 0x6d8   : > { %v917_v45 = vsub.f32 %v905_v34, %v916_v44 }
 0x6da   : > { %v918_v46 = vmul.f32 %v917_v45, %v917_v45 }
 0x6dc   : > { %v919_v47 = vsel %vm445_vm0, %v918_v46, 0.0 }
 0x6dd   : > { %920 = vadd.xlane.f32.xlu0 %v919_v47 }
 0x750   : > { %v921_v9 = vpop.xlane.xlu0 %920 }
 0x751   : > { %v922_v48 = vmul.f32 %v921_v9, %v915_v42 }
 0x753   : > { %v923_v49 = vadd.f32 1e-05, %v922_v48 }
 0x755   : > { %1179 = vrsqrt.f32 %v923_v49  ;;  %vm930_vm6 = vweird.f32 %v923_v49 }
 0x75b   : > { %v1180_v50 = vpop.eup %1179 }
 0x75c   : > { %v925_v51 = vmul.f32 %v1180_v50, %v923_v49  ;;  %vm931_vm5 = vweird.f32 %v1180_v50 }
 0x75d   : > { %vm932_vm7 = vmor %vm930_vm6, %vm931_vm5 }
 0x75e   : > { %v926_v52 = vmul.f32 %v1180_v50, %v925_v51 }
 0x760   : > { %v927_v53 = vmul.f32 0.5, %v926_v52 }
 0x762   : > { %v928_v54 = vsub.f32 1.5, %v927_v53 }
 0x764   : > { %v929_v55 = vmul.f32 %v1180_v50, %v928_v54 }
 0x766   : > { %v933_v57 = vsel %vm932_vm7, %v1180_v50, %v929_v55 }
 0x767   : > { %v934_v59 = vmul.f32 %v933_v57, %v917_v45 }
 0x769   : > { %v939_v60 = vmul.f32 %v1159_v56, %v934_v59 }
 0x76b   : > { %v944_v61 = vadd.f32 %v1160_v58, %v939_v60 }
 0x76d   : > { %945 = vst.msk [vmem:[%s433_s29] sm:$0xff] %vm445_vm0, %v944_v61 }
 0x76e PF: > { %s23_s13 = sadd.s32 1, %s1319_s13  }
 0x76f   : > { %p20_p7 = scmp.ge.s32.totalorder %s23_s13, 4  }
 0x771   :  { %22 = sbr.rel (!%p20_p7) target bundleno = 3 (0x3), region = 110 }
 0x776   :  { %965 = vsyncpa [#allocation3], 1 }
 0x777   :  { %967 = vsyncpa [#allocation3 + $0x1], 1 }
 0x778   :  { %968 = vsyncpa [#allocation5], 1 }
 0x779   :  { %969 = vsyncpa [#allocation8], 1 }

</bundles_post_ra>
